<compile_context>
chip_gen: v6e
topology: v6e:2x2x1
jax: 0.10.0
libtpu: 0.0.40
codegen_flags: <defaults>
</compile_context>

<pallas_src>
import math
import numpy as np
import jax
import jax.numpy as jnp
from jax.experimental import pallas as pl
from jax.experimental.pallas import tpu as pltpu

# ---------------- small config (consistent with the module's __init__) -------
B, T, C = 2, 16, 32          # batch, time, encoder_embed_dim
FFN = 64                     # encoder_ffn_embed_dim
HEADS = 4                    # encoder_attention_heads
DH = C // HEADS
K = 8                        # args.conv_pos  (even -> SamePad trims last output)
GROUPS = 4                   # args.conv_pos_groups
LAYERS = 2                   # args.encoder_layers
PAD = K // 2
LN_EPS = 1e-5
NVEC = 3 + 8 * LAYERS        # rows in the packed bias/LayerNorm-vector buffer


def _ln(x, w, b):
    mu = jnp.mean(x, axis=-1, keepdims=True)
    var = jnp.mean(jnp.square(x - mu), axis=-1, keepdims=True)
    return (x - mu) * jax.lax.rsqrt(var + LN_EPS) * w + b


# --------------------------- single fused kernel -----------------------------
def fused_kernel(xcol_ref, wcol_ref, vecs_ref, wqkv_ref, wo_ref, w1_ref, w2_ref, o_ref):
    V = vecs_ref[...]                         # (NVEC, 3C) packed bias/LN vectors
    xcol = xcol_ref[...]                      # (B*T, K*C) im2col of padded input

    # ---- pos_conv (one 256-deep matmul) + exact GELU + residual + encoder LN ----
    x = xcol[:, PAD * C:(PAD + 1) * C]        # original x == tap k=PAD of the im2col
    conv = jnp.dot(xcol, wcol_ref[...], preferred_element_type=jnp.float32) + V[0:1, :C]
    conv = 0.5 * conv * (1.0 + jax.lax.erf(conv * (1.0 / math.sqrt(2.0))))
    x = _ln(x + conv, V[1:2, :C], V[2:3, :C])

    # ---- post-LN transformer layers, fully unrolled, weights VMEM-resident ----
    for l in range(LAYERS):
        r = 3 + 8 * l
        bqkv = V[r + 0:r + 1, :]              # (1, 3C), q-part pre-scaled
        bo   = V[r + 1:r + 2, :C]
        ln1w = V[r + 2:r + 3, :C]
        ln1b = V[r + 3:r + 4, :C]
        b1   = V[r + 4:r + 5, :FFN]
        b2   = V[r + 5:r + 6, :C]
        ln2w = V[r + 6:r + 7, :C]
        ln2b = V[r + 7:r + 8, :C]

        wo = wo_ref[l]                        # (C, C)
        qkv = jnp.dot(x, wqkv_ref[l], preferred_element_type=jnp.float32) + bqkv  # (B*T,3C)

        attn_rows = []
        for b in range(B):                    # unrolled; rows b*T:(b+1)*T are batch b
            qkv_b = qkv[b * T:(b + 1) * T, :]
            acc = jnp.zeros((T, C), jnp.float32)
            for h in range(HEADS):
                qh = qkv_b[:, h * DH:(h + 1) * DH]
                kh = qkv_b[:, C + h * DH:C + (h + 1) * DH]
                vh = qkv_b[:, 2 * C + h * DH:2 * C + (h + 1) * DH]
                # scores via dot_general contracting last dims (no explicit kh.T)
                s = jax.lax.dot_general(qh, kh, (((1,), (1,)), ((), ())),
                                        preferred_element_type=jnp.float32)       # (T,T)
                s = s - jnp.max(s, axis=-1, keepdims=True)
                p = jnp.exp(s)
                p = p * pl.reciprocal(jnp.sum(p, axis=-1, keepdims=True), approx=True)
                ctx = jnp.dot(p, vh, preferred_element_type=jnp.float32)           # (T,DH)
                # fold the head-concatenate into the output projection:
                acc = acc + jnp.dot(ctx, wo[h * DH:(h + 1) * DH, :],
                                    preferred_element_type=jnp.float32)
            attn_rows.append(acc)
        attn = jnp.concatenate(attn_rows, axis=0) + bo                              # (B*T,C)

        x = _ln(x + attn, ln1w, ln1b)         # self_attn_layer_norm

        h1 = jnp.maximum(
            jnp.dot(x, w1_ref[l], preferred_element_type=jnp.float32) + b1, 0.0)
        f = jnp.dot(h1, w2_ref[l], preferred_element_type=jnp.float32) + b2
        x = _ln(x + f, ln2w, ln2b)            # final_layer_norm

    # TODO(synk): output last dim is 32 (<128) -> masked stores; a lane-dense layout
    # would need an in-kernel minor-dim reshape (skipped for lowering safety; 4 KB out).
    o_ref[...] = x


def _full_spec(a):
    nd = a.ndim
    return pl.BlockSpec(a.shape, lambda i, _nd=nd: (0,) * _nd)


def _forward(x, packed):
    # im2col of the zero-padded input: xcol[b*T+t, k*C+c] = xpad[b, t+k, c]
    xpad = jnp.pad(x, ((0, 0), (PAD, PAD), (0, 0)))
    xcol = jnp.concatenate([xpad[:, k:k + T, :] for k in range(K)], axis=-1)
    xcol = xcol.reshape(B * T, K * C)

    args = (xcol, packed['wcol'], packed['vecs'], packed['wqkv'],
            packed['wo'], packed['w1'], packed['w2'])
    out = pl.pallas_call(
        fused_kernel,
        out_shape=jax.ShapeDtypeStruct((B * T, C), jnp.float32),
        grid=(1,),
        in_specs=[_full_spec(a) for a in args],
        out_specs=pl.BlockSpec((B * T, C), lambda i: (0, 0)),
        compiler_params=pltpu.CompilerParams(dimension_semantics=("arbitrary",)),
    )(*args)
    return out.reshape(B, T, C)


transformer_encoder = jax.jit(_forward)


# ------------------------- deterministic parameter init ----------------------
def init_params(key):
    keys = iter(jax.random.split(key, 8 + 8 * LAYERS))

    # pos_conv: Conv1d(C, C, K, padding=K//2, groups=GROUPS), weight shape (C, C/G, K)
    conv_std = math.sqrt(4.0 / (K * C))
    v = conv_std * jax.random.normal(next(keys), (C, C // GROUPS, K), jnp.float32)
    # weight_norm(dim=2): w = g * v / ||v||_{dims 0,1}; at init g = ||v|| so w == v.
    cg = C // GROUPS
    v_np = np.asarray(v)
    wfull = np.zeros((K, C, C), np.float32)              # wfull[k, c_in, c_out]
    for g in range(GROUPS):
        for kk in range(K):
            wfull[kk, g * cg:(g + 1) * cg, g * cg:(g + 1) * cg] = v_np[g * cg:(g + 1) * cg, :, kk].T
    conv_w = jnp.asarray(wfull)
    conv_b = jnp.zeros((1, C), jnp.float32)

    enc_lnw = jnp.ones((1, C), jnp.float32)
    enc_lnb = jnp.zeros((1, C), jnp.float32)

    def lin(kk, din, dout):                              # init_bert_params: N(0, 0.02), zero bias
        return 0.02 * jax.random.normal(kk, (din, dout), jnp.float32)

    layers = []
    for _ in range(LAYERS):
        lp = dict(
            wq=lin(next(keys), C, C), bq=jnp.zeros((1, C), jnp.float32),
            wk=lin(next(keys), C, C), bk=jnp.zeros((1, C), jnp.float32),
            wv=lin(next(keys), C, C), bv=jnp.zeros((1, C), jnp.float32),
            wo=lin(next(keys), C, C), bo=jnp.zeros((1, C), jnp.float32),
            ln1w=jnp.ones((1, C), jnp.float32), ln1b=jnp.zeros((1, C), jnp.float32),
            w1=lin(next(keys), C, FFN), b1=jnp.zeros((1, FFN), jnp.float32),
            w2=lin(next(keys), FFN, C), b2=jnp.zeros((1, C), jnp.float32),
            ln2w=jnp.ones((1, C), jnp.float32), ln2b=jnp.zeros((1, C), jnp.float32),
        )
        layers.append(lp)

    return dict(conv_w=conv_w, conv_b=conv_b, enc_lnw=enc_lnw, enc_lnb=enc_lnb,
                layers=layers)


# ------------------- pack natural params into kernel buffers -----------------
def pack_params(params):
    scale = 1.0 / math.sqrt(DH)

    # im2col conv weight: row k*C + c_in, col c_out
    wcol = np.asarray(params['conv_w']).reshape(K * C, C)

    vecs = np.zeros((NVEC, 3 * C), np.float32)
    vecs[0, :C] = np.asarray(params['conv_b']).reshape(-1)
    vecs[1, :C] = np.asarray(params['enc_lnw']).reshape(-1)
    vecs[2, :C] = np.asarray(params['enc_lnb']).reshape(-1)

    wqkv = np.zeros((LAYERS, C, 3 * C), np.float32)
    wo = np.zeros((LAYERS, C, C), np.float32)
    w1 = np.zeros((LAYERS, C, FFN), np.float32)
    w2 = np.zeros((LAYERS, FFN, C), np.float32)

    for l, p in enumerate(params['layers']):
        wqkv[l, :, 0:C]       = np.asarray(p['wq']) * scale   # fold 1/sqrt(DH) into Wq
        wqkv[l, :, C:2 * C]   = np.asarray(p['wk'])
        wqkv[l, :, 2 * C:]    = np.asarray(p['wv'])
        wo[l] = np.asarray(p['wo'])
        w1[l] = np.asarray(p['w1'])
        w2[l] = np.asarray(p['w2'])
        r = 3 + 8 * l
        vecs[r + 0, 0:C]      = np.asarray(p['bq']).reshape(-1) * scale
        vecs[r + 0, C:2 * C]  = np.asarray(p['bk']).reshape(-1)
        vecs[r + 0, 2 * C:]   = np.asarray(p['bv']).reshape(-1)
        vecs[r + 1, :C]   = np.asarray(p['bo']).reshape(-1)
        vecs[r + 2, :C]   = np.asarray(p['ln1w']).reshape(-1)
        vecs[r + 3, :C]   = np.asarray(p['ln1b']).reshape(-1)
        vecs[r + 4, :FFN] = np.asarray(p['b1']).reshape(-1)
        vecs[r + 5, :C]   = np.asarray(p['b2']).reshape(-1)
        vecs[r + 6, :C]   = np.asarray(p['ln2w']).reshape(-1)
        vecs[r + 7, :C]   = np.asarray(p['ln2b']).reshape(-1)

    return dict(wcol=jnp.asarray(wcol), vecs=jnp.asarray(vecs),
                wqkv=jnp.asarray(wqkv), wo=jnp.asarray(wo),
                w1=jnp.asarray(w1), w2=jnp.asarray(w2))


# ------------------------------ pure-JAX reference ---------------------------
def ref_forward(x, params):
    def ln(z, w, b):
        mu = z.mean(-1, keepdims=True)
        var = ((z - mu) ** 2).mean(-1, keepdims=True)
        return (z - mu) / jnp.sqrt(var + LN_EPS) * w + b

    xpad = jnp.pad(x, ((0, 0), (PAD, PAD), (0, 0)))
    conv = sum(jnp.einsum('btc,cd->btd', xpad[:, k:k + T, :], params['conv_w'][k])
               for k in range(K)) + params['conv_b']
    conv = jax.nn.gelu(conv, approximate=False)
    x = ln(x + conv, params['enc_lnw'], params['enc_lnb'])
    for p in params['layers']:
        q = (x @ p['wq'] + p['bq']) * (DH ** -0.5)
        k_ = x @ p['wk'] + p['bk']
        v_ = x @ p['wv'] + p['bv']
        qh = q.reshape(B, T, HEADS, DH)
        kh = k_.reshape(B, T, HEADS, DH)
        vh = v_.reshape(B, T, HEADS, DH)
        s = jnp.einsum('bthd,bshd->bhts', qh, kh)
        pr = jax.nn.softmax(s, axis=-1)
        ctx = jnp.einsum('bhts,bshd->bthd', pr, vh).reshape(B, T, C)
        x = ln(x + ctx @ p['wo'] + p['bo'], p['ln1w'], p['ln1b'])
        h = jax.nn.relu(x @ p['w1'] + p['b1'])
        x = ln(x + h @ p['w2'] + p['b2'], p['ln2w'], p['ln2b'])
    return x


if __name__ == "__main__":
    key = jax.random.PRNGKey(0)
    pkey, xkey = jax.random.split(key)
    params = init_params(pkey)
    packed = pack_params(params)
    x = jax.random.normal(xkey, (B, T, C), jnp.float32)

    out = jax.block_until_ready(transformer_encoder(x, packed))

    with jax.default_matmul_precision('highest'):
        ref = jax.block_until_ready(ref_forward(x, params))
    np.testing.assert_allclose(np.asarray(out), np.asarray(ref), atol=2e-3, rtol=2e-3)

    print("KERNEL_OK")
</pallas_src>

<mosaic_0001>
module attributes {stable_mosaic.version = 11 : i64} {
  func.func @fused_kernel(%arg0: i32, %arg1: memref<32x256xf32, #tpu.memory_space<vmem>>, %arg2: memref<256x32xf32, #tpu.memory_space<vmem>>, %arg3: memref<19x96xf32, #tpu.memory_space<vmem>>, %arg4: memref<2x32x96xf32, #tpu.memory_space<vmem>>, %arg5: memref<2x32x32xf32, #tpu.memory_space<vmem>>, %arg6: memref<2x32x64xf32, #tpu.memory_space<vmem>>, %arg7: memref<2x64x32xf32, #tpu.memory_space<vmem>>, %arg8: memref<32x32xf32, #tpu.memory_space<vmem>>) attributes {dimension_semantics = [#tpu.dimension_semantics<arbitrary>], iteration_bounds = array<i64: 1>, scalar_prefetch = 0 : i64, scratch_operands = 0 : i64, tpu.core_type = #tpu.core_type<tc>, window_params = [{pipeline_mode = #tpu.pipeline_mode<synchronous>, transform_indices = @transform_0, window_bounds = array<i64: 32, 256>}, {pipeline_mode = #tpu.pipeline_mode<synchronous>, transform_indices = @transform_1, window_bounds = array<i64: 256, 32>}, {pipeline_mode = #tpu.pipeline_mode<synchronous>, transform_indices = @transform_2, window_bounds = array<i64: 19, 96>}, {pipeline_mode = #tpu.pipeline_mode<synchronous>, transform_indices = @transform_3, window_bounds = array<i64: 2, 32, 96>}, {pipeline_mode = #tpu.pipeline_mode<synchronous>, transform_indices = @transform_4, window_bounds = array<i64: 2, 32, 32>}, {pipeline_mode = #tpu.pipeline_mode<synchronous>, transform_indices = @transform_5, window_bounds = array<i64: 2, 32, 64>}, {pipeline_mode = #tpu.pipeline_mode<synchronous>, transform_indices = @transform_6, window_bounds = array<i64: 2, 64, 32>}, {pipeline_mode = #tpu.pipeline_mode<synchronous>, transform_indices = @transform_7, window_bounds = array<i64: 32, 32>}]} {
    %c0 = arith.constant 0 : index
    %c0_0 = arith.constant 0 : index
    %0 = vector.load %arg3[%c0, %c0_0] : memref<19x96xf32, #tpu.memory_space<vmem>>, vector<19x96xf32>
    %c0_1 = arith.constant 0 : index
    %c0_2 = arith.constant 0 : index
    %1 = vector.load %arg1[%c0_1, %c0_2] : memref<32x256xf32, #tpu.memory_space<vmem>>, vector<32x256xf32>
    %2 = vector.extract_strided_slice %1 {offsets = [0, 128], sizes = [32, 32], strides = [1, 1]} : vector<32x256xf32> to vector<32x32xf32>
    %c0_3 = arith.constant 0 : index
    %c0_4 = arith.constant 0 : index
    %3 = vector.load %arg2[%c0_3, %c0_4] : memref<256x32xf32, #tpu.memory_space<vmem>>, vector<256x32xf32>
    %cst = arith.constant dense<0.000000e+00> : vector<32x32xf32>
    %4 = tpu.matmul %1, %3, %cst {dimension_numbers = #tpu.dot_dimension_numbers<[1], [0], [0], [1], [0, 0, 1, 1], [], []>} : vector<32x256xf32>, vector<256x32xf32>, vector<32x32xf32> -> vector<32x32xf32>
    %5 = vector.extract_strided_slice %0 {offsets = [0, 0], sizes = [1, 32], strides = [1, 1]} : vector<19x96xf32> to vector<1x32xf32>
    %6 = vector.broadcast %5 : vector<1x32xf32> to vector<32x32xf32>
    %7 = arith.addf %4, %6 : vector<32x32xf32>
    %cst_5 = arith.constant 5.000000e-01 : f32
    %8 = vector.broadcast %cst_5 : f32 to vector<32x32xf32>
    %9 = arith.mulf %8, %7 : vector<32x32xf32>
    %cst_6 = arith.constant 0.707106769 : f32
    %10 = vector.broadcast %cst_6 : f32 to vector<32x32xf32>
    %11 = arith.mulf %7, %10 : vector<32x32xf32>
    %12 = math.erf %11 : vector<32x32xf32>
    %cst_7 = arith.constant 1.000000e+00 : f32
    %13 = vector.broadcast %cst_7 : f32 to vector<32x32xf32>
    %14 = arith.addf %13, %12 : vector<32x32xf32>
    %15 = arith.mulf %9, %14 : vector<32x32xf32>
    %16 = arith.addf %2, %15 : vector<32x32xf32>
    %17 = vector.extract_strided_slice %0 {offsets = [1, 0], sizes = [1, 32], strides = [1, 1]} : vector<19x96xf32> to vector<1x32xf32>
    %18 = vector.extract_strided_slice %0 {offsets = [2, 0], sizes = [1, 32], strides = [1, 1]} : vector<19x96xf32> to vector<1x32xf32>
    %cst_8 = arith.constant dense<0.000000e+00> : vector<32xf32>
    %19 = vector.multi_reduction <add>, %16, %cst_8 [1] : vector<32x32xf32> to vector<32xf32>
    %20 = vector.shape_cast %19 : vector<32xf32> to vector<32x1xf32>
    %cst_9 = arith.constant 3.200000e+01 : f32
    %21 = vector.broadcast %cst_9 : f32 to vector<32x1xf32>
    %22 = arith.divf %20, %21 : vector<32x1xf32>
    %23 = vector.broadcast %22 : vector<32x1xf32> to vector<32x32xf32>
    %24 = arith.subf %16, %23 : vector<32x32xf32>
    %25 = arith.mulf %24, %24 : vector<32x32xf32>
    %cst_10 = arith.constant dense<0.000000e+00> : vector<32xf32>
    %26 = vector.multi_reduction <add>, %25, %cst_10 [1] : vector<32x32xf32> to vector<32xf32>
    %27 = vector.shape_cast %26 : vector<32xf32> to vector<32x1xf32>
    %cst_11 = arith.constant 3.200000e+01 : f32
    %28 = vector.broadcast %cst_11 : f32 to vector<32x1xf32>
    %29 = arith.divf %27, %28 : vector<32x1xf32>
    %30 = vector.broadcast %22 : vector<32x1xf32> to vector<32x32xf32>
    %31 = arith.subf %16, %30 : vector<32x32xf32>
    %cst_12 = arith.constant 9.99999974E-6 : f32
    %32 = vector.broadcast %cst_12 : f32 to vector<32x1xf32>
    %33 = arith.addf %29, %32 : vector<32x1xf32>
    %34 = math.rsqrt %33 : vector<32x1xf32>
    %35 = vector.broadcast %34 : vector<32x1xf32> to vector<32x32xf32>
    %36 = arith.mulf %31, %35 : vector<32x32xf32>
    %37 = vector.broadcast %17 : vector<1x32xf32> to vector<32x32xf32>
    %38 = arith.mulf %36, %37 : vector<32x32xf32>
    %39 = vector.broadcast %18 : vector<1x32xf32> to vector<32x32xf32>
    %40 = arith.addf %38, %39 : vector<32x32xf32>
    %41 = vector.extract_strided_slice %0 {offsets = [3, 0], sizes = [1, 96], strides = [1, 1]} : vector<19x96xf32> to vector<1x96xf32>
    %42 = vector.extract_strided_slice %0 {offsets = [4, 0], sizes = [1, 32], strides = [1, 1]} : vector<19x96xf32> to vector<1x32xf32>
    %43 = vector.extract_strided_slice %0 {offsets = [5, 0], sizes = [1, 32], strides = [1, 1]} : vector<19x96xf32> to vector<1x32xf32>
    %44 = vector.extract_strided_slice %0 {offsets = [6, 0], sizes = [1, 32], strides = [1, 1]} : vector<19x96xf32> to vector<1x32xf32>
    %45 = vector.extract_strided_slice %0 {offsets = [7, 0], sizes = [1, 64], strides = [1, 1]} : vector<19x96xf32> to vector<1x64xf32>
    %46 = vector.extract_strided_slice %0 {offsets = [8, 0], sizes = [1, 32], strides = [1, 1]} : vector<19x96xf32> to vector<1x32xf32>
    %47 = vector.extract_strided_slice %0 {offsets = [9, 0], sizes = [1, 32], strides = [1, 1]} : vector<19x96xf32> to vector<1x32xf32>
    %48 = vector.extract_strided_slice %0 {offsets = [10, 0], sizes = [1, 32], strides = [1, 1]} : vector<19x96xf32> to vector<1x32xf32>
    %c0_13 = arith.constant 0 : index
    %c0_14 = arith.constant 0 : index
    %c0_15 = arith.constant 0 : index
    %49 = vector.load %arg5[%c0_13, %c0_14, %c0_15] : memref<2x32x32xf32, #tpu.memory_space<vmem>>, vector<1x32x32xf32>
    %50 = vector.shape_cast %49 : vector<1x32x32xf32> to vector<32x32xf32>
    %c0_16 = arith.constant 0 : index
    %c0_17 = arith.constant 0 : index
    %c0_18 = arith.constant 0 : index
    %51 = vector.load %arg4[%c0_16, %c0_17, %c0_18] : memref<2x32x96xf32, #tpu.memory_space<vmem>>, vector<1x32x96xf32>
    %52 = vector.shape_cast %51 : vector<1x32x96xf32> to vector<32x96xf32>
    %cst_19 = arith.constant dense<0.000000e+00> : vector<32x96xf32>
    %53 = tpu.matmul %40, %52, %cst_19 {dimension_numbers = #tpu.dot_dimension_numbers<[1], [0], [0], [1], [0, 0, 1, 1], [], []>} : vector<32x32xf32>, vector<32x96xf32>, vector<32x96xf32> -> vector<32x96xf32>
    %54 = vector.broadcast %41 : vector<1x96xf32> to vector<32x96xf32>
    %55 = arith.addf %53, %54 : vector<32x96xf32>
    %56 = vector.extract_strided_slice %55 {offsets = [0, 0], sizes = [16, 96], strides = [1, 1]} : vector<32x96xf32> to vector<16x96xf32>
    %cst_20 = arith.constant 0.000000e+00 : f32
    %57 = vector.broadcast %cst_20 : f32 to vector<16x32xf32>
    %58 = vector.extract_strided_slice %56 {offsets = [0, 0], sizes = [16, 8], strides = [1, 1]} : vector<16x96xf32> to vector<16x8xf32>
    %59 = vector.extract_strided_slice %56 {offsets = [0, 32], sizes = [16, 8], strides = [1, 1]} : vector<16x96xf32> to vector<16x8xf32>
    %60 = vector.extract_strided_slice %56 {offsets = [0, 64], sizes = [16, 8], strides = [1, 1]} : vector<16x96xf32> to vector<16x8xf32>
    %cst_21 = arith.constant dense<0.000000e+00> : vector<16x16xf32>
    %61 = tpu.matmul %58, %59, %cst_21 {dimension_numbers = #tpu.dot_dimension_numbers<[1], [1], [0], [0], [0, 0, 1, 0], [], []>} : vector<16x8xf32>, vector<16x8xf32>, vector<16x16xf32> -> vector<16x16xf32>
    %cst_22 = arith.constant dense<0xFF800000> : vector<16xf32>
    %62 = vector.multi_reduction <maximumf>, %61, %cst_22 [1] : vector<16x16xf32> to vector<16xf32>
    %63 = vector.shape_cast %62 : vector<16xf32> to vector<16x1xf32>
    %64 = vector.broadcast %63 : vector<16x1xf32> to vector<16x16xf32>
    %65 = arith.subf %61, %64 : vector<16x16xf32>
    %66 = math.exp %65 : vector<16x16xf32>
    %cst_23 = arith.constant dense<0.000000e+00> : vector<16xf32>
    %67 = vector.multi_reduction <add>, %66, %cst_23 [1] : vector<16x16xf32> to vector<16xf32>
    %68 = vector.shape_cast %67 : vector<16xf32> to vector<16x1xf32>
    %69 = tpu.reciprocal %68 {approx = true} : vector<16x1xf32> -> vector<16x1xf32>
    %70 = vector.broadcast %69 : vector<16x1xf32> to vector<16x16xf32>
    %71 = arith.mulf %66, %70 : vector<16x16xf32>
    %cst_24 = arith.constant dense<0.000000e+00> : vector<16x8xf32>
    %72 = tpu.matmul %71, %60, %cst_24 {dimension_numbers = #tpu.dot_dimension_numbers<[1], [0], [0], [1], [0, 0, 1, 1], [], []>} : vector<16x16xf32>, vector<16x8xf32>, vector<16x8xf32> -> vector<16x8xf32>
    %73 = vector.extract_strided_slice %50 {offsets = [0, 0], sizes = [8, 32], strides = [1, 1]} : vector<32x32xf32> to vector<8x32xf32>
    %cst_25 = arith.constant dense<0.000000e+00> : vector<16x32xf32>
    %74 = tpu.matmul %72, %73, %cst_25 {dimension_numbers = #tpu.dot_dimension_numbers<[1], [0], [0], [1], [0, 0, 1, 1], [], []>} : vector<16x8xf32>, vector<8x32xf32>, vector<16x32xf32> -> vector<16x32xf32>
    %75 = arith.addf %57, %74 : vector<16x32xf32>
    %76 = vector.extract_strided_slice %56 {offsets = [0, 8], sizes = [16, 8], strides = [1, 1]} : vector<16x96xf32> to vector<16x8xf32>
    %77 = vector.extract_strided_slice %56 {offsets = [0, 40], sizes = [16, 8], strides = [1, 1]} : vector<16x96xf32> to vector<16x8xf32>
    %78 = vector.extract_strided_slice %56 {offsets = [0, 72], sizes = [16, 8], strides = [1, 1]} : vector<16x96xf32> to vector<16x8xf32>
    %cst_26 = arith.constant dense<0.000000e+00> : vector<16x16xf32>
    %79 = tpu.matmul %76, %77, %cst_26 {dimension_numbers = #tpu.dot_dimension_numbers<[1], [1], [0], [0], [0, 0, 1, 0], [], []>} : vector<16x8xf32>, vector<16x8xf32>, vector<16x16xf32> -> vector<16x16xf32>
    %cst_27 = arith.constant dense<0xFF800000> : vector<16xf32>
    %80 = vector.multi_reduction <maximumf>, %79, %cst_27 [1] : vector<16x16xf32> to vector<16xf32>
    %81 = vector.shape_cast %80 : vector<16xf32> to vector<16x1xf32>
    %82 = vector.broadcast %81 : vector<16x1xf32> to vector<16x16xf32>
    %83 = arith.subf %79, %82 : vector<16x16xf32>
    %84 = math.exp %83 : vector<16x16xf32>
    %cst_28 = arith.constant dense<0.000000e+00> : vector<16xf32>
    %85 = vector.multi_reduction <add>, %84, %cst_28 [1] : vector<16x16xf32> to vector<16xf32>
    %86 = vector.shape_cast %85 : vector<16xf32> to vector<16x1xf32>
    %87 = tpu.reciprocal %86 {approx = true} : vector<16x1xf32> -> vector<16x1xf32>
    %88 = vector.broadcast %87 : vector<16x1xf32> to vector<16x16xf32>
    %89 = arith.mulf %84, %88 : vector<16x16xf32>
    %cst_29 = arith.constant dense<0.000000e+00> : vector<16x8xf32>
    %90 = tpu.matmul %89, %78, %cst_29 {dimension_numbers = #tpu.dot_dimension_numbers<[1], [0], [0], [1], [0, 0, 1, 1], [], []>} : vector<16x16xf32>, vector<16x8xf32>, vector<16x8xf32> -> vector<16x8xf32>
    %91 = vector.extract_strided_slice %50 {offsets = [8, 0], sizes = [8, 32], strides = [1, 1]} : vector<32x32xf32> to vector<8x32xf32>
    %cst_30 = arith.constant dense<0.000000e+00> : vector<16x32xf32>
    %92 = tpu.matmul %90, %91, %cst_30 {dimension_numbers = #tpu.dot_dimension_numbers<[1], [0], [0], [1], [0, 0, 1, 1], [], []>} : vector<16x8xf32>, vector<8x32xf32>, vector<16x32xf32> -> vector<16x32xf32>
    %93 = arith.addf %75, %92 : vector<16x32xf32>
    %94 = vector.extract_strided_slice %56 {offsets = [0, 16], sizes = [16, 8], strides = [1, 1]} : vector<16x96xf32> to vector<16x8xf32>
    %95 = vector.extract_strided_slice %56 {offsets = [0, 48], sizes = [16, 8], strides = [1, 1]} : vector<16x96xf32> to vector<16x8xf32>
    %96 = vector.extract_strided_slice %56 {offsets = [0, 80], sizes = [16, 8], strides = [1, 1]} : vector<16x96xf32> to vector<16x8xf32>
    %cst_31 = arith.constant dense<0.000000e+00> : vector<16x16xf32>
    %97 = tpu.matmul %94, %95, %cst_31 {dimension_numbers = #tpu.dot_dimension_numbers<[1], [1], [0], [0], [0, 0, 1, 0], [], []>} : vector<16x8xf32>, vector<16x8xf32>, vector<16x16xf32> -> vector<16x16xf32>
    %cst_32 = arith.constant dense<0xFF800000> : vector<16xf32>
    %98 = vector.multi_reduction <maximumf>, %97, %cst_32 [1] : vector<16x16xf32> to vector<16xf32>
    %99 = vector.shape_cast %98 : vector<16xf32> to vector<16x1xf32>
    %100 = vector.broadcast %99 : vector<16x1xf32> to vector<16x16xf32>
    %101 = arith.subf %97, %100 : vector<16x16xf32>
    %102 = math.exp %101 : vector<16x16xf32>
    %cst_33 = arith.constant dense<0.000000e+00> : vector<16xf32>
    %103 = vector.multi_reduction <add>, %102, %cst_33 [1] : vector<16x16xf32> to vector<16xf32>
    %104 = vector.shape_cast %103 : vector<16xf32> to vector<16x1xf32>
    %105 = tpu.reciprocal %104 {approx = true} : vector<16x1xf32> -> vector<16x1xf32>
    %106 = vector.broadcast %105 : vector<16x1xf32> to vector<16x16xf32>
    %107 = arith.mulf %102, %106 : vector<16x16xf32>
    %cst_34 = arith.constant dense<0.000000e+00> : vector<16x8xf32>
    %108 = tpu.matmul %107, %96, %cst_34 {dimension_numbers = #tpu.dot_dimension_numbers<[1], [0], [0], [1], [0, 0, 1, 1], [], []>} : vector<16x16xf32>, vector<16x8xf32>, vector<16x8xf32> -> vector<16x8xf32>
    %109 = vector.extract_strided_slice %50 {offsets = [16, 0], sizes = [8, 32], strides = [1, 1]} : vector<32x32xf32> to vector<8x32xf32>
    %cst_35 = arith.constant dense<0.000000e+00> : vector<16x32xf32>
    %110 = tpu.matmul %108, %109, %cst_35 {dimension_numbers = #tpu.dot_dimension_numbers<[1], [0], [0], [1], [0, 0, 1, 1], [], []>} : vector<16x8xf32>, vector<8x32xf32>, vector<16x32xf32> -> vector<16x32xf32>
    %111 = arith.addf %93, %110 : vector<16x32xf32>
    %112 = vector.extract_strided_slice %56 {offsets = [0, 24], sizes = [16, 8], strides = [1, 1]} : vector<16x96xf32> to vector<16x8xf32>
    %113 = vector.extract_strided_slice %56 {offsets = [0, 56], sizes = [16, 8], strides = [1, 1]} : vector<16x96xf32> to vector<16x8xf32>
    %114 = vector.extract_strided_slice %56 {offsets = [0, 88], sizes = [16, 8], strides = [1, 1]} : vector<16x96xf32> to vector<16x8xf32>
    %cst_36 = arith.constant dense<0.000000e+00> : vector<16x16xf32>
    %115 = tpu.matmul %112, %113, %cst_36 {dimension_numbers = #tpu.dot_dimension_numbers<[1], [1], [0], [0], [0, 0, 1, 0], [], []>} : vector<16x8xf32>, vector<16x8xf32>, vector<16x16xf32> -> vector<16x16xf32>
    %cst_37 = arith.constant dense<0xFF800000> : vector<16xf32>
    %116 = vector.multi_reduction <maximumf>, %115, %cst_37 [1] : vector<16x16xf32> to vector<16xf32>
    %117 = vector.shape_cast %116 : vector<16xf32> to vector<16x1xf32>
    %118 = vector.broadcast %117 : vector<16x1xf32> to vector<16x16xf32>
    %119 = arith.subf %115, %118 : vector<16x16xf32>
    %120 = math.exp %119 : vector<16x16xf32>
    %cst_38 = arith.constant dense<0.000000e+00> : vector<16xf32>
    %121 = vector.multi_reduction <add>, %120, %cst_38 [1] : vector<16x16xf32> to vector<16xf32>
    %122 = vector.shape_cast %121 : vector<16xf32> to vector<16x1xf32>
    %123 = tpu.reciprocal %122 {approx = true} : vector<16x1xf32> -> vector<16x1xf32>
    %124 = vector.broadcast %123 : vector<16x1xf32> to vector<16x16xf32>
    %125 = arith.mulf %120, %124 : vector<16x16xf32>
    %cst_39 = arith.constant dense<0.000000e+00> : vector<16x8xf32>
    %126 = tpu.matmul %125, %114, %cst_39 {dimension_numbers = #tpu.dot_dimension_numbers<[1], [0], [0], [1], [0, 0, 1, 1], [], []>} : vector<16x16xf32>, vector<16x8xf32>, vector<16x8xf32> -> vector<16x8xf32>
    %127 = vector.extract_strided_slice %50 {offsets = [24, 0], sizes = [8, 32], strides = [1, 1]} : vector<32x32xf32> to vector<8x32xf32>
    %cst_40 = arith.constant dense<0.000000e+00> : vector<16x32xf32>
    %128 = tpu.matmul %126, %127, %cst_40 {dimension_numbers = #tpu.dot_dimension_numbers<[1], [0], [0], [1], [0, 0, 1, 1], [], []>} : vector<16x8xf32>, vector<8x32xf32>, vector<16x32xf32> -> vector<16x32xf32>
    %129 = arith.addf %111, %128 : vector<16x32xf32>
    %130 = vector.extract_strided_slice %55 {offsets = [16, 0], sizes = [16, 96], strides = [1, 1]} : vector<32x96xf32> to vector<16x96xf32>
    %cst_41 = arith.constant 0.000000e+00 : f32
    %131 = vector.broadcast %cst_41 : f32 to vector<16x32xf32>
    %132 = vector.extract_strided_slice %130 {offsets = [0, 0], sizes = [16, 8], strides = [1, 1]} : vector<16x96xf32> to vector<16x8xf32>
    %133 = vector.extract_strided_slice %130 {offsets = [0, 32], sizes = [16, 8], strides = [1, 1]} : vector<16x96xf32> to vector<16x8xf32>
    %134 = vector.extract_strided_slice %130 {offsets = [0, 64], sizes = [16, 8], strides = [1, 1]} : vector<16x96xf32> to vector<16x8xf32>
    %cst_42 = arith.constant dense<0.000000e+00> : vector<16x16xf32>
    %135 = tpu.matmul %132, %133, %cst_42 {dimension_numbers = #tpu.dot_dimension_numbers<[1], [1], [0], [0], [0, 0, 1, 0], [], []>} : vector<16x8xf32>, vector<16x8xf32>, vector<16x16xf32> -> vector<16x16xf32>
    %cst_43 = arith.constant dense<0xFF800000> : vector<16xf32>
    %136 = vector.multi_reduction <maximumf>, %135, %cst_43 [1] : vector<16x16xf32> to vector<16xf32>
    %137 = vector.shape_cast %136 : vector<16xf32> to vector<16x1xf32>
    %138 = vector.broadcast %137 : vector<16x1xf32> to vector<16x16xf32>
    %139 = arith.subf %135, %138 : vector<16x16xf32>
    %140 = math.exp %139 : vector<16x16xf32>
    %cst_44 = arith.constant dense<0.000000e+00> : vector<16xf32>
    %141 = vector.multi_reduction <add>, %140, %cst_44 [1] : vector<16x16xf32> to vector<16xf32>
    %142 = vector.shape_cast %141 : vector<16xf32> to vector<16x1xf32>
    %143 = tpu.reciprocal %142 {approx = true} : vector<16x1xf32> -> vector<16x1xf32>
    %144 = vector.broadcast %143 : vector<16x1xf32> to vector<16x16xf32>
    %145 = arith.mulf %140, %144 : vector<16x16xf32>
    %cst_45 = arith.constant dense<0.000000e+00> : vector<16x8xf32>
    %146 = tpu.matmul %145, %134, %cst_45 {dimension_numbers = #tpu.dot_dimension_numbers<[1], [0], [0], [1], [0, 0, 1, 1], [], []>} : vector<16x16xf32>, vector<16x8xf32>, vector<16x8xf32> -> vector<16x8xf32>
    %147 = vector.extract_strided_slice %50 {offsets = [0, 0], sizes = [8, 32], strides = [1, 1]} : vector<32x32xf32> to vector<8x32xf32>
    %cst_46 = arith.constant dense<0.000000e+00> : vector<16x32xf32>
    %148 = tpu.matmul %146, %147, %cst_46 {dimension_numbers = #tpu.dot_dimension_numbers<[1], [0], [0], [1], [0, 0, 1, 1], [], []>} : vector<16x8xf32>, vector<8x32xf32>, vector<16x32xf32> -> vector<16x32xf32>
    %149 = arith.addf %131, %148 : vector<16x32xf32>
    %150 = vector.extract_strided_slice %130 {offsets = [0, 8], sizes = [16, 8], strides = [1, 1]} : vector<16x96xf32> to vector<16x8xf32>
    %151 = vector.extract_strided_slice %130 {offsets = [0, 40], sizes = [16, 8], strides = [1, 1]} : vector<16x96xf32> to vector<16x8xf32>
    %152 = vector.extract_strided_slice %130 {offsets = [0, 72], sizes = [16, 8], strides = [1, 1]} : vector<16x96xf32> to vector<16x8xf32>
    %cst_47 = arith.constant dense<0.000000e+00> : vector<16x16xf32>
    %153 = tpu.matmul %150, %151, %cst_47 {dimension_numbers = #tpu.dot_dimension_numbers<[1], [1], [0], [0], [0, 0, 1, 0], [], []>} : vector<16x8xf32>, vector<16x8xf32>, vector<16x16xf32> -> vector<16x16xf32>
    %cst_48 = arith.constant dense<0xFF800000> : vector<16xf32>
    %154 = vector.multi_reduction <maximumf>, %153, %cst_48 [1] : vector<16x16xf32> to vector<16xf32>
    %155 = vector.shape_cast %154 : vector<16xf32> to vector<16x1xf32>
    %156 = vector.broadcast %155 : vector<16x1xf32> to vector<16x16xf32>
    %157 = arith.subf %153, %156 : vector<16x16xf32>
    %158 = math.exp %157 : vector<16x16xf32>
    %cst_49 = arith.constant dense<0.000000e+00> : vector<16xf32>
    %159 = vector.multi_reduction <add>, %158, %cst_49 [1] : vector<16x16xf32> to vector<16xf32>
    %160 = vector.shape_cast %159 : vector<16xf32> to vector<16x1xf32>
    %161 = tpu.reciprocal %160 {approx = true} : vector<16x1xf32> -> vector<16x1xf32>
    %162 = vector.broadcast %161 : vector<16x1xf32> to vector<16x16xf32>
    %163 = arith.mulf %158, %162 : vector<16x16xf32>
    %cst_50 = arith.constant dense<0.000000e+00> : vector<16x8xf32>
    %164 = tpu.matmul %163, %152, %cst_50 {dimension_numbers = #tpu.dot_dimension_numbers<[1], [0], [0], [1], [0, 0, 1, 1], [], []>} : vector<16x16xf32>, vector<16x8xf32>, vector<16x8xf32> -> vector<16x8xf32>
    %165 = vector.extract_strided_slice %50 {offsets = [8, 0], sizes = [8, 32], strides = [1, 1]} : vector<32x32xf32> to vector<8x32xf32>
    %cst_51 = arith.constant dense<0.000000e+00> : vector<16x32xf32>
    %166 = tpu.matmul %164, %165, %cst_51 {dimension_numbers = #tpu.dot_dimension_numbers<[1], [0], [0], [1], [0, 0, 1, 1], [], []>} : vector<16x8xf32>, vector<8x32xf32>, vector<16x32xf32> -> vector<16x32xf32>
    %167 = arith.addf %149, %166 : vector<16x32xf32>
    %168 = vector.extract_strided_slice %130 {offsets = [0, 16], sizes = [16, 8], strides = [1, 1]} : vector<16x96xf32> to vector<16x8xf32>
    %169 = vector.extract_strided_slice %130 {offsets = [0, 48], sizes = [16, 8], strides = [1, 1]} : vector<16x96xf32> to vector<16x8xf32>
    %170 = vector.extract_strided_slice %130 {offsets = [0, 80], sizes = [16, 8], strides = [1, 1]} : vector<16x96xf32> to vector<16x8xf32>
    %cst_52 = arith.constant dense<0.000000e+00> : vector<16x16xf32>
    %171 = tpu.matmul %168, %169, %cst_52 {dimension_numbers = #tpu.dot_dimension_numbers<[1], [1], [0], [0], [0, 0, 1, 0], [], []>} : vector<16x8xf32>, vector<16x8xf32>, vector<16x16xf32> -> vector<16x16xf32>
    %cst_53 = arith.constant dense<0xFF800000> : vector<16xf32>
    %172 = vector.multi_reduction <maximumf>, %171, %cst_53 [1] : vector<16x16xf32> to vector<16xf32>
    %173 = vector.shape_cast %172 : vector<16xf32> to vector<16x1xf32>
    %174 = vector.broadcast %173 : vector<16x1xf32> to vector<16x16xf32>
    %175 = arith.subf %171, %174 : vector<16x16xf32>
    %176 = math.exp %175 : vector<16x16xf32>
    %cst_54 = arith.constant dense<0.000000e+00> : vector<16xf32>
    %177 = vector.multi_reduction <add>, %176, %cst_54 [1] : vector<16x16xf32> to vector<16xf32>
    %178 = vector.shape_cast %177 : vector<16xf32> to vector<16x1xf32>
    %179 = tpu.reciprocal %178 {approx = true} : vector<16x1xf32> -> vector<16x1xf32>
    %180 = vector.broadcast %179 : vector<16x1xf32> to vector<16x16xf32>
    %181 = arith.mulf %176, %180 : vector<16x16xf32>
    %cst_55 = arith.constant dense<0.000000e+00> : vector<16x8xf32>
    %182 = tpu.matmul %181, %170, %cst_55 {dimension_numbers = #tpu.dot_dimension_numbers<[1], [0], [0], [1], [0, 0, 1, 1], [], []>} : vector<16x16xf32>, vector<16x8xf32>, vector<16x8xf32> -> vector<16x8xf32>
    %183 = vector.extract_strided_slice %50 {offsets = [16, 0], sizes = [8, 32], strides = [1, 1]} : vector<32x32xf32> to vector<8x32xf32>
    %cst_56 = arith.constant dense<0.000000e+00> : vector<16x32xf32>
    %184 = tpu.matmul %182, %183, %cst_56 {dimension_numbers = #tpu.dot_dimension_numbers<[1], [0], [0], [1], [0, 0, 1, 1], [], []>} : vector<16x8xf32>, vector<8x32xf32>, vector<16x32xf32> -> vector<16x32xf32>
    %185 = arith.addf %167, %184 : vector<16x32xf32>
    %186 = vector.extract_strided_slice %130 {offsets = [0, 24], sizes = [16, 8], strides = [1, 1]} : vector<16x96xf32> to vector<16x8xf32>
    %187 = vector.extract_strided_slice %130 {offsets = [0, 56], sizes = [16, 8], strides = [1, 1]} : vector<16x96xf32> to vector<16x8xf32>
    %188 = vector.extract_strided_slice %130 {offsets = [0, 88], sizes = [16, 8], strides = [1, 1]} : vector<16x96xf32> to vector<16x8xf32>
    %cst_57 = arith.constant dense<0.000000e+00> : vector<16x16xf32>
    %189 = tpu.matmul %186, %187, %cst_57 {dimension_numbers = #tpu.dot_dimension_numbers<[1], [1], [0], [0], [0, 0, 1, 0], [], []>} : vector<16x8xf32>, vector<16x8xf32>, vector<16x16xf32> -> vector<16x16xf32>
    %cst_58 = arith.constant dense<0xFF800000> : vector<16xf32>
    %190 = vector.multi_reduction <maximumf>, %189, %cst_58 [1] : vector<16x16xf32> to vector<16xf32>
    %191 = vector.shape_cast %190 : vector<16xf32> to vector<16x1xf32>
    %192 = vector.broadcast %191 : vector<16x1xf32> to vector<16x16xf32>
    %193 = arith.subf %189, %192 : vector<16x16xf32>
    %194 = math.exp %193 : vector<16x16xf32>
    %cst_59 = arith.constant dense<0.000000e+00> : vector<16xf32>
    %195 = vector.multi_reduction <add>, %194, %cst_59 [1] : vector<16x16xf32> to vector<16xf32>
    %196 = vector.shape_cast %195 : vector<16xf32> to vector<16x1xf32>
    %197 = tpu.reciprocal %196 {approx = true} : vector<16x1xf32> -> vector<16x1xf32>
    %198 = vector.broadcast %197 : vector<16x1xf32> to vector<16x16xf32>
    %199 = arith.mulf %194, %198 : vector<16x16xf32>
    %cst_60 = arith.constant dense<0.000000e+00> : vector<16x8xf32>
    %200 = tpu.matmul %199, %188, %cst_60 {dimension_numbers = #tpu.dot_dimension_numbers<[1], [0], [0], [1], [0, 0, 1, 1], [], []>} : vector<16x16xf32>, vector<16x8xf32>, vector<16x8xf32> -> vector<16x8xf32>
    %201 = vector.extract_strided_slice %50 {offsets = [24, 0], sizes = [8, 32], strides = [1, 1]} : vector<32x32xf32> to vector<8x32xf32>
    %cst_61 = arith.constant dense<0.000000e+00> : vector<16x32xf32>
    %202 = tpu.matmul %200, %201, %cst_61 {dimension_numbers = #tpu.dot_dimension_numbers<[1], [0], [0], [1], [0, 0, 1, 1], [], []>} : vector<16x8xf32>, vector<8x32xf32>, vector<16x32xf32> -> vector<16x32xf32>
    %203 = arith.addf %185, %202 : vector<16x32xf32>
    %204 = tpu.concatenate %129, %203 in 0 : vector<16x32xf32>, vector<16x32xf32> -> vector<32x32xf32>
    %205 = vector.broadcast %42 : vector<1x32xf32> to vector<32x32xf32>
    %206 = arith.addf %204, %205 : vector<32x32xf32>
    %207 = arith.addf %40, %206 : vector<32x32xf32>
    %cst_62 = arith.constant dense<0.000000e+00> : vector<32xf32>
    %208 = vector.multi_reduction <add>, %207, %cst_62 [1] : vector<32x32xf32> to vector<32xf32>
    %209 = vector.shape_cast %208 : vector<32xf32> to vector<32x1xf32>
    %cst_63 = arith.constant 3.200000e+01 : f32
    %210 = vector.broadcast %cst_63 : f32 to vector<32x1xf32>
    %211 = arith.divf %209, %210 : vector<32x1xf32>
    %212 = vector.broadcast %211 : vector<32x1xf32> to vector<32x32xf32>
    %213 = arith.subf %207, %212 : vector<32x32xf32>
    %214 = arith.mulf %213, %213 : vector<32x32xf32>
    %cst_64 = arith.constant dense<0.000000e+00> : vector<32xf32>
    %215 = vector.multi_reduction <add>, %214, %cst_64 [1] : vector<32x32xf32> to vector<32xf32>
    %216 = vector.shape_cast %215 : vector<32xf32> to vector<32x1xf32>
    %cst_65 = arith.constant 3.200000e+01 : f32
    %217 = vector.broadcast %cst_65 : f32 to vector<32x1xf32>
    %218 = arith.divf %216, %217 : vector<32x1xf32>
    %219 = vector.broadcast %211 : vector<32x1xf32> to vector<32x32xf32>
    %220 = arith.subf %207, %219 : vector<32x32xf32>
    %cst_66 = arith.constant 9.99999974E-6 : f32
    %221 = vector.broadcast %cst_66 : f32 to vector<32x1xf32>
    %222 = arith.addf %218, %221 : vector<32x1xf32>
    %223 = math.rsqrt %222 : vector<32x1xf32>
    %224 = vector.broadcast %223 : vector<32x1xf32> to vector<32x32xf32>
    %225 = arith.mulf %220, %224 : vector<32x32xf32>
    %226 = vector.broadcast %43 : vector<1x32xf32> to vector<32x32xf32>
    %227 = arith.mulf %225, %226 : vector<32x32xf32>
    %228 = vector.broadcast %44 : vector<1x32xf32> to vector<32x32xf32>
    %229 = arith.addf %227, %228 : vector<32x32xf32>
    %c0_67 = arith.constant 0 : index
    %c0_68 = arith.constant 0 : index
    %c0_69 = arith.constant 0 : index
    %230 = vector.load %arg6[%c0_67, %c0_68, %c0_69] : memref<2x32x64xf32, #tpu.memory_space<vmem>>, vector<1x32x64xf32>
    %231 = vector.shape_cast %230 : vector<1x32x64xf32> to vector<32x64xf32>
    %cst_70 = arith.constant dense<0.000000e+00> : vector<32x64xf32>
    %232 = tpu.matmul %229, %231, %cst_70 {dimension_numbers = #tpu.dot_dimension_numbers<[1], [0], [0], [1], [0, 0, 1, 1], [], []>} : vector<32x32xf32>, vector<32x64xf32>, vector<32x64xf32> -> vector<32x64xf32>
    %233 = vector.broadcast %45 : vector<1x64xf32> to vector<32x64xf32>
    %234 = arith.addf %232, %233 : vector<32x64xf32>
    %cst_71 = arith.constant 0.000000e+00 : f32
    %235 = vector.broadcast %cst_71 : f32 to vector<32x64xf32>
    %236 = arith.maximumf %234, %235 : vector<32x64xf32>
    %c0_72 = arith.constant 0 : index
    %c0_73 = arith.constant 0 : index
    %c0_74 = arith.constant 0 : index
    %237 = vector.load %arg7[%c0_72, %c0_73, %c0_74] : memref<2x64x32xf32, #tpu.memory_space<vmem>>, vector<1x64x32xf32>
    %238 = vector.shape_cast %237 : vector<1x64x32xf32> to vector<64x32xf32>
    %cst_75 = arith.constant dense<0.000000e+00> : vector<32x32xf32>
    %239 = tpu.matmul %236, %238, %cst_75 {dimension_numbers = #tpu.dot_dimension_numbers<[1], [0], [0], [1], [0, 0, 1, 1], [], []>} : vector<32x64xf32>, vector<64x32xf32>, vector<32x32xf32> -> vector<32x32xf32>
    %240 = vector.broadcast %46 : vector<1x32xf32> to vector<32x32xf32>
    %241 = arith.addf %239, %240 : vector<32x32xf32>
    %242 = arith.addf %229, %241 : vector<32x32xf32>
    %cst_76 = arith.constant dense<0.000000e+00> : vector<32xf32>
    %243 = vector.multi_reduction <add>, %242, %cst_76 [1] : vector<32x32xf32> to vector<32xf32>
    %244 = vector.shape_cast %243 : vector<32xf32> to vector<32x1xf32>
    %cst_77 = arith.constant 3.200000e+01 : f32
    %245 = vector.broadcast %cst_77 : f32 to vector<32x1xf32>
    %246 = arith.divf %244, %245 : vector<32x1xf32>
    %247 = vector.broadcast %246 : vector<32x1xf32> to vector<32x32xf32>
    %248 = arith.subf %242, %247 : vector<32x32xf32>
    %249 = arith.mulf %248, %248 : vector<32x32xf32>
    %cst_78 = arith.constant dense<0.000000e+00> : vector<32xf32>
    %250 = vector.multi_reduction <add>, %249, %cst_78 [1] : vector<32x32xf32> to vector<32xf32>
    %251 = vector.shape_cast %250 : vector<32xf32> to vector<32x1xf32>
    %cst_79 = arith.constant 3.200000e+01 : f32
    %252 = vector.broadcast %cst_79 : f32 to vector<32x1xf32>
    %253 = arith.divf %251, %252 : vector<32x1xf32>
    %254 = vector.broadcast %246 : vector<32x1xf32> to vector<32x32xf32>
    %255 = arith.subf %242, %254 : vector<32x32xf32>
    %cst_80 = arith.constant 9.99999974E-6 : f32
    %256 = vector.broadcast %cst_80 : f32 to vector<32x1xf32>
    %257 = arith.addf %253, %256 : vector<32x1xf32>
    %258 = math.rsqrt %257 : vector<32x1xf32>
    %259 = vector.broadcast %258 : vector<32x1xf32> to vector<32x32xf32>
    %260 = arith.mulf %255, %259 : vector<32x32xf32>
    %261 = vector.broadcast %47 : vector<1x32xf32> to vector<32x32xf32>
    %262 = arith.mulf %260, %261 : vector<32x32xf32>
    %263 = vector.broadcast %48 : vector<1x32xf32> to vector<32x32xf32>
    %264 = arith.addf %262, %263 : vector<32x32xf32>
    %265 = vector.extract_strided_slice %0 {offsets = [11, 0], sizes = [1, 96], strides = [1, 1]} : vector<19x96xf32> to vector<1x96xf32>
    %266 = vector.extract_strided_slice %0 {offsets = [12, 0], sizes = [1, 32], strides = [1, 1]} : vector<19x96xf32> to vector<1x32xf32>
    %267 = vector.extract_strided_slice %0 {offsets = [13, 0], sizes = [1, 32], strides = [1, 1]} : vector<19x96xf32> to vector<1x32xf32>
    %268 = vector.extract_strided_slice %0 {offsets = [14, 0], sizes = [1, 32], strides = [1, 1]} : vector<19x96xf32> to vector<1x32xf32>
    %269 = vector.extract_strided_slice %0 {offsets = [15, 0], sizes = [1, 64], strides = [1, 1]} : vector<19x96xf32> to vector<1x64xf32>
    %270 = vector.extract_strided_slice %0 {offsets = [16, 0], sizes = [1, 32], strides = [1, 1]} : vector<19x96xf32> to vector<1x32xf32>
    %271 = vector.extract_strided_slice %0 {offsets = [17, 0], sizes = [1, 32], strides = [1, 1]} : vector<19x96xf32> to vector<1x32xf32>
    %272 = vector.extract_strided_slice %0 {offsets = [18, 0], sizes = [1, 32], strides = [1, 1]} : vector<19x96xf32> to vector<1x32xf32>
    %c1 = arith.constant 1 : index
    %c0_81 = arith.constant 0 : index
    %c0_82 = arith.constant 0 : index
    %273 = vector.load %arg5[%c1, %c0_81, %c0_82] : memref<2x32x32xf32, #tpu.memory_space<vmem>>, vector<1x32x32xf32>
    %274 = vector.shape_cast %273 : vector<1x32x32xf32> to vector<32x32xf32>
    %c1_83 = arith.constant 1 : index
    %c0_84 = arith.constant 0 : index
    %c0_85 = arith.constant 0 : index
    %275 = vector.load %arg4[%c1_83, %c0_84, %c0_85] : memref<2x32x96xf32, #tpu.memory_space<vmem>>, vector<1x32x96xf32>
    %276 = vector.shape_cast %275 : vector<1x32x96xf32> to vector<32x96xf32>
    %cst_86 = arith.constant dense<0.000000e+00> : vector<32x96xf32>
    %277 = tpu.matmul %264, %276, %cst_86 {dimension_numbers = #tpu.dot_dimension_numbers<[1], [0], [0], [1], [0, 0, 1, 1], [], []>} : vector<32x32xf32>, vector<32x96xf32>, vector<32x96xf32> -> vector<32x96xf32>
    %278 = vector.broadcast %265 : vector<1x96xf32> to vector<32x96xf32>
    %279 = arith.addf %277, %278 : vector<32x96xf32>
    %280 = vector.extract_strided_slice %279 {offsets = [0, 0], sizes = [16, 96], strides = [1, 1]} : vector<32x96xf32> to vector<16x96xf32>
    %cst_87 = arith.constant 0.000000e+00 : f32
    %281 = vector.broadcast %cst_87 : f32 to vector<16x32xf32>
    %282 = vector.extract_strided_slice %280 {offsets = [0, 0], sizes = [16, 8], strides = [1, 1]} : vector<16x96xf32> to vector<16x8xf32>
    %283 = vector.extract_strided_slice %280 {offsets = [0, 32], sizes = [16, 8], strides = [1, 1]} : vector<16x96xf32> to vector<16x8xf32>
    %284 = vector.extract_strided_slice %280 {offsets = [0, 64], sizes = [16, 8], strides = [1, 1]} : vector<16x96xf32> to vector<16x8xf32>
    %cst_88 = arith.constant dense<0.000000e+00> : vector<16x16xf32>
    %285 = tpu.matmul %282, %283, %cst_88 {dimension_numbers = #tpu.dot_dimension_numbers<[1], [1], [0], [0], [0, 0, 1, 0], [], []>} : vector<16x8xf32>, vector<16x8xf32>, vector<16x16xf32> -> vector<16x16xf32>
    %cst_89 = arith.constant dense<0xFF800000> : vector<16xf32>
    %286 = vector.multi_reduction <maximumf>, %285, %cst_89 [1] : vector<16x16xf32> to vector<16xf32>
    %287 = vector.shape_cast %286 : vector<16xf32> to vector<16x1xf32>
    %288 = vector.broadcast %287 : vector<16x1xf32> to vector<16x16xf32>
    %289 = arith.subf %285, %288 : vector<16x16xf32>
    %290 = math.exp %289 : vector<16x16xf32>
    %cst_90 = arith.constant dense<0.000000e+00> : vector<16xf32>
    %291 = vector.multi_reduction <add>, %290, %cst_90 [1] : vector<16x16xf32> to vector<16xf32>
    %292 = vector.shape_cast %291 : vector<16xf32> to vector<16x1xf32>
    %293 = tpu.reciprocal %292 {approx = true} : vector<16x1xf32> -> vector<16x1xf32>
    %294 = vector.broadcast %293 : vector<16x1xf32> to vector<16x16xf32>
    %295 = arith.mulf %290, %294 : vector<16x16xf32>
    %cst_91 = arith.constant dense<0.000000e+00> : vector<16x8xf32>
    %296 = tpu.matmul %295, %284, %cst_91 {dimension_numbers = #tpu.dot_dimension_numbers<[1], [0], [0], [1], [0, 0, 1, 1], [], []>} : vector<16x16xf32>, vector<16x8xf32>, vector<16x8xf32> -> vector<16x8xf32>
    %297 = vector.extract_strided_slice %274 {offsets = [0, 0], sizes = [8, 32], strides = [1, 1]} : vector<32x32xf32> to vector<8x32xf32>
    %cst_92 = arith.constant dense<0.000000e+00> : vector<16x32xf32>
    %298 = tpu.matmul %296, %297, %cst_92 {dimension_numbers = #tpu.dot_dimension_numbers<[1], [0], [0], [1], [0, 0, 1, 1], [], []>} : vector<16x8xf32>, vector<8x32xf32>, vector<16x32xf32> -> vector<16x32xf32>
    %299 = arith.addf %281, %298 : vector<16x32xf32>
    %300 = vector.extract_strided_slice %280 {offsets = [0, 8], sizes = [16, 8], strides = [1, 1]} : vector<16x96xf32> to vector<16x8xf32>
    %301 = vector.extract_strided_slice %280 {offsets = [0, 40], sizes = [16, 8], strides = [1, 1]} : vector<16x96xf32> to vector<16x8xf32>
    %302 = vector.extract_strided_slice %280 {offsets = [0, 72], sizes = [16, 8], strides = [1, 1]} : vector<16x96xf32> to vector<16x8xf32>
    %cst_93 = arith.constant dense<0.000000e+00> : vector<16x16xf32>
    %303 = tpu.matmul %300, %301, %cst_93 {dimension_numbers = #tpu.dot_dimension_numbers<[1], [1], [0], [0], [0, 0, 1, 0], [], []>} : vector<16x8xf32>, vector<16x8xf32>, vector<16x16xf32> -> vector<16x16xf32>
    %cst_94 = arith.constant dense<0xFF800000> : vector<16xf32>
    %304 = vector.multi_reduction <maximumf>, %303, %cst_94 [1] : vector<16x16xf32> to vector<16xf32>
    %305 = vector.shape_cast %304 : vector<16xf32> to vector<16x1xf32>
    %306 = vector.broadcast %305 : vector<16x1xf32> to vector<16x16xf32>
    %307 = arith.subf %303, %306 : vector<16x16xf32>
    %308 = math.exp %307 : vector<16x16xf32>
    %cst_95 = arith.constant dense<0.000000e+00> : vector<16xf32>
    %309 = vector.multi_reduction <add>, %308, %cst_95 [1] : vector<16x16xf32> to vector<16xf32>
    %310 = vector.shape_cast %309 : vector<16xf32> to vector<16x1xf32>
    %311 = tpu.reciprocal %310 {approx = true} : vector<16x1xf32> -> vector<16x1xf32>
    %312 = vector.broadcast %311 : vector<16x1xf32> to vector<16x16xf32>
    %313 = arith.mulf %308, %312 : vector<16x16xf32>
    %cst_96 = arith.constant dense<0.000000e+00> : vector<16x8xf32>
    %314 = tpu.matmul %313, %302, %cst_96 {dimension_numbers = #tpu.dot_dimension_numbers<[1], [0], [0], [1], [0, 0, 1, 1], [], []>} : vector<16x16xf32>, vector<16x8xf32>, vector<16x8xf32> -> vector<16x8xf32>
    %315 = vector.extract_strided_slice %274 {offsets = [8, 0], sizes = [8, 32], strides = [1, 1]} : vector<32x32xf32> to vector<8x32xf32>
    %cst_97 = arith.constant dense<0.000000e+00> : vector<16x32xf32>
    %316 = tpu.matmul %314, %315, %cst_97 {dimension_numbers = #tpu.dot_dimension_numbers<[1], [0], [0], [1], [0, 0, 1, 1], [], []>} : vector<16x8xf32>, vector<8x32xf32>, vector<16x32xf32> -> vector<16x32xf32>
    %317 = arith.addf %299, %316 : vector<16x32xf32>
    %318 = vector.extract_strided_slice %280 {offsets = [0, 16], sizes = [16, 8], strides = [1, 1]} : vector<16x96xf32> to vector<16x8xf32>
    %319 = vector.extract_strided_slice %280 {offsets = [0, 48], sizes = [16, 8], strides = [1, 1]} : vector<16x96xf32> to vector<16x8xf32>
    %320 = vector.extract_strided_slice %280 {offsets = [0, 80], sizes = [16, 8], strides = [1, 1]} : vector<16x96xf32> to vector<16x8xf32>
    %cst_98 = arith.constant dense<0.000000e+00> : vector<16x16xf32>
    %321 = tpu.matmul %318, %319, %cst_98 {dimension_numbers = #tpu.dot_dimension_numbers<[1], [1], [0], [0], [0, 0, 1, 0], [], []>} : vector<16x8xf32>, vector<16x8xf32>, vector<16x16xf32> -> vector<16x16xf32>
    %cst_99 = arith.constant dense<0xFF800000> : vector<16xf32>
    %322 = vector.multi_reduction <maximumf>, %321, %cst_99 [1] : vector<16x16xf32> to vector<16xf32>
    %323 = vector.shape_cast %322 : vector<16xf32> to vector<16x1xf32>
    %324 = vector.broadcast %323 : vector<16x1xf32> to vector<16x16xf32>
    %325 = arith.subf %321, %324 : vector<16x16xf32>
    %326 = math.exp %325 : vector<16x16xf32>
    %cst_100 = arith.constant dense<0.000000e+00> : vector<16xf32>
    %327 = vector.multi_reduction <add>, %326, %cst_100 [1] : vector<16x16xf32> to vector<16xf32>
    %328 = vector.shape_cast %327 : vector<16xf32> to vector<16x1xf32>
    %329 = tpu.reciprocal %328 {approx = true} : vector<16x1xf32> -> vector<16x1xf32>
    %330 = vector.broadcast %329 : vector<16x1xf32> to vector<16x16xf32>
    %331 = arith.mulf %326, %330 : vector<16x16xf32>
    %cst_101 = arith.constant dense<0.000000e+00> : vector<16x8xf32>
    %332 = tpu.matmul %331, %320, %cst_101 {dimension_numbers = #tpu.dot_dimension_numbers<[1], [0], [0], [1], [0, 0, 1, 1], [], []>} : vector<16x16xf32>, vector<16x8xf32>, vector<16x8xf32> -> vector<16x8xf32>
    %333 = vector.extract_strided_slice %274 {offsets = [16, 0], sizes = [8, 32], strides = [1, 1]} : vector<32x32xf32> to vector<8x32xf32>
    %cst_102 = arith.constant dense<0.000000e+00> : vector<16x32xf32>
    %334 = tpu.matmul %332, %333, %cst_102 {dimension_numbers = #tpu.dot_dimension_numbers<[1], [0], [0], [1], [0, 0, 1, 1], [], []>} : vector<16x8xf32>, vector<8x32xf32>, vector<16x32xf32> -> vector<16x32xf32>
    %335 = arith.addf %317, %334 : vector<16x32xf32>
    %336 = vector.extract_strided_slice %280 {offsets = [0, 24], sizes = [16, 8], strides = [1, 1]} : vector<16x96xf32> to vector<16x8xf32>
    %337 = vector.extract_strided_slice %280 {offsets = [0, 56], sizes = [16, 8], strides = [1, 1]} : vector<16x96xf32> to vector<16x8xf32>
    %338 = vector.extract_strided_slice %280 {offsets = [0, 88], sizes = [16, 8], strides = [1, 1]} : vector<16x96xf32> to vector<16x8xf32>
    %cst_103 = arith.constant dense<0.000000e+00> : vector<16x16xf32>
    %339 = tpu.matmul %336, %337, %cst_103 {dimension_numbers = #tpu.dot_dimension_numbers<[1], [1], [0], [0], [0, 0, 1, 0], [], []>} : vector<16x8xf32>, vector<16x8xf32>, vector<16x16xf32> -> vector<16x16xf32>
    %cst_104 = arith.constant dense<0xFF800000> : vector<16xf32>
    %340 = vector.multi_reduction <maximumf>, %339, %cst_104 [1] : vector<16x16xf32> to vector<16xf32>
    %341 = vector.shape_cast %340 : vector<16xf32> to vector<16x1xf32>
    %342 = vector.broadcast %341 : vector<16x1xf32> to vector<16x16xf32>
    %343 = arith.subf %339, %342 : vector<16x16xf32>
    %344 = math.exp %343 : vector<16x16xf32>
    %cst_105 = arith.constant dense<0.000000e+00> : vector<16xf32>
    %345 = vector.multi_reduction <add>, %344, %cst_105 [1] : vector<16x16xf32> to vector<16xf32>
    %346 = vector.shape_cast %345 : vector<16xf32> to vector<16x1xf32>
    %347 = tpu.reciprocal %346 {approx = true} : vector<16x1xf32> -> vector<16x1xf32>
    %348 = vector.broadcast %347 : vector<16x1xf32> to vector<16x16xf32>
    %349 = arith.mulf %344, %348 : vector<16x16xf32>
    %cst_106 = arith.constant dense<0.000000e+00> : vector<16x8xf32>
    %350 = tpu.matmul %349, %338, %cst_106 {dimension_numbers = #tpu.dot_dimension_numbers<[1], [0], [0], [1], [0, 0, 1, 1], [], []>} : vector<16x16xf32>, vector<16x8xf32>, vector<16x8xf32> -> vector<16x8xf32>
    %351 = vector.extract_strided_slice %274 {offsets = [24, 0], sizes = [8, 32], strides = [1, 1]} : vector<32x32xf32> to vector<8x32xf32>
    %cst_107 = arith.constant dense<0.000000e+00> : vector<16x32xf32>
    %352 = tpu.matmul %350, %351, %cst_107 {dimension_numbers = #tpu.dot_dimension_numbers<[1], [0], [0], [1], [0, 0, 1, 1], [], []>} : vector<16x8xf32>, vector<8x32xf32>, vector<16x32xf32> -> vector<16x32xf32>
    %353 = arith.addf %335, %352 : vector<16x32xf32>
    %354 = vector.extract_strided_slice %279 {offsets = [16, 0], sizes = [16, 96], strides = [1, 1]} : vector<32x96xf32> to vector<16x96xf32>
    %cst_108 = arith.constant 0.000000e+00 : f32
    %355 = vector.broadcast %cst_108 : f32 to vector<16x32xf32>
    %356 = vector.extract_strided_slice %354 {offsets = [0, 0], sizes = [16, 8], strides = [1, 1]} : vector<16x96xf32> to vector<16x8xf32>
    %357 = vector.extract_strided_slice %354 {offsets = [0, 32], sizes = [16, 8], strides = [1, 1]} : vector<16x96xf32> to vector<16x8xf32>
    %358 = vector.extract_strided_slice %354 {offsets = [0, 64], sizes = [16, 8], strides = [1, 1]} : vector<16x96xf32> to vector<16x8xf32>
    %cst_109 = arith.constant dense<0.000000e+00> : vector<16x16xf32>
    %359 = tpu.matmul %356, %357, %cst_109 {dimension_numbers = #tpu.dot_dimension_numbers<[1], [1], [0], [0], [0, 0, 1, 0], [], []>} : vector<16x8xf32>, vector<16x8xf32>, vector<16x16xf32> -> vector<16x16xf32>
    %cst_110 = arith.constant dense<0xFF800000> : vector<16xf32>
    %360 = vector.multi_reduction <maximumf>, %359, %cst_110 [1] : vector<16x16xf32> to vector<16xf32>
    %361 = vector.shape_cast %360 : vector<16xf32> to vector<16x1xf32>
    %362 = vector.broadcast %361 : vector<16x1xf32> to vector<16x16xf32>
    %363 = arith.subf %359, %362 : vector<16x16xf32>
    %364 = math.exp %363 : vector<16x16xf32>
    %cst_111 = arith.constant dense<0.000000e+00> : vector<16xf32>
    %365 = vector.multi_reduction <add>, %364, %cst_111 [1] : vector<16x16xf32> to vector<16xf32>
    %366 = vector.shape_cast %365 : vector<16xf32> to vector<16x1xf32>
    %367 = tpu.reciprocal %366 {approx = true} : vector<16x1xf32> -> vector<16x1xf32>
    %368 = vector.broadcast %367 : vector<16x1xf32> to vector<16x16xf32>
    %369 = arith.mulf %364, %368 : vector<16x16xf32>
    %cst_112 = arith.constant dense<0.000000e+00> : vector<16x8xf32>
    %370 = tpu.matmul %369, %358, %cst_112 {dimension_numbers = #tpu.dot_dimension_numbers<[1], [0], [0], [1], [0, 0, 1, 1], [], []>} : vector<16x16xf32>, vector<16x8xf32>, vector<16x8xf32> -> vector<16x8xf32>
    %371 = vector.extract_strided_slice %274 {offsets = [0, 0], sizes = [8, 32], strides = [1, 1]} : vector<32x32xf32> to vector<8x32xf32>
    %cst_113 = arith.constant dense<0.000000e+00> : vector<16x32xf32>
    %372 = tpu.matmul %370, %371, %cst_113 {dimension_numbers = #tpu.dot_dimension_numbers<[1], [0], [0], [1], [0, 0, 1, 1], [], []>} : vector<16x8xf32>, vector<8x32xf32>, vector<16x32xf32> -> vector<16x32xf32>
    %373 = arith.addf %355, %372 : vector<16x32xf32>
    %374 = vector.extract_strided_slice %354 {offsets = [0, 8], sizes = [16, 8], strides = [1, 1]} : vector<16x96xf32> to vector<16x8xf32>
    %375 = vector.extract_strided_slice %354 {offsets = [0, 40], sizes = [16, 8], strides = [1, 1]} : vector<16x96xf32> to vector<16x8xf32>
    %376 = vector.extract_strided_slice %354 {offsets = [0, 72], sizes = [16, 8], strides = [1, 1]} : vector<16x96xf32> to vector<16x8xf32>
    %cst_114 = arith.constant dense<0.000000e+00> : vector<16x16xf32>
    %377 = tpu.matmul %374, %375, %cst_114 {dimension_numbers = #tpu.dot_dimension_numbers<[1], [1], [0], [0], [0, 0, 1, 0], [], []>} : vector<16x8xf32>, vector<16x8xf32>, vector<16x16xf32> -> vector<16x16xf32>
    %cst_115 = arith.constant dense<0xFF800000> : vector<16xf32>
    %378 = vector.multi_reduction <maximumf>, %377, %cst_115 [1] : vector<16x16xf32> to vector<16xf32>
    %379 = vector.shape_cast %378 : vector<16xf32> to vector<16x1xf32>
    %380 = vector.broadcast %379 : vector<16x1xf32> to vector<16x16xf32>
    %381 = arith.subf %377, %380 : vector<16x16xf32>
    %382 = math.exp %381 : vector<16x16xf32>
    %cst_116 = arith.constant dense<0.000000e+00> : vector<16xf32>
    %383 = vector.multi_reduction <add>, %382, %cst_116 [1] : vector<16x16xf32> to vector<16xf32>
    %384 = vector.shape_cast %383 : vector<16xf32> to vector<16x1xf32>
    %385 = tpu.reciprocal %384 {approx = true} : vector<16x1xf32> -> vector<16x1xf32>
    %386 = vector.broadcast %385 : vector<16x1xf32> to vector<16x16xf32>
    %387 = arith.mulf %382, %386 : vector<16x16xf32>
    %cst_117 = arith.constant dense<0.000000e+00> : vector<16x8xf32>
    %388 = tpu.matmul %387, %376, %cst_117 {dimension_numbers = #tpu.dot_dimension_numbers<[1], [0], [0], [1], [0, 0, 1, 1], [], []>} : vector<16x16xf32>, vector<16x8xf32>, vector<16x8xf32> -> vector<16x8xf32>
    %389 = vector.extract_strided_slice %274 {offsets = [8, 0], sizes = [8, 32], strides = [1, 1]} : vector<32x32xf32> to vector<8x32xf32>
    %cst_118 = arith.constant dense<0.000000e+00> : vector<16x32xf32>
    %390 = tpu.matmul %388, %389, %cst_118 {dimension_numbers = #tpu.dot_dimension_numbers<[1], [0], [0], [1], [0, 0, 1, 1], [], []>} : vector<16x8xf32>, vector<8x32xf32>, vector<16x32xf32> -> vector<16x32xf32>
    %391 = arith.addf %373, %390 : vector<16x32xf32>
    %392 = vector.extract_strided_slice %354 {offsets = [0, 16], sizes = [16, 8], strides = [1, 1]} : vector<16x96xf32> to vector<16x8xf32>
    %393 = vector.extract_strided_slice %354 {offsets = [0, 48], sizes = [16, 8], strides = [1, 1]} : vector<16x96xf32> to vector<16x8xf32>
    %394 = vector.extract_strided_slice %354 {offsets = [0, 80], sizes = [16, 8], strides = [1, 1]} : vector<16x96xf32> to vector<16x8xf32>
    %cst_119 = arith.constant dense<0.000000e+00> : vector<16x16xf32>
    %395 = tpu.matmul %392, %393, %cst_119 {dimension_numbers = #tpu.dot_dimension_numbers<[1], [1], [0], [0], [0, 0, 1, 0], [], []>} : vector<16x8xf32>, vector<16x8xf32>, vector<16x16xf32> -> vector<16x16xf32>
    %cst_120 = arith.constant dense<0xFF800000> : vector<16xf32>
    %396 = vector.multi_reduction <maximumf>, %395, %cst_120 [1] : vector<16x16xf32> to vector<16xf32>
    %397 = vector.shape_cast %396 : vector<16xf32> to vector<16x1xf32>
    %398 = vector.broadcast %397 : vector<16x1xf32> to vector<16x16xf32>
    %399 = arith.subf %395, %398 : vector<16x16xf32>
    %400 = math.exp %399 : vector<16x16xf32>
    %cst_121 = arith.constant dense<0.000000e+00> : vector<16xf32>
    %401 = vector.multi_reduction <add>, %400, %cst_121 [1] : vector<16x16xf32> to vector<16xf32>
    %402 = vector.shape_cast %401 : vector<16xf32> to vector<16x1xf32>
    %403 = tpu.reciprocal %402 {approx = true} : vector<16x1xf32> -> vector<16x1xf32>
    %404 = vector.broadcast %403 : vector<16x1xf32> to vector<16x16xf32>
    %405 = arith.mulf %400, %404 : vector<16x16xf32>
    %cst_122 = arith.constant dense<0.000000e+00> : vector<16x8xf32>
    %406 = tpu.matmul %405, %394, %cst_122 {dimension_numbers = #tpu.dot_dimension_numbers<[1], [0], [0], [1], [0, 0, 1, 1], [], []>} : vector<16x16xf32>, vector<16x8xf32>, vector<16x8xf32> -> vector<16x8xf32>
    %407 = vector.extract_strided_slice %274 {offsets = [16, 0], sizes = [8, 32], strides = [1, 1]} : vector<32x32xf32> to vector<8x32xf32>
    %cst_123 = arith.constant dense<0.000000e+00> : vector<16x32xf32>
    %408 = tpu.matmul %406, %407, %cst_123 {dimension_numbers = #tpu.dot_dimension_numbers<[1], [0], [0], [1], [0, 0, 1, 1], [], []>} : vector<16x8xf32>, vector<8x32xf32>, vector<16x32xf32> -> vector<16x32xf32>
    %409 = arith.addf %391, %408 : vector<16x32xf32>
    %410 = vector.extract_strided_slice %354 {offsets = [0, 24], sizes = [16, 8], strides = [1, 1]} : vector<16x96xf32> to vector<16x8xf32>
    %411 = vector.extract_strided_slice %354 {offsets = [0, 56], sizes = [16, 8], strides = [1, 1]} : vector<16x96xf32> to vector<16x8xf32>
    %412 = vector.extract_strided_slice %354 {offsets = [0, 88], sizes = [16, 8], strides = [1, 1]} : vector<16x96xf32> to vector<16x8xf32>
    %cst_124 = arith.constant dense<0.000000e+00> : vector<16x16xf32>
    %413 = tpu.matmul %410, %411, %cst_124 {dimension_numbers = #tpu.dot_dimension_numbers<[1], [1], [0], [0], [0, 0, 1, 0], [], []>} : vector<16x8xf32>, vector<16x8xf32>, vector<16x16xf32> -> vector<16x16xf32>
    %cst_125 = arith.constant dense<0xFF800000> : vector<16xf32>
    %414 = vector.multi_reduction <maximumf>, %413, %cst_125 [1] : vector<16x16xf32> to vector<16xf32>
    %415 = vector.shape_cast %414 : vector<16xf32> to vector<16x1xf32>
    %416 = vector.broadcast %415 : vector<16x1xf32> to vector<16x16xf32>
    %417 = arith.subf %413, %416 : vector<16x16xf32>
    %418 = math.exp %417 : vector<16x16xf32>
    %cst_126 = arith.constant dense<0.000000e+00> : vector<16xf32>
    %419 = vector.multi_reduction <add>, %418, %cst_126 [1] : vector<16x16xf32> to vector<16xf32>
    %420 = vector.shape_cast %419 : vector<16xf32> to vector<16x1xf32>
    %421 = tpu.reciprocal %420 {approx = true} : vector<16x1xf32> -> vector<16x1xf32>
    %422 = vector.broadcast %421 : vector<16x1xf32> to vector<16x16xf32>
    %423 = arith.mulf %418, %422 : vector<16x16xf32>
    %cst_127 = arith.constant dense<0.000000e+00> : vector<16x8xf32>
    %424 = tpu.matmul %423, %412, %cst_127 {dimension_numbers = #tpu.dot_dimension_numbers<[1], [0], [0], [1], [0, 0, 1, 1], [], []>} : vector<16x16xf32>, vector<16x8xf32>, vector<16x8xf32> -> vector<16x8xf32>
    %425 = vector.extract_strided_slice %274 {offsets = [24, 0], sizes = [8, 32], strides = [1, 1]} : vector<32x32xf32> to vector<8x32xf32>
    %cst_128 = arith.constant dense<0.000000e+00> : vector<16x32xf32>
    %426 = tpu.matmul %424, %425, %cst_128 {dimension_numbers = #tpu.dot_dimension_numbers<[1], [0], [0], [1], [0, 0, 1, 1], [], []>} : vector<16x8xf32>, vector<8x32xf32>, vector<16x32xf32> -> vector<16x32xf32>
    %427 = arith.addf %409, %426 : vector<16x32xf32>
    %428 = tpu.concatenate %353, %427 in 0 : vector<16x32xf32>, vector<16x32xf32> -> vector<32x32xf32>
    %429 = vector.broadcast %266 : vector<1x32xf32> to vector<32x32xf32>
    %430 = arith.addf %428, %429 : vector<32x32xf32>
    %431 = arith.addf %264, %430 : vector<32x32xf32>
    %cst_129 = arith.constant dense<0.000000e+00> : vector<32xf32>
    %432 = vector.multi_reduction <add>, %431, %cst_129 [1] : vector<32x32xf32> to vector<32xf32>
    %433 = vector.shape_cast %432 : vector<32xf32> to vector<32x1xf32>
    %cst_130 = arith.constant 3.200000e+01 : f32
    %434 = vector.broadcast %cst_130 : f32 to vector<32x1xf32>
    %435 = arith.divf %433, %434 : vector<32x1xf32>
    %436 = vector.broadcast %435 : vector<32x1xf32> to vector<32x32xf32>
    %437 = arith.subf %431, %436 : vector<32x32xf32>
    %438 = arith.mulf %437, %437 : vector<32x32xf32>
    %cst_131 = arith.constant dense<0.000000e+00> : vector<32xf32>
    %439 = vector.multi_reduction <add>, %438, %cst_131 [1] : vector<32x32xf32> to vector<32xf32>
    %440 = vector.shape_cast %439 : vector<32xf32> to vector<32x1xf32>
    %cst_132 = arith.constant 3.200000e+01 : f32
    %441 = vector.broadcast %cst_132 : f32 to vector<32x1xf32>
    %442 = arith.divf %440, %441 : vector<32x1xf32>
    %443 = vector.broadcast %435 : vector<32x1xf32> to vector<32x32xf32>
    %444 = arith.subf %431, %443 : vector<32x32xf32>
    %cst_133 = arith.constant 9.99999974E-6 : f32
    %445 = vector.broadcast %cst_133 : f32 to vector<32x1xf32>
    %446 = arith.addf %442, %445 : vector<32x1xf32>
    %447 = math.rsqrt %446 : vector<32x1xf32>
    %448 = vector.broadcast %447 : vector<32x1xf32> to vector<32x32xf32>
    %449 = arith.mulf %444, %448 : vector<32x32xf32>
    %450 = vector.broadcast %267 : vector<1x32xf32> to vector<32x32xf32>
    %451 = arith.mulf %449, %450 : vector<32x32xf32>
    %452 = vector.broadcast %268 : vector<1x32xf32> to vector<32x32xf32>
    %453 = arith.addf %451, %452 : vector<32x32xf32>
    %c1_134 = arith.constant 1 : index
    %c0_135 = arith.constant 0 : index
    %c0_136 = arith.constant 0 : index
    %454 = vector.load %arg6[%c1_134, %c0_135, %c0_136] : memref<2x32x64xf32, #tpu.memory_space<vmem>>, vector<1x32x64xf32>
    %455 = vector.shape_cast %454 : vector<1x32x64xf32> to vector<32x64xf32>
    %cst_137 = arith.constant dense<0.000000e+00> : vector<32x64xf32>
    %456 = tpu.matmul %453, %455, %cst_137 {dimension_numbers = #tpu.dot_dimension_numbers<[1], [0], [0], [1], [0, 0, 1, 1], [], []>} : vector<32x32xf32>, vector<32x64xf32>, vector<32x64xf32> -> vector<32x64xf32>
    %457 = vector.broadcast %269 : vector<1x64xf32> to vector<32x64xf32>
    %458 = arith.addf %456, %457 : vector<32x64xf32>
    %cst_138 = arith.constant 0.000000e+00 : f32
    %459 = vector.broadcast %cst_138 : f32 to vector<32x64xf32>
    %460 = arith.maximumf %458, %459 : vector<32x64xf32>
    %c1_139 = arith.constant 1 : index
    %c0_140 = arith.constant 0 : index
    %c0_141 = arith.constant 0 : index
    %461 = vector.load %arg7[%c1_139, %c0_140, %c0_141] : memref<2x64x32xf32, #tpu.memory_space<vmem>>, vector<1x64x32xf32>
    %462 = vector.shape_cast %461 : vector<1x64x32xf32> to vector<64x32xf32>
    %cst_142 = arith.constant dense<0.000000e+00> : vector<32x32xf32>
    %463 = tpu.matmul %460, %462, %cst_142 {dimension_numbers = #tpu.dot_dimension_numbers<[1], [0], [0], [1], [0, 0, 1, 1], [], []>} : vector<32x64xf32>, vector<64x32xf32>, vector<32x32xf32> -> vector<32x32xf32>
    %464 = vector.broadcast %270 : vector<1x32xf32> to vector<32x32xf32>
    %465 = arith.addf %463, %464 : vector<32x32xf32>
    %466 = arith.addf %453, %465 : vector<32x32xf32>
    %cst_143 = arith.constant dense<0.000000e+00> : vector<32xf32>
    %467 = vector.multi_reduction <add>, %466, %cst_143 [1] : vector<32x32xf32> to vector<32xf32>
    %468 = vector.shape_cast %467 : vector<32xf32> to vector<32x1xf32>
    %cst_144 = arith.constant 3.200000e+01 : f32
    %469 = vector.broadcast %cst_144 : f32 to vector<32x1xf32>
    %470 = arith.divf %468, %469 : vector<32x1xf32>
    %471 = vector.broadcast %470 : vector<32x1xf32> to vector<32x32xf32>
    %472 = arith.subf %466, %471 : vector<32x32xf32>
    %473 = arith.mulf %472, %472 : vector<32x32xf32>
    %cst_145 = arith.constant dense<0.000000e+00> : vector<32xf32>
    %474 = vector.multi_reduction <add>, %473, %cst_145 [1] : vector<32x32xf32> to vector<32xf32>
    %475 = vector.shape_cast %474 : vector<32xf32> to vector<32x1xf32>
    %cst_146 = arith.constant 3.200000e+01 : f32
    %476 = vector.broadcast %cst_146 : f32 to vector<32x1xf32>
    %477 = arith.divf %475, %476 : vector<32x1xf32>
    %478 = vector.broadcast %470 : vector<32x1xf32> to vector<32x32xf32>
    %479 = arith.subf %466, %478 : vector<32x32xf32>
    %cst_147 = arith.constant 9.99999974E-6 : f32
    %480 = vector.broadcast %cst_147 : f32 to vector<32x1xf32>
    %481 = arith.addf %477, %480 : vector<32x1xf32>
    %482 = math.rsqrt %481 : vector<32x1xf32>
    %483 = vector.broadcast %482 : vector<32x1xf32> to vector<32x32xf32>
    %484 = arith.mulf %479, %483 : vector<32x32xf32>
    %485 = vector.broadcast %271 : vector<1x32xf32> to vector<32x32xf32>
    %486 = arith.mulf %484, %485 : vector<32x32xf32>
    %487 = vector.broadcast %272 : vector<1x32xf32> to vector<32x32xf32>
    %488 = arith.addf %486, %487 : vector<32x32xf32>
    %c0_148 = arith.constant 0 : index
    %c0_149 = arith.constant 0 : index
    %489 = vector.load %arg8[%c0_148, %c0_149] : memref<32x32xf32, #tpu.memory_space<vmem>>, vector<32x32xf32>
    tpu.vector_store %arg8[%c0_148, %c0_149], %488 {strides = array<i32>} : memref<32x32xf32, #tpu.memory_space<vmem>>, vector<32x32xf32>,
    return
  }
  func.func @transform_0(%arg0: i32) -> (i32, i32) {
    %c0_i32 = arith.constant 0 : i32
    %c0_i32_0 = arith.constant 0 : i32
    %c0_i32_1 = arith.constant 0 : i32
    return %c0_i32, %c0_i32_0 : i32, i32
  }
  func.func @transform_1(%arg0: i32) -> (i32, i32) {
    %c0_i32 = arith.constant 0 : i32
    %c0_i32_0 = arith.constant 0 : i32
    %c0_i32_1 = arith.constant 0 : i32
    return %c0_i32, %c0_i32_0 : i32, i32
  }
  func.func @transform_2(%arg0: i32) -> (i32, i32) {
    %c0_i32 = arith.constant 0 : i32
    %c0_i32_0 = arith.constant 0 : i32
    %c0_i32_1 = arith.constant 0 : i32
    return %c0_i32, %c0_i32_0 : i32, i32
  }
  func.func @transform_3(%arg0: i32) -> (i32, i32, i32) {
    %c0_i32 = arith.constant 0 : i32
    %c0_i32_0 = arith.constant 0 : i32
    %c0_i32_1 = arith.constant 0 : i32
    %c0_i32_2 = arith.constant 0 : i32
    return %c0_i32, %c0_i32_0, %c0_i32_1 : i32, i32, i32
  }
  func.func @transform_4(%arg0: i32) -> (i32, i32, i32) {
    %c0_i32 = arith.constant 0 : i32
    %c0_i32_0 = arith.constant 0 : i32
    %c0_i32_1 = arith.constant 0 : i32
    %c0_i32_2 = arith.constant 0 : i32
    return %c0_i32, %c0_i32_0, %c0_i32_1 : i32, i32, i32
  }
  func.func @transform_5(%arg0: i32) -> (i32, i32, i32) {
    %c0_i32 = arith.constant 0 : i32
    %c0_i32_0 = arith.constant 0 : i32
    %c0_i32_1 = arith.constant 0 : i32
    %c0_i32_2 = arith.constant 0 : i32
    return %c0_i32, %c0_i32_0, %c0_i32_1 : i32, i32, i32
  }
  func.func @transform_6(%arg0: i32) -> (i32, i32, i32) {
    %c0_i32 = arith.constant 0 : i32
    %c0_i32_0 = arith.constant 0 : i32
    %c0_i32_1 = arith.constant 0 : i32
    %c0_i32_2 = arith.constant 0 : i32
    return %c0_i32, %c0_i32_0, %c0_i32_1 : i32, i32, i32
  }
  func.func @transform_7(%arg0: i32) -> (i32, i32) {
    %c0_i32 = arith.constant 0 : i32
    %c0_i32_0 = arith.constant 0 : i32
    %c0_i32_1 = arith.constant 0 : i32
    return %c0_i32, %c0_i32_0 : i32, i32
  }
}

</mosaic_0001>

<bundles_post_ra>
// kernel: _forward.1
= control target key start
LH: loop header
LB: loop body
LE: loop exit
PB: predicated region body
PF: predicated region fallthrough
CT: control target
= control target key end

     0   :  { %s7917_s0 = inlined_call_operand.vmem [shape: f32[32,256], index: 0, kind: input, shape index: {}]   ;;  %s7918_s1 = inlined_call_operand.vmem [shape: f32[256,32], index: 1, kind: input, shape index: {}]   ;;  %s7919_s2 = inlined_call_operand.vmem [shape: f32[19,96], index: 2, kind: input, shape index: {}]   ;;  %s7920_s3 = inlined_call_operand.vmem [shape: f32[2,32,96], index: 3, kind: input, shape index: {}]   ;;  %s7921_s4 = inlined_call_operand.vmem [shape: f32[2,32,32], index: 4, kind: input, shape index: {}]   ;;  %s7922_s5 = inlined_call_operand.vmem [shape: f32[2,32,64], index: 5, kind: input, shape index: {}]   ;;  %s7923_s6 = inlined_call_operand.vmem [shape: f32[2,64,32], index: 6, kind: input, shape index: {}]   ;;  %s7924_s7 = inlined_call_operand.hbm [shape: f32[32,32], index: 7, kind: output, shape index: {}]  }
   0x1   :  { %v69_v0 = vld [vmem:[%s7918_s1 + $0xf8] sm:$0xff]  ;;  %v68_v2 = vld [vmem:[%s7918_s1 + $0xf0] sm:$0xff]  ;;  %v67_v4 = vld [vmem:[%s7918_s1 + $0xe8] sm:$0xff] }
   0x2   :  { %v53_v1 = vld [vmem:[%s7918_s1 + $0x78] sm:$0xff]  ;;  %5914 = vmatprep.subr.mxu0 %v69_v0  ;;  %v52_v3 = vld [vmem:[%s7918_s1 + $0x70] sm:$0xff]  ;;  %v51_v5 = vld [vmem:[%s7918_s1 + $0x68] sm:$0xff] }
   0x3   :  { %5915 = vmatpush3.msra.mxu0 %v53_v1  ;;  %v66_v6 = vld [vmem:[%s7918_s1 + $0xe0] sm:$0xff]  ;;  %v65_v8 = vld [vmem:[%s7918_s1 + $0xd8] sm:$0xff]  ;;  %v64_v10 = vld [vmem:[%s7918_s1 + $0xd0] sm:$0xff] }
   0x4   :  { %5916 = vmatprep.subr.mxu0 %v68_v2  ;;  %v50_v7 = vld [vmem:[%s7918_s1 + $0x60] sm:$0xff]  ;;  %v49_v9 = vld [vmem:[%s7918_s1 + $0x58] sm:$0xff]  ;;  %v48_v11 = vld [vmem:[%s7918_s1 + $0x50] sm:$0xff] }
   0x5   :  { %5917 = vmatpush3.msra.mxu0 %v52_v3  ;;  %v63_v12 = vld [vmem:[%s7918_s1 + $0xc8] sm:$0xff]  ;;  %v62_v15 = vld [vmem:[%s7918_s1 + $0xc0] sm:$0xff] }
   0x6   :  { %5918 = vmatprep.subr.mxu0 %v67_v4  ;;  %v6904_v13 = vld [vmem:[%s7917_s0 + $0x8] sm:$0xff]  ;;  %v46_v16 = vld [vmem:[%s7918_s1 + $0x40] sm:$0xff] }
   0x7   :  { %5919 = vmatpush3.msra.mxu0 %v51_v5  ;;  %v47_v14 = vld [vmem:[%s7918_s1 + $0x48] sm:$0xff]  ;;  %138 = vmatprep.mubr.f32.mxu0 %v6904_v13 }
   0x8   :  { %5920 = vmatprep.subr.mxu0 %v66_v6 }
   0x9   :  { %5921 = vmatpush3.msra.mxu0 %v50_v7 }
   0xa   :  { %5922 = vmatprep.subr.mxu0 %v65_v8 }
   0xb   :  { %5923 = vmatpush3.msra.mxu0 %v49_v9 }
   0xc   :  { %5924 = vmatprep.subr.mxu0 %v64_v10 }
   0xd   :  { %5925 = vmatpush3.msra.mxu0 %v48_v11 }
   0xe   :  { %5926 = vmatprep.subr.mxu0 %v63_v12 }
   0xf   :  { %12 = vsyncpa [#allocation3], 0  ;;  %5927 = vmatpush3.msra.mxu0 %v47_v14  ;;  %v61_v17 = vld [vmem:[%s7918_s1 + $0xb8] sm:$0xff]  ;;  %v60_v19 = vld [vmem:[%s7918_s1 + $0xb0] sm:$0xff]  ;;  %v70_v40 = vlaneseq  ;;  %vm183_vm0 = vcmask 261120   ;;  %vm368_vm1 = vcmask 64512  }
  0x10   :  { %5928 = vmatprep.subr.mxu0 %v62_v15  ;;  %v45_v18 = vld [vmem:[%s7918_s1 + $0x38] sm:$0xff]  ;;  %v44_v20 = vld [vmem:[%s7918_s1 + $0x30] sm:$0xff]  ;;  %v59_v21 = vld [vmem:[%s7918_s1 + $0xa8] sm:$0xff]  ;;  %s6808_s20 = smov 96   ;;  %vm452_vm2 = vcmask 130048   ;;  %s6809_s21 = smov 64  }
  0x11   :  { %5929 = vmatpush3.msra.mxu0 %v46_v16  ;;  %v43_v22 = vld [vmem:[%s7918_s1 + $0x28] sm:$0xff]  ;;  %v58_v23 = vld [vmem:[%s7918_s1 + $0xa0] sm:$0xff]  ;;  %v57_v25 = vld [vmem:[%s7918_s1 + $0x98] sm:$0xff]  ;;  %v6988_v41 = vshrl.u32 %v70_v40, 7  ;;  %s6810_s22 = smov 88   ;;  %s6811_s23 = smov 120  }
  0x12   :  { %5930 = vmatprep.subr.mxu0 %v61_v17  ;;  %v42_v24 = vld [vmem:[%s7918_s1 + $0x20] sm:$0xff]  ;;  %v41_v26 = vld [vmem:[%s7918_s1 + $0x18] sm:$0xff]  ;;  %v56_v27 = vld [vmem:[%s7918_s1 + $0x90] sm:$0xff]  ;;  %s6812_s24 = smov 80   ;;  %s6813_s25 = smov 112   ;;  %vm2817_vm3 = vcmask 523264  }
  0x13   :  { %5931 = vmatpush3.msra.mxu0 %v45_v18  ;;  %v40_v28 = vld [vmem:[%s7918_s1 + $0x10] sm:$0xff]  ;;  %v55_v29 = vld [vmem:[%s7918_s1 + $0x88] sm:$0xff]  ;;  %v54_v31 = vld [vmem:[%s7918_s1 + $0x80] sm:$0xff]  ;;  %v6991_v42 = vsub.s32 0, %v6988_v41  ;;  %s6814_s26 = smov 56   ;;  %s6815_s27 = smov 72  }
  0x14   :  { %5932 = vmatprep.subr.mxu0 %v60_v19  ;;  %v39_v30 = vld [vmem:[%s7918_s1 + $0x8] sm:$0xff]  ;;  %v38_v32 = vld [vmem:[%s7918_s1] sm:$0xff]  ;;  %v33_v34 = vld [vmem:[%s7917_s0 + $0x18] sm:$0xff]  ;;  %s6816_s28 = smov 104   ;;  %s6817_s1 = smov 48  }
  0x15   :  { %5933 = vmatpush3.msra.mxu0 %v44_v20  ;;  %v30_v33 = vld [vmem:[%s7917_s0] sm:$0xff]  ;;  %v32_v35 = vld [vmem:[%s7917_s0 + $0x10] sm:$0xff]  ;;  %v35_v36 = vld [vmem:[%s7917_s0 + $0x28] sm:$0xff]  ;;  %s6818_s10 = smov 40  }
  0x16   :  { %5934 = vmatprep.subr.mxu0 %v59_v21  ;;  %v34_v37 = vld [vmem:[%s7917_s0 + $0x20] sm:$0xff]  ;;  %v6982_v38 = vld [vmem:[%s7917_s0 + $0x38] sm:$0xff]  ;;  %v36_v39 = vld [vmem:[%s7917_s0 + $0x30] sm:$0xff] }
  0x17   :  { %5935 = vmatpush3.msra.mxu0 %v43_v22  ;;  %v6996_v43 = vld [vmem:[%s7919_s2] sm:$0xff] }
  0x18   :  { %5936 = vmatprep.subr.mxu0 %v58_v23  ;;  %v73_v45 = vrot.slane %v6996_v43, %v6991_v42 }
  0x19   :  { %5937 = vmatpush3.msra.mxu0 %v42_v24 }
  0x1a   :  { %5938 = vmatprep.subr.mxu0 %v57_v25 }
  0x1b   :  { %5939 = vmatpush3.msra.mxu0 %v41_v26 }
  0x1c   :  { %5940 = vmatprep.subr.mxu0 %v56_v27 }
  0x1d   :  { %5941 = vmatpush3.msra.mxu0 %v40_v28 }
  0x1e   :  { %5942 = vmatprep.subr.mxu0 %v55_v29 }
  0x1f   :  { %5943 = vmatpush3.msra.mxu0 %v39_v30 }
  0x20   :  { %5944 = vmatprep.subr.mxu0 %v54_v31 }
  0x21   :  { %5945 = vmatpush3.msra.mxu0 %v38_v32 }
  0x22   :  { %139 = vmatmul.mubr.f32.vlgmr.msra.gmra.mxu0 %v30_v33 }
  0x23   :  { %143 = vmatprep.mubr.f32.mxu0 %v33_v34 }
  0x26   :  { %144 = vmatmul.mubr.f32.gmra.mxu0 %v32_v35 }
  0x27   :  { %148 = vmatprep.mubr.f32.mxu0 %v35_v36 }
  0x2a   :  { %149 = vmatmul.mubr.f32.gmra.mxu0 %v34_v37 }
  0x2b   :  { %153 = vmatprep.mubr.f32.mxu0 %v6982_v38 }
  0x2e   :  { %154 = vmatmul.mubr.f32.gmra.mxu0 %v36_v39 }
  0xe2   :  { %v5946_v44 = vpop.f32.mrf.mxu0 }
  0xe4   :  { %v5947_v46 = vpop.f32.mrf.mxu0 }
  0xe5   :  { %v5948_v47 = vadd.f32 %v5947_v46, %v5946_v44  ;;  %v260_v44 = vld [vmem:[%s7920_s3 + $0x18] sm:$0xff]  ;;  %v257_v46 = vld [vmem:[%s7920_s3] sm:$0xff] }
  0xe6   :  { %v5949_v48 = vpop.f32.mrf.mxu0  ;;  %6190 = vmatprep.subr.mxu1 %v260_v44 }
  0xe7   :  { %v141_v49 = vadd.f32 %v5948_v47, %v73_v45  ;;  %6191 = vmatpush3.msra.mxu1 %v260_v44 }
  0xe8   :  { %v5950_v50 = vpop.f32.mrf.mxu0 }
  0xe9   :  { %v163_v51 = vmul.f32 0.70710677, %v141_v49  ;;  %v5951_v52 = vadd.f32 %v5950_v50, %v5949_v48  ;;  %v159_v61 = vmul.f32 0.5, %v141_v49 }
  0xea   :  { %v5952_v53 = vpop.f32.mrf.mxu0 }
  0xeb   :  { %6608 = verf.f32 %v163_v51  ;;  %v146_v54 = vadd.f32 %v5951_v52, %v73_v45 }
  0xec   :  { %v5953_v55 = vpop.f32.mrf.mxu0 }
  0xed   :  { %v164_v56 = vmul.f32 0.70710677, %v146_v54  ;;  %v5954_v57 = vadd.f32 %v5953_v55, %v5952_v53  ;;  %v160_v1 = vmul.f32 0.5, %v146_v54 }
  0xee   :  { %v5955_v15 = vpop.f32.mrf.mxu0 }
  0xef   :  { %6610 = verf.f32 %v164_v56  ;;  %v151_v58 = vadd.f32 %v5954_v57, %v73_v45 }
  0xf0   :  { %v5956_v16 = vpop.f32.mrf.mxu0 }
  0xf1   :  { %v165_v59 = vmul.f32 0.70710677, %v151_v58  ;;  %v161_v4 = vmul.f32 0.5, %v151_v58 }
  0xf3   :  { %6612 = verf.f32 %v165_v59 }
  0xf8   :  { %v6609_v60 = vpop.eup %6608 }
  0xf9   :  { %v171_v62 = vadd.f32 1.0, %v6609_v60  ;;  %v7022_v60 = vsub.s32 1, %v6988_v41 }
  0xfb   :  { %v175_v63 = vmul.f32 %v171_v62, %v159_v61  ;;  %v7026_v62 = vsub.s32 2, %v6988_v41 }
  0xfc   :  { %v6611_v0 = vpop.eup %6610 }
  0xfd   :  { %v179_v2 = vadd.f32 %v175_v63, %v6904_v13  ;;  %v172_v3 = vadd.f32 1.0, %v6611_v0  ;;  %v5957_v13 = vadd.f32 %v5956_v16, %v5955_v15  ;;  %v240_v63 = vrot.slane %v6996_v43, %v7022_v60 }
  0xff   :  { %v184_v5 = vsel %vm183_vm0, %v179_v2, 0.0  ;;  %v176_v6 = vmul.f32 %v172_v3, %v160_v1  ;;  %v156_v17 = vadd.f32 %v5957_v13, %v73_v45  ;;  %v259_v45 = vld [vmem:[%s7920_s3 + $0x10] sm:$0xff] }
 0x100   :  { %v6613_v7 = vpop.eup %6612  ;;  %185 = vadd.xlane.f32.xlu0 %v184_v5  ;;  %6192 = vmatprep.subr.mxu1 %v259_v45 }
 0x101   :  { %v180_v8 = vadd.f32 %v176_v6, %v33_v34  ;;  %v173_v9 = vadd.f32 1.0, %v6613_v7  ;;  %v166_v18 = vmul.f32 0.70710677, %v156_v17  ;;  %v162_v21 = vmul.f32 0.5, %v156_v17  ;;  %6193 = vmatpush3.msra.mxu1 %v259_v45 }
 0x103   :  { %v187_v10 = vsel %vm183_vm0, %v180_v8, 0.0  ;;  %v177_v11 = vmul.f32 %v173_v9, %v161_v4  ;;  %6614 = verf.f32 %v166_v18 }
 0x104   :  { %188 = vadd.xlane.f32.xlu0 %v187_v10 }
 0x105   :  { %v181_v12 = vadd.f32 %v177_v11, %v35_v36 }
 0x107   :  { %v190_v14 = vsel %vm183_vm0, %v181_v12, 0.0 }
 0x108   :  { %191 = vadd.xlane.f32.xlu0 %v190_v14 }
 0x110   :  { %v6615_v19 = vpop.eup %6614 }
 0x111   :  { %v174_v23 = vadd.f32 1.0, %v6615_v19 }
 0x113   :  { %v178_v28 = vmul.f32 %v174_v23, %v162_v21 }
 0x115   :  { %v182_v34 = vadd.f32 %v178_v28, %v6982_v38  ;;  %v258_v38 = vld [vmem:[%s7920_s3 + $0x8] sm:$0xff] }
 0x116   :  { %6194 = vmatprep.subr.mxu1 %v258_v38 }
 0x117   :  { %v193_v37 = vsel %vm183_vm0, %v182_v34, 0.0  ;;  %6195 = vmatpush3.msra.mxu1 %v258_v38 }
 0x118   :  { %6196 = vmatprep.subr.mxu1 %v257_v46 }
 0x119   :  { %6197 = vmatpush3.msra.mxu1 %v257_v46 }
 0x189   :  { %v186_v20 = vpop.xlane.xlu0 %185 }
 0x18a   :  { %v197_v22 = vmul.f32 0.03125, %v186_v20  ;;  %v263_v20 = vsub.s32 3, %v6988_v41 }
 0x18c   :  { %v201_v24 = vsub.f32 %v179_v2, %v197_v22  ;;  %v248_v2 = vrot.slane %v6996_v43, %v7026_v62  ;;  %v7052_v21 = vrot.slane %v6996_v43, %v263_v20 }
 0x18d   :  { %v189_v25 = vpop.xlane.xlu0 %188 }
 0x18e   :  { %v198_v26 = vmul.f32 0.03125, %v189_v25  ;;  %v205_v27 = vmul.f32 %v201_v24, %v201_v24 }
 0x190   :  { %v202_v29 = vsub.f32 %v180_v8, %v198_v26  ;;  %v209_v30 = vsel %vm183_vm0, %v205_v27, 0.0 }
 0x191   :  { %210 = vadd.xlane.f32.xlu1 %v209_v30  ;;  %v192_v31 = vpop.xlane.xlu0 %191 }
 0x192   :  { %v199_v32 = vmul.f32 0.03125, %v192_v31  ;;  %v206_v33 = vmul.f32 %v202_v29, %v202_v29 }
 0x194   :  { %v203_v35 = vsub.f32 %v181_v12, %v199_v32  ;;  %v212_v36 = vsel %vm183_vm0, %v206_v33, 0.0 }
 0x195   :  { %213 = vadd.xlane.f32.xlu1 %v212_v36 }
 0x196   :  { %v207_v39 = vmul.f32 %v203_v35, %v203_v35 }
 0x198   :  { %v215_v40 = vsel %vm183_vm0, %v207_v39, 0.0 }
 0x199   :  { %194 = vadd.xlane.f32.xlu1 %v193_v37  ;;  %216 = vadd.xlane.f32.xlu0 %v215_v40 }
 0x21a   :  { %v211_v47 = vpop.xlane.xlu1 %210 }
 0x21b   :  { %v221_v48 = vmul.f32 0.03125, %v211_v47 }
 0x21d   :  { %v225_v49 = vadd.f32 1e-05, %v221_v48 }
 0x21e   :  { %v214_v50 = vpop.xlane.xlu1 %213 }
 0x21f   :  { %6616 = vrsqrt.f32 %v225_v49  ;;  %v222_v51 = vmul.f32 0.03125, %v214_v50 }
 0x221   :  { %v226_v52 = vadd.f32 1e-05, %v222_v51 }
 0x222   :  { %v195_v53 = vpop.xlane.xlu1 %194  ;;  %v217_v54 = vpop.xlane.xlu0 %216 }
 0x223   :  { %6618 = vrsqrt.f32 %v226_v52  ;;  %v200_v55 = vmul.f32 0.03125, %v195_v53  ;;  %v223_v56 = vmul.f32 0.03125, %v217_v54 }
 0x225   :  { %v204_v57 = vsub.f32 %v182_v34, %v200_v55  ;;  %v227_v58 = vadd.f32 1e-05, %v223_v56 }
 0x227   :  { %6620 = vrsqrt.f32 %v227_v58  ;;  %v208_v59 = vmul.f32 %v204_v57, %v204_v57 }
 0x229   :  { %v218_v61 = vsel %vm183_vm0, %v208_v59, 0.0 }
 0x22a   :  { %219 = vadd.xlane.f32.xlu1 %v218_v61 }
 0x22c   :  { %v6617_v0 = vpop.eup %6616 }
 0x22d   :  { %v233_v1 = vmul.f32 %v6617_v0, %v201_v24 }
 0x22f   :  { %v241_v3 = vmul.f32 %v240_v63, %v233_v1 }
 0x230   :  { %v6619_v4 = vpop.eup %6618 }
 0x231   :  { %v7032_v5 = vadd.f32 %v248_v2, %v241_v3  ;;  %v234_v6 = vmul.f32 %v6619_v4, %v202_v29 }
 0x233   :  { %6198 = vmatprep.mubr.msk.f32.mxu1 %vm183_vm0, %v7032_v5  ;;  %v242_v7 = vmul.f32 %v240_v63, %v234_v6 }
 0x234   :  { %v6621_v8 = vpop.eup %6620 }
 0x235   :  { %v7036_v9 = vadd.f32 %v248_v2, %v242_v7  ;;  %v235_v10 = vmul.f32 %v6621_v8, %v203_v35 }
 0x237   :  { %6199 = vmatmul.mubr.msk.f32.vlgmr.msra.gmra.mxu1 %vm183_vm0, %v7036_v9  ;;  %v243_v11 = vmul.f32 %v240_v63, %v235_v10 }
 0x239   :  { %v7040_v12 = vadd.f32 %v248_v2, %v243_v11 }
 0x23b   :  { %6201 = vmatprep.mubr.msk.f32.mxu1 %vm183_vm0, %v7040_v12 }
 0x2b3   :  { %v220_v14 = vpop.xlane.xlu1 %219 }
 0x2b4   :  { %v224_v15 = vmul.f32 0.03125, %v220_v14 }
 0x2b6   :  { %v228_v16 = vadd.f32 1e-05, %v224_v15 }
 0x2b8   :  { %6622 = vrsqrt.f32 %v228_v16 }
 0x2c5   :  { %v6623_v13 = vpop.eup %6622 }
 0x2c6   :  { %v236_v17 = vmul.f32 %v6623_v13, %v204_v57 }
 0x2c8   :  { %v244_v18 = vmul.f32 %v240_v63, %v236_v17 }
 0x2ca   :  { %v7044_v19 = vadd.f32 %v248_v2, %v244_v18 }
 0x2cc   :  { %6202 = vmatmul.mubr.msk.f32.gmra.mxu1 %vm183_vm0, %v7044_v19 }
 0x2f7   :  { %v6200_v22 = vpop.f32.mrf.mxu1 }
 0x2f8   :  { %v7055_v23 = vadd.f32 %v6200_v22, %v7052_v21 }
 0x2f9   :  { %v343_v24 = vpop.f32.mrf.mxu1 }
 0x2fa   :  { %v7058_v25 = vadd.f32 %v343_v24, %v7052_v21  ;;  %366 = vrot.lane.b32.xlu0 %v7055_v23, %s6808_s20 }
 0x2fc   :  { %364 = vrot.lane.b32.xlu1 %v7058_v25, %s6808_s20  ;;  %6208 = vmatprep.mubr.msk.f32.mxu1 %vm368_vm1, %v7058_v25 }
 0x36c   :  { %v367_v43 = vpop.permute.xlu0 %366 }
 0x36d   :  { %6204 = vmatprep.subr.msk.mxu1 %vm368_vm1, %v367_v43 }
 0x36e   :  { %v365_v26 = vpop.permute.xlu1 %364  ;;  %6205 = vmatpush3.xpose.msk.msra.mxu1 %vm368_vm1, %v367_v43 }
 0x36f   :  { %6206 = vmatprep.subr.msk.mxu1 %vm368_vm1, %v365_v26 }
 0x372   :  { %6207 = vmatpush3.xpose.msk.msra.mxu1 %vm368_vm1, %v365_v26 }
 0x375   :  { %6209 = vmatmul.mubr.msk.f32.vlgmr.msra.gmra.mxu1 %vm368_vm1, %v7055_v23 }
 0x38c   :  { %v7072_v27 = vpop.f32.mrf.mxu1 }
 0x38d   :  { %v7136_v10 = vadd.f32 %v7072_v27, %v7052_v21 }
 0x38e   :  { %v7074_v28 = vpop.f32.mrf.mxu1 }
 0x38f   :  { %v7142_v11 = vadd.f32 %v7074_v28, %v7052_v21 }
 0x435   :  { %v6210_v29 = vpop.f32.mrf.mxu1 }
 0x436   :  { %v456_v30 = vsel %vm452_vm2, %v6210_v29, -inf }
 0x437   :  { %457 = vmax.xlane.f32.xlu0 %v456_v30  ;;  %v443_v31 = vpop.f32.mrf.mxu1 }
 0x438   :  { %v453_v32 = vsel %vm452_vm2, %v443_v31, -inf }
 0x439   :  { %454 = vmax.xlane.f32.xlu1 %v453_v32 }
 0x4c0   :  { %v458_v33 = vpop.xlane.xlu0 %457 }
 0x4c1   :  { %v460_v34 = vsub.f32 %v6210_v29, %v458_v33 }
 0x4c2   :  { %v455_v35 = vpop.xlane.xlu1 %454 }
 0x4c3   :  { %v463_v36 = vmul.f32 1.442695, %v460_v34  ;;  %v459_v37 = vsub.f32 %v443_v31, %v455_v35 }
 0x4c5   :  { %6624 = vpow2.f32 %v463_v36  ;;  %v461_v39 = vmul.f32 1.442695, %v459_v37 }
 0x4c7   :  { %6626 = vpow2.f32 %v461_v39 }
 0x4d2   :  { %v6625_v40 = vpop.eup %6624 }
 0x4d3   :  { %v468_v44 = vsel %vm452_vm2, %v6625_v40, 0.0 }
 0x4d4   :  { %v6627_v45 = vpop.eup %6626  ;;  %469 = vadd.xlane.f32.xlu1 %v468_v44 }
 0x4d5   :  { %v465_v38 = vsel %vm452_vm2, %v6627_v45, 0.0 }
 0x4d6   :  { %466 = vadd.xlane.f32.xlu0 %v465_v38 }
 0x4e5   :  { %475 = vrot.lane.b32.xlu1 %v7058_v25, %s6809_s21 }
 0x4e9   :  { %568 = vrot.lane.b32.xlu1 %v7055_v23, %s6810_s22 }
 0x4ec   :  { %477 = vrot.lane.b32.xlu0 %v7055_v23, %s6809_s21 }
 0x4ed   :  { %566 = vrot.lane.b32.xlu1 %v7058_v25, %s6810_s22 }
 0x4f0   :  { %562 = vrot.lane.b32.xlu0 %v7058_v25, %s6811_s23 }
 0x4f1   :  { %564 = vrot.lane.b32.xlu1 %v7055_v23, %s6811_s23 }
 0x4f4   :  { %930 = vrot.lane.b32.xlu0 %v7055_v23, %s6812_s24 }
 0x4f5   :  { %928 = vrot.lane.b32.xlu1 %v7058_v25, %s6812_s24 }
 0x4f8   :  { %924 = vrot.lane.b32.xlu0 %v7058_v25, %s6813_s25 }
 0x4f9   :  { %926 = vrot.lane.b32.xlu1 %v7055_v23, %s6813_s25 }
 0x55d   :  { %v470_v46 = vpop.xlane.xlu1 %469 }
 0x55e   :  { %6628 = vrcp.f32 %v470_v46 }
 0x55f   :  { %v467_v47 = vpop.xlane.xlu0 %466 }
 0x560   :  { %6630 = vrcp.f32 %v467_v47 }
 0x561   :  { %v476_v48 = vpop.permute.xlu1 %475 }
 0x563   :  { %v478_v49 = vpop.permute.xlu0 %477 }
 0x564   :  { %6211 = vmatprep.subr.mxu1 %v478_v49 }
 0x565   :  { %6212 = vmatpush3.msra.mxu1 %v478_v49  ;;  %v569_v50 = vpop.permute.xlu1 %568 }
 0x566   :  { %6213 = vmatprep.subr.mxu1 %v476_v48 }
 0x567   :  { %v563_v51 = vpop.permute.xlu0 %562  ;;  %6214 = vmatpush3.msra.mxu1 %v476_v48 }
 0x568   :  { %6218 = vmatprep.subr.msk.mxu1 %vm368_vm1, %v569_v50 }
 0x569   :  { %v567_v52 = vpop.permute.xlu1 %566 }
 0x56b   :  { %v931_v53 = vpop.permute.xlu0 %930  ;;  %v6629_v54 = vpop.eup %6628 }
 0x56c   :  { %6242 = vmatprep.subr.msk.mxu0 %vm368_vm1, %v931_v53  ;;  %v474_v59 = vmul.f32 %v6629_v54, %v6625_v40 }
 0x56d   :  { %v6631_v55 = vpop.eup %6630  ;;  %6243 = vmatpush3.xpose.msk.msra.mxu0 %vm368_vm1, %v931_v53  ;;  %v565_v56 = vpop.permute.xlu1 %564 }
 0x56e   :  { %v473_v57 = vmul.f32 %v6631_v55, %v6627_v45 }
 0x56f   :  { %v925_v58 = vpop.permute.xlu0 %924 }
 0x570   :  { %6215 = vmatprep.mubr.msk.f32.mxu1 %vm452_vm2, %v473_v57  ;;  %6246 = vmatprep.mubr.msk.f32.mxu0 %vm368_vm1, %v925_v58  ;;  %v7184_v57 = vld [vmem:[%s7921_s4] sm:$0xff] }
 0x571   :  { %6216 = vmatmul.mubr.msk.f32.vlgmr.msra.gmra.mxu1 %vm452_vm2, %v474_v59  ;;  %v929_v61 = vpop.permute.xlu1 %928 }
 0x572   :  { %6219 = vmatpush3.xpose.msk.msra.mxu1 %vm368_vm1, %v569_v50  ;;  %6222 = vmatprep.mubr.msk.f32.mxu1 %vm368_vm1, %v563_v51 }
 0x573   :  { %6220 = vmatprep.subr.msk.mxu1 %vm368_vm1, %v567_v52  ;;  %6244 = vmatprep.subr.msk.mxu0 %vm368_vm1, %v929_v61 }
 0x574   :  { %6245 = vmatpush3.xpose.msk.msra.mxu0 %vm368_vm1, %v929_v61 }
 0x575   :  { %v927_v63 = vpop.permute.xlu1 %926 }
 0x576   :  { %6221 = vmatpush3.xpose.msk.msra.mxu1 %vm368_vm1, %v567_v52 }
 0x577   :  { %6247 = vmatmul.mubr.msk.f32.vlgmr.msra.gmra.mxu0 %vm368_vm1, %v927_v63 }
 0x579   :  { %6223 = vmatmul.mubr.msk.f32.vlgmr.msra.gmra.mxu1 %vm368_vm1, %v565_v56  ;;  %v7177_v56 = vld [vmem:[%s7921_s4 + $0x8] sm:$0xff] }
 0x631   :  { %v7114_v0 = vpop.f32.mrf.mxu1 }
 0x633   :  { %v7116_v1 = vpop.f32.mrf.mxu1 }
 0x637   :  { %v7128_v7 = vpop.f32.mrf.mxu0 }
 0x638   :  { %v1018_v8 = vsel %vm452_vm2, %v7128_v7, -inf }
 0x639   :  { %v6224_v2 = vpop.f32.mrf.mxu1  ;;  %v1006_v33 = vpop.f32.mrf.mxu0 }
 0x63a   :  { %v656_v3 = vsel %vm452_vm2, %v6224_v2, -inf  ;;  %v1015_v34 = vsel %vm452_vm2, %v1006_v33, -inf }
 0x63b   :  { %657 = vmax.xlane.f32.xlu1 %v656_v3  ;;  %v644_v4 = vpop.f32.mrf.mxu1 }
 0x63c   :  { %v653_v6 = vsel %vm452_vm2, %v644_v4, -inf }
 0x63d   :  { %654 = vmax.xlane.f32.xlu0 %v653_v6 }
 0x64c   :  { %675 = vrot.lane.b32.xlu1 %v7058_v25, %s6814_s26 }
 0x650   :  { %1213 = vrot.lane.b32.xlu1 %v7055_v23, %s6815_s27 }
 0x654   :  { %1211 = vrot.lane.b32.xlu1 %v7058_v25, %s6815_s27 }
 0x658   :  { %1209 = vrot.lane.b32.xlu1 %v7055_v23, %s6816_s28 }
 0x67c   :  { %1019 = vmax.xlane.f32.xlu1 %v1018_v8 }
 0x68d   :  { %1037 = vrot.lane.b32.xlu1 %v7058_v25, %s6817_s1 }
 0x691   :  { %1494 = vrot.lane.b32.xlu1 %v7136_v10, %s6808_s20 }
 0x695   :  { %1492 = vrot.lane.b32.xlu1 %v7142_v11, %s6808_s20 }
 0x6c4   :  { %v658_v14 = vpop.xlane.xlu1 %657 }
 0x6c5   :  { %v660_v15 = vsub.f32 %v6224_v2, %v658_v14 }
 0x6c6   :  { %v655_v16 = vpop.xlane.xlu0 %654 }
 0x6c7   :  { %v663_v13 = vmul.f32 1.442695, %v660_v15  ;;  %v659_v17 = vsub.f32 %v644_v4, %v655_v16 }
 0x6c8   :  { %v676_v18 = vpop.permute.xlu1 %675 }
 0x6c9   :  { %6632 = vpow2.f32 %v663_v13  ;;  %v661_v22 = vmul.f32 1.442695, %v659_v17  ;;  %v7210_v13 = vld [vmem:[%s7921_s4 + $0x10] sm:$0xff] }
 0x6cb   :  { %6634 = vpow2.f32 %v661_v22 }
 0x6cc   :  { %v1214_v24 = vpop.permute.xlu1 %1213 }
 0x6cd   :  { %6261 = vmatprep.subr.msk.mxu0 %vm368_vm1, %v1214_v24 }
 0x6ce   :  { %6262 = vmatpush3.xpose.msk.msra.mxu0 %vm368_vm1, %v1214_v24 }
 0x6d0   :  { %v1212_v43 = vpop.permute.xlu1 %1211 }
 0x6d1   :  { %6263 = vmatprep.subr.msk.mxu0 %vm368_vm1, %v1212_v43 }
 0x6d2   :  { %6264 = vmatpush3.xpose.msk.msra.mxu0 %vm368_vm1, %v1212_v43 }
 0x6d4   :  { %v1210_v29 = vpop.permute.xlu1 %1209 }
 0x6d6   :  { %v6633_v21 = vpop.eup %6632 }
 0x6d7   :  { %v668_v26 = vsel %vm452_vm2, %v6633_v21, 0.0 }
 0x6d8   :  { %v6635_v27 = vpop.eup %6634  ;;  %669 = vadd.xlane.f32.xlu0 %v668_v26 }
 0x6d9   :  { %v665_v28 = vsel %vm452_vm2, %v6635_v27, 0.0 }
 0x6dc   :  { %666 = vadd.xlane.f32.xlu0 %v665_v28 }
 0x6f2   :  { %677 = vrot.lane.b32.xlu0 %v7055_v23, %s6814_s26 }
 0x6f6   :  { %1207 = vrot.lane.b32.xlu0 %v7058_v25, %s6816_s28 }
 0x705   :  { %v1020_v30 = vpop.xlane.xlu1 %1019 }
 0x706   :  { %v1022_v47 = vsub.f32 %v7128_v7, %v1020_v30 }
 0x708   :  { %v1025_v50 = vmul.f32 1.442695, %v1022_v47 }
 0x709   :  { %v7156_v31 = vpop.permute.xlu1 %1037 }
 0x70d   :  { %v1495_v32 = vpop.permute.xlu1 %1494 }
 0x70e   :  { %6280 = vmatprep.subr.msk.mxu0 %vm368_vm1, %v1495_v32 }
 0x711   :  { %v1493_v40 = vpop.permute.xlu1 %1492 }
 0x715   :  { %1016 = vmax.xlane.f32.xlu0 %v1015_v34 }
 0x761   :  { %v670_v35 = vpop.xlane.xlu0 %669 }
 0x762   :  { %6636 = vrcp.f32 %v670_v35 }
 0x765   :  { %v667_v36 = vpop.xlane.xlu0 %666 }
 0x766   :  { %6638 = vrcp.f32 %v667_v36 }
 0x769   :  { %v678_v37 = vpop.permute.xlu0 %677 }
 0x76a   :  { %6225 = vmatprep.subr.mxu1 %v678_v37 }
 0x76b   :  { %6226 = vmatpush3.msra.mxu1 %v678_v37 }
 0x76c   :  { %6227 = vmatprep.subr.mxu1 %v676_v18 }
 0x76d   :  { %v1208_v39 = vpop.permute.xlu0 %1207  ;;  %6228 = vmatpush3.msra.mxu1 %v676_v18 }
 0x76e   :  { %6265 = vmatprep.mubr.msk.f32.mxu0 %vm368_vm1, %v1208_v39  ;;  %6232 = vmatprep.subr.mxu1 %v7177_v56 }
 0x76f   :  { %6266 = vmatmul.mubr.msk.f32.vlgmr.msra.gmra.mxu0 %vm368_vm1, %v1210_v29  ;;  %v6637_v44 = vpop.eup %6636 }
 0x770   :  { %6281 = vmatpush3.xpose.msk.msra.mxu0 %vm368_vm1, %v1495_v32  ;;  %6284 = vmatprep.mubr.msk.f32.mxu0 %vm368_vm1, %v7142_v11  ;;  %v674_v46 = vmul.f32 %v6637_v44, %v6633_v21 }
 0x771   :  { %6282 = vmatprep.subr.msk.mxu0 %vm368_vm1, %v1493_v40 }
 0x773   :  { %v6639_v45 = vpop.eup %6638 }
 0x774   :  { %6283 = vmatpush3.xpose.msk.msra.mxu0 %vm368_vm1, %v1493_v40  ;;  %v673_v38 = vmul.f32 %v6639_v45, %v6635_v27 }
 0x776   :  { %6229 = vmatprep.mubr.msk.f32.mxu1 %vm452_vm2, %v673_v38 }
 0x777   :  { %6285 = vmatmul.mubr.msk.f32.vlgmr.msra.gmra.mxu0 %vm368_vm1, %v7136_v10  ;;  %6230 = vmatmul.mubr.msk.f32.vlgmr.msra.gmra.mxu1 %vm452_vm2, %v674_v46 }
 0x778   :  { %6233 = vmatpush3.msra.mxu1 %v7177_v56 }
 0x779   :  { %6237 = vmatprep.subr.mxu1 %v7184_v57 }
 0x79e   :  { %v1017_v48 = vpop.xlane.xlu0 %1016 }
 0x79f   :  { %v1021_v49 = vsub.f32 %v1006_v33, %v1017_v48 }
 0x7a1   :  { %v1023_v51 = vmul.f32 1.442695, %v1021_v49 }
 0x7a3   :  { %6640 = vpow2.f32 %v1023_v51 }
 0x7a4   :  { %6642 = vpow2.f32 %v1025_v50  ;;  %v7232_v50 = vld [vmem:[%s7921_s4 + $0x18] sm:$0xff] }
 0x7b0   :  { %v6641_v52 = vpop.eup %6640 }
 0x7b1   :  { %v1027_v53 = vsel %vm452_vm2, %v6641_v52, 0.0  ;;  %v6643_v54 = vpop.eup %6642 }
 0x7b2   :  { %1028 = vadd.xlane.f32.xlu0 %v1027_v53  ;;  %v1030_v55 = vsel %vm452_vm2, %v6643_v54, 0.0 }
 0x7b6   :  { %1031 = vadd.xlane.f32.xlu0 %v1030_v55 }
 0x7cc   :  { %1039 = vrot.lane.b32.xlu0 %v7055_v23, %s6817_s1 }
 0x82f   :  { %v6267_v58 = vpop.f32.mrf.mxu0 }
 0x830   :  { %v1301_v59 = vsel %vm452_vm2, %v6267_v58, -inf }
 0x831   :  { %1302 = vmax.xlane.f32.xlu1 %v1301_v59  ;;  %v1289_v61 = vpop.f32.mrf.mxu0 }
 0x832   :  { %v1298_v63 = vsel %vm452_vm2, %v1289_v61, -inf }
 0x833   :  { %1299 = vmax.xlane.f32.xlu0 %v1298_v63 }
 0x837   :  { %v6231_v2 = vpop.f32.mrf.mxu1 }
 0x839   :  { %v753_v3 = vpop.f32.mrf.mxu1 }
 0x83a   :  { %6234 = vmatprep.mubr.msk.f32.mxu1 %vm368_vm1, %v753_v3 }
 0x83b   :  { %v1029_v4 = vpop.xlane.xlu0 %1028  ;;  %6235 = vmatmul.mubr.msk.f32.vlgmr.msra.gmra.mxu1 %vm368_vm1, %v6231_v2 }
 0x83c   :  { %6644 = vrcp.f32 %v1029_v4  ;;  %6239 = vmatprep.mubr.msk.f32.mxu1 %vm368_vm1, %v7116_v1  ;;  %6238 = vmatpush3.msra.mxu1 %v7184_v57 }
 0x83f   :  { %6240 = vmatmul.mubr.msk.f32.vlgmr.msra.gmra.mxu1 %vm368_vm1, %v7114_v0  ;;  %v1032_v6 = vpop.xlane.xlu0 %1031  ;;  %v7204_v0 = vpop.f32.mrf.mxu0 }
 0x840   :  { %6646 = vrcp.f32 %v1032_v6  ;;  %v1582_v44 = vsel %vm452_vm2, %v7204_v0, -inf }
 0x841   :  { %v1570_v16 = vpop.f32.mrf.mxu0 }
 0x842   :  { %1320 = vrot.lane.b32.xlu1 %v7058_v25, %s6818_s10  ;;  %v1579_v25 = vsel %vm452_vm2, %v1570_v16, -inf }
 0x843   :  { %v1040_v7 = vpop.permute.xlu0 %1039 }
 0x844   :  { %6249 = vmatprep.subr.mxu1 %v1040_v7 }
 0x845   :  { %6250 = vmatpush3.msra.mxu1 %v1040_v7 }
 0x846   :  { %6251 = vmatprep.subr.mxu1 %v7156_v31 }
 0x847   :  { %6252 = vmatpush3.msra.mxu1 %v7156_v31 }
 0x848   :  { %6256 = vmatprep.subr.mxu1 %v7210_v13 }
 0x849   :  { %v6645_v8 = vpop.eup %6644 }
 0x84a   :  { %v1035_v1 = vmul.f32 %v6645_v8, %v6641_v52 }
 0x84c   :  { %6253 = vmatprep.mubr.msk.f32.mxu1 %vm452_vm2, %v1035_v1 }
 0x84d   :  { %v6647_v14 = vpop.eup %6646 }
 0x84e   :  { %v1036_v15 = vmul.f32 %v6647_v14, %v6643_v54 }
 0x850   :  { %6254 = vmatmul.mubr.msk.f32.vlgmr.msra.gmra.mxu1 %vm452_vm2, %v1036_v15 }
 0x851   :  { %6257 = vmatpush3.msra.mxu1 %v7210_v13 }
 0x866   :  { %1580 = vmax.xlane.f32.xlu1 %v1579_v25 }
 0x8ba   :  { %v1303_v17 = vpop.xlane.xlu1 %1302 }
 0x8bb   :  { %v1305_v18 = vsub.f32 %v6267_v58, %v1303_v17 }
 0x8bc   :  { %v1300_v22 = vpop.xlane.xlu0 %1299 }
 0x8bd   :  { %v1304_v24 = vsub.f32 %v1289_v61, %v1300_v22  ;;  %v1308_v43 = vmul.f32 1.442695, %v1305_v18 }
 0x8be   :  { %v1321_v30 = vpop.permute.xlu1 %1320 }
 0x8bf   :  { %v1306_v21 = vmul.f32 1.442695, %v1304_v24 }
 0x8c1   :  { %6648 = vpow2.f32 %v1306_v21 }
 0x8c2   :  { %6650 = vpow2.f32 %v1308_v43 }
 0x8ce   :  { %v6649_v26 = vpop.eup %6648 }
 0x8cf   :  { %v1310_v27 = vsel %vm452_vm2, %v6649_v26, 0.0  ;;  %v6651_v28 = vpop.eup %6650 }
 0x8d0   :  { %1311 = vadd.xlane.f32.xlu0 %v1310_v27  ;;  %v1313_v29 = vsel %vm452_vm2, %v6651_v28, 0.0 }
 0x8d4   :  { %1314 = vadd.xlane.f32.xlu0 %v1313_v29 }
 0x8ea   :  { %1322 = vrot.lane.b32.xlu0 %v7055_v23, %s6818_s10 }
 0x8ef   :  { %v1581_v31 = vpop.xlane.xlu1 %1580 }
 0x8f0   :  { %v1585_v32 = vsub.f32 %v1570_v16, %v1581_v31 }
 0x8f2   :  { %v1587_v33 = vmul.f32 1.442695, %v1585_v32 }
 0x8f4   :  { %6652 = vpow2.f32 %v1587_v33 }
 0x8fb   :  { %v6236_v34 = vpop.f32.mrf.mxu1 }
 0x8fd   :  { %v834_v35 = vpop.f32.mrf.mxu1 }
 0x8ff   :  { %v6241_v36 = vpop.f32.mrf.mxu1 }
 0x900   :  { %v921_v37 = vadd.f32 %v6241_v36, %v6236_v34 }
 0x901   :  { %v915_v39 = vpop.f32.mrf.mxu1  ;;  %v6653_v45 = vpop.eup %6652 }
 0x902   :  { %v7218_v40 = vadd.f32 %v915_v39, %v834_v35  ;;  %v1591_v38 = vsel %vm452_vm2, %v6653_v45, 0.0 }
 0x909   :  { %1583 = vmax.xlane.f32.xlu0 %v1582_v44 }
 0x90d   :  { %1592 = vadd.xlane.f32.xlu0 %v1591_v38 }
 0x910   :  { %v6255_v23 = vpop.f32.mrf.mxu1 }
 0x912   :  { %v1115_v46 = vpop.f32.mrf.mxu1 }
 0x913   :  { %6258 = vmatprep.mubr.msk.f32.mxu1 %vm368_vm1, %v1115_v46 }
 0x914   :  { %6259 = vmatmul.mubr.msk.f32.vlgmr.msra.gmra.mxu1 %vm368_vm1, %v6255_v23 }
 0x923   :  { %1603 = vrot.lane.b32.xlu0 %v7136_v10, %s6809_s21 }
 0x927   :  { %1688 = vrot.lane.b32.xlu0 %v7142_v11, %s6811_s23 }
 0x959   :  { %v1312_v47 = vpop.xlane.xlu0 %1311 }
 0x95a   :  { %6654 = vrcp.f32 %v1312_v47 }
 0x95d   :  { %v1315_v48 = vpop.xlane.xlu0 %1314 }
 0x95e   :  { %6656 = vrcp.f32 %v1315_v48 }
 0x961   :  { %v1323_v49 = vpop.permute.xlu0 %1322 }
 0x962   :  { %6268 = vmatprep.subr.mxu1 %v1323_v49 }
 0x963   :  { %6269 = vmatpush3.msra.mxu1 %v1323_v49 }
 0x964   :  { %6270 = vmatprep.subr.mxu1 %v1321_v30 }
 0x965   :  { %6271 = vmatpush3.msra.mxu1 %v1321_v30 }
 0x966   :  { %6275 = vmatprep.subr.mxu1 %v7232_v50 }
 0x967   :  { %v6655_v51 = vpop.eup %6654 }
 0x968   :  { %v1318_v52 = vmul.f32 %v6655_v51, %v6649_v26 }
 0x96a   :  { %6272 = vmatprep.mubr.msk.f32.mxu1 %vm452_vm2, %v1318_v52 }
 0x96b   :  { %v6657_v53 = vpop.eup %6656 }
 0x96c   :  { %v1319_v54 = vmul.f32 %v6657_v53, %v6651_v28 }
 0x96e   :  { %6273 = vmatmul.mubr.msk.f32.vlgmr.msra.gmra.mxu1 %vm452_vm2, %v1319_v54 }
 0x96f   :  { %6276 = vmatpush3.msra.mxu1 %v7232_v50 }
 0x992   :  { %v1584_v55 = vpop.xlane.xlu0 %1583 }
 0x993   :  { %v1586_v58 = vsub.f32 %v7204_v0, %v1584_v55 }
 0x995   :  { %v1589_v59 = vmul.f32 1.442695, %v1586_v58 }
 0x996   :  { %v1593_v61 = vpop.xlane.xlu0 %1592 }
 0x997   :  { %6658 = vpow2.f32 %v1589_v59 }
 0x998   :  { %6660 = vrcp.f32 %v1593_v61 }
 0x99a   :  { %v1604_v63 = vpop.permute.xlu0 %1603 }
 0x99b   :  { %6287 = vmatprep.subr.mxu1 %v1604_v63 }
 0x99e   :  { %v1689_v22 = vpop.permute.xlu0 %1688 }
 0x9a4   :  { %v6659_v2 = vpop.eup %6658 }
 0x9a5   :  { %v1594_v3 = vsel %vm452_vm2, %v6659_v2, 0.0  ;;  %v6661_v8 = vpop.eup %6660 }
 0x9a6   :  { %1595 = vadd.xlane.f32.xlu1 %v1594_v3  ;;  %v1599_v0 = vmul.f32 %v6661_v8, %v6653_v45 }
 0x9b7   :  { %1601 = vrot.lane.b32.xlu1 %v7142_v11, %s6809_s21 }
 0x9bb   :  { %1694 = vrot.lane.b32.xlu1 %v7136_v10, %s6810_s22 }
 0x9bf   :  { %1692 = vrot.lane.b32.xlu1 %v7142_v11, %s6810_s22 }
 0x9c3   :  { %1690 = vrot.lane.b32.xlu1 %v7136_v10, %s6811_s23 }
 0x9d4   :  { %v6260_v4 = vpop.f32.mrf.mxu1 }
 0x9d5   :  { %v1206_v6 = vadd.f32 %v6260_v4, %v921_v37 }
 0x9d6   :  { %v1196_v7 = vpop.f32.mrf.mxu1 }
 0x9d7   :  { %v1205_v26 = vadd.f32 %v1196_v7, %v7218_v40 }
 0xa2e   :  { %v6274_v1 = vpop.f32.mrf.mxu1 }
 0xa2f   :  { %v1596_v14 = vpop.xlane.xlu1 %1595 }
 0xa30   :  { %6662 = vrcp.f32 %v1596_v14  ;;  %v1398_v15 = vpop.f32.mrf.mxu1 }
 0xa31   :  { %6277 = vmatprep.mubr.msk.f32.mxu1 %vm368_vm1, %v1398_v15 }
 0xa32   :  { %6278 = vmatmul.mubr.msk.f32.vlgmr.msra.gmra.mxu1 %vm368_vm1, %v6274_v1 }
 0xa33   :  { %6288 = vmatpush3.msra.mxu1 %v1604_v63  ;;  %6291 = vmatprep.mubr.msk.f32.mxu1 %vm452_vm2, %v1599_v0  ;;  %v1602_v16 = vpop.permute.xlu1 %1601 }
 0xa34   :  { %6289 = vmatprep.subr.mxu1 %v1602_v16 }
 0xa35   :  { %6290 = vmatpush3.msra.mxu1 %v1602_v16 }
 0xa37   :  { %v1695_v25 = vpop.permute.xlu1 %1694 }
 0xa38   :  { %6294 = vmatprep.subr.msk.mxu1 %vm368_vm1, %v1695_v25 }
 0xa3b   :  { %v1693_v24 = vpop.permute.xlu1 %1692 }
 0xa3d   :  { %v6663_v17 = vpop.eup %6662 }
 0xa3e   :  { %v1600_v18 = vmul.f32 %v6663_v17, %v6659_v2 }
 0xa3f   :  { %v1691_v43 = vpop.permute.xlu1 %1690 }
 0xa40   :  { %6292 = vmatmul.mubr.msk.f32.vlgmr.msra.gmra.mxu1 %vm452_vm2, %v1600_v18 }
 0xa41   :  { %6295 = vmatpush3.xpose.msk.msra.mxu1 %vm368_vm1, %v1695_v25  ;;  %6298 = vmatprep.mubr.msk.f32.mxu1 %vm368_vm1, %v1689_v22 }
 0xa42   :  { %6296 = vmatprep.subr.msk.mxu1 %vm368_vm1, %v1693_v24 }
 0xa45   :  { %6297 = vmatpush3.xpose.msk.msra.mxu1 %vm368_vm1, %v1693_v24 }
 0xa46   :  { %6313 = vmatprep.subr.mxu1 %v7184_v57 }
 0xa48   :  { %6299 = vmatmul.mubr.msk.f32.vlgmr.msra.gmra.mxu1 %vm368_vm1, %v1691_v43 }
 0xa49   :  { %6314 = vmatpush3.msra.mxu1 %v7184_v57 }
 0xaf2   :  { %v6279_v21 = vpop.f32.mrf.mxu1 }
 0xaf3   :  { %v7261_v27 = vadd.f32 %v6279_v21, %v1206_v6 }
 0xaf4   :  { %v1479_v28 = vpop.f32.mrf.mxu1 }
 0xaf5   :  { %v7263_v29 = vadd.f32 %v1479_v28, %v1205_v26 }
 0xb00   :  { %v6293_v30 = vpop.f32.mrf.mxu1 }
 0xb02   :  { %v1679_v31 = vpop.f32.mrf.mxu1 }
 0xb03   :  { %6315 = vmatprep.mubr.msk.f32.mxu1 %vm368_vm1, %v1679_v31 }
 0xb04   :  { %6316 = vmatmul.mubr.msk.f32.vlgmr.msra.gmra.mxu1 %vm368_vm1, %v6293_v30 }
 0xb08   :  { %v6300_v32 = vpop.f32.mrf.mxu1 }
 0xb09   :  { %v1782_v33 = vsel %vm452_vm2, %v6300_v32, -inf }
 0xb0a   :  { %1783 = vmax.xlane.f32.xlu1 %v1782_v33  ;;  %v1770_v34 = vpop.f32.mrf.mxu1 }
 0xb0b   :  { %v1779_v57 = vsel %vm452_vm2, %v1770_v34, -inf }
 0xb0c   :  { %1780 = vmax.xlane.f32.xlu0 %v1779_v57 }
 0xb1b   :  { %1801 = vrot.lane.b32.xlu1 %v7142_v11, %s6814_s26 }
 0xb1f   :  { %2056 = vrot.lane.b32.xlu1 %v7136_v10, %s6812_s24 }
 0xb23   :  { %2054 = vrot.lane.b32.xlu1 %v7142_v11, %s6812_s24 }
 0xb27   :  { %2052 = vrot.lane.b32.xlu1 %v7136_v10, %s6813_s25 }
 0xb2b   :  { %2337 = vrot.lane.b32.xlu1 %v7142_v11, %s6815_s27 }
 0xb2f   :  { %2335 = vrot.lane.b32.xlu1 %v7136_v10, %s6816_s28 }
 0xb93   :  { %v1784_v35 = vpop.xlane.xlu1 %1783 }
 0xb94   :  { %v1786_v36 = vsub.f32 %v6300_v32, %v1784_v35 }
 0xb95   :  { %v1781_v37 = vpop.xlane.xlu0 %1780 }
 0xb96   :  { %v1789_v39 = vmul.f32 1.442695, %v1786_v36  ;;  %v1785_v40 = vsub.f32 %v1770_v34, %v1781_v37 }
 0xb97   :  { %v1802_v51 = vpop.permute.xlu1 %1801 }
 0xb98   :  { %6664 = vpow2.f32 %v1789_v39  ;;  %v1787_v44 = vmul.f32 1.442695, %v1785_v40 }
 0xb9a   :  { %6666 = vpow2.f32 %v1787_v44  ;;  %v2618_v44 = vsub.s32 4, %v6988_v41 }
 0xb9b   :  { %v2057_v58 = vpop.permute.xlu1 %2056 }
 0xb9f   :  { %v2055_v63 = vpop.permute.xlu1 %2054 }
 0xba3   :  { %v2053_v4 = vpop.permute.xlu1 %2052 }
 0xba5   :  { %v6665_v45 = vpop.eup %6664 }
 0xba6   :  { %v1794_v38 = vsel %vm452_vm2, %v6665_v45, 0.0 }
 0xba7   :  { %v6667_v23 = vpop.eup %6666  ;;  %1795 = vadd.xlane.f32.xlu0 %v1794_v38  ;;  %v2338_v6 = vpop.permute.xlu1 %2337 }
 0xba8   :  { %v1791_v46 = vsel %vm452_vm2, %v6667_v23, 0.0 }
 0xbab   :  { %1792 = vadd.xlane.f32.xlu0 %v1791_v46  ;;  %v2336_v7 = vpop.permute.xlu1 %2335 }
 0xbc1   :  { %1803 = vrot.lane.b32.xlu0 %v7136_v10, %s6814_s26 }
 0xbc5   :  { %2050 = vrot.lane.b32.xlu0 %v7142_v11, %s6813_s25 }
 0xbc9   :  { %2339 = vrot.lane.b32.xlu0 %v7136_v10, %s6815_s27 }
 0xbcd   :  { %2333 = vrot.lane.b32.xlu0 %v7142_v11, %s6816_s28 }
 0xc30   :  { %v1796_v47 = vpop.xlane.xlu0 %1795 }
 0xc31   :  { %6668 = vrcp.f32 %v1796_v47 }
 0xc34   :  { %v1793_v48 = vpop.xlane.xlu0 %1792 }
 0xc35   :  { %6670 = vrcp.f32 %v1793_v48 }
 0xc38   :  { %v1804_v49 = vpop.permute.xlu0 %1803 }
 0xc39   :  { %6301 = vmatprep.subr.mxu0 %v1804_v49 }
 0xc3a   :  { %6302 = vmatpush3.msra.mxu0 %v1804_v49 }
 0xc3b   :  { %6303 = vmatprep.subr.mxu0 %v1802_v51 }
 0xc3c   :  { %6304 = vmatpush3.msra.mxu0 %v1802_v51  ;;  %v2051_v59 = vpop.permute.xlu0 %2050 }
 0xc3d   :  { %6308 = vmatprep.subr.mxu0 %v7177_v56 }
 0xc3e   :  { %v6669_v52 = vpop.eup %6668 }
 0xc3f   :  { %v1800_v55 = vmul.f32 %v6669_v52, %v6665_v45  ;;  %v7330_v45 = vld [vmem:[%s7919_s2] sm:$0xff] }
 0xc40   :  { %v2340_v3 = vpop.permute.xlu0 %2339  ;;  %v7335_v38 = vrot.slane %v7330_v45, %v2618_v44 }
 0xc42   :  { %v6671_v53 = vpop.eup %6670 }
 0xc43   :  { %v1799_v54 = vmul.f32 %v6671_v53, %v6667_v23  ;;  %v2621_v23 = vadd.f32 %v7335_v38, %v7261_v27 }
 0xc45   :  { %6305 = vmatprep.mubr.msk.f32.mxu0 %vm452_vm2, %v1799_v54  ;;  %v2625_v46 = vadd.f32 %v2621_v23, %v7036_v9 }
 0xc46   :  { %6306 = vmatmul.mubr.msk.f32.vlgmr.msra.gmra.mxu0 %vm452_vm2, %v1800_v55 }
 0xc47   :  { %6309 = vmatpush3.msra.mxu0 %v7177_v56  ;;  %v2334_v56 = vpop.permute.xlu0 %2333  ;;  %v2631_v47 = vsel %vm183_vm0, %v2625_v46, 0.0 }
 0xc48   :  { %6318 = vmatprep.subr.msk.mxu0 %vm368_vm1, %v2057_v58 }
 0xd06   :  { %v6307_v61 = vpop.f32.mrf.mxu0 }
 0xd08   :  { %v1879_v2 = vpop.f32.mrf.mxu0 }
 0xd09   :  { %6310 = vmatprep.mubr.msk.f32.mxu0 %vm368_vm1, %v1879_v2 }
 0xd0a   :  { %6311 = vmatmul.mubr.msk.f32.vlgmr.msra.gmra.mxu0 %vm368_vm1, %v6307_v61 }
 0xd0b   :  { %6319 = vmatpush3.xpose.msk.msra.mxu0 %vm368_vm1, %v2057_v58  ;;  %6322 = vmatprep.mubr.msk.f32.mxu0 %vm368_vm1, %v2051_v59 }
 0xd0c   :  { %6320 = vmatprep.subr.msk.mxu0 %vm368_vm1, %v2055_v63 }
 0xd0f   :  { %6321 = vmatpush3.xpose.msk.msra.mxu0 %vm368_vm1, %v2055_v63 }
 0xd10   :  { %6337 = vmatprep.subr.msk.mxu0 %vm368_vm1, %v2340_v3 }
 0xd12   :  { %6323 = vmatmul.mubr.msk.f32.vlgmr.msra.gmra.mxu0 %vm368_vm1, %v2053_v4 }
 0xd13   :  { %6338 = vmatpush3.xpose.msk.msra.mxu0 %vm368_vm1, %v2340_v3  ;;  %6341 = vmatprep.mubr.msk.f32.mxu0 %vm368_vm1, %v2334_v56  ;;  %v2620_v3 = vadd.f32 %v7335_v38, %v7263_v29 }
 0xd14   :  { %6339 = vmatprep.subr.msk.mxu0 %vm368_vm1, %v2338_v6 }
 0xd15   :  { %v2624_v56 = vadd.f32 %v2620_v3, %v7032_v5  ;;  %v2810_v3 = vld [vmem:[%s7923_s6 + $0x28] sm:$0xff] }
 0xd17   :  { %6340 = vmatpush3.xpose.msk.msra.mxu0 %vm368_vm1, %v2338_v6  ;;  %v2628_v6 = vsel %vm183_vm0, %v2624_v56, 0.0 }
 0xd1a   :  { %6342 = vmatmul.mubr.msk.f32.vlgmr.msra.gmra.mxu0 %vm368_vm1, %v2336_v7 }
 0xdca   :  { %v7309_v8 = vpop.f32.mrf.mxu0 }
 0xdcc   :  { %v7311_v1 = vpop.f32.mrf.mxu0 }
 0xdd2   :  { %v6324_v14 = vpop.f32.mrf.mxu0 }
 0xdd3   :  { %v2144_v15 = vsel %vm452_vm2, %v6324_v14, -inf }
 0xdd4   :  { %2145 = vmax.xlane.f32.xlu1 %v2144_v15  ;;  %v2132_v0 = vpop.f32.mrf.mxu0 }
 0xdd5   :  { %v2141_v16 = vsel %vm452_vm2, %v2132_v0, -inf }
 0xdd6   :  { %2142 = vmax.xlane.f32.xlu0 %v2141_v16 }
 0xdda   :  { %v6343_v25 = vpop.f32.mrf.mxu0 }
 0xddb   :  { %v2427_v37 = vsel %vm452_vm2, %v6343_v25, -inf }
 0xddc   :  { %v2415_v17 = vpop.f32.mrf.mxu0 }
 0xddd   :  { %v2424_v18 = vsel %vm452_vm2, %v2415_v17, -inf }
 0xde5   :  { %2163 = vrot.lane.b32.xlu1 %v7142_v11, %s6817_s1 }
 0xe09   :  { %2425 = vmax.xlane.f32.xlu1 %v2424_v18 }
 0xe5d   :  { %v2146_v22 = vpop.xlane.xlu1 %2145 }
 0xe5e   :  { %v2148_v24 = vsub.f32 %v6324_v14, %v2146_v22 }
 0xe5f   :  { %v2143_v43 = vpop.xlane.xlu0 %2142 }
 0xe60   :  { %v2151_v21 = vmul.f32 1.442695, %v2148_v24  ;;  %v2147_v26 = vsub.f32 %v2132_v0, %v2143_v43 }
 0xe61   :  { %v2164_v34 = vpop.permute.xlu1 %2163 }
 0xe62   :  { %6672 = vpow2.f32 %v2151_v21  ;;  %v2149_v28 = vmul.f32 1.442695, %v2147_v26 }
 0xe64   :  { %6674 = vpow2.f32 %v2149_v28 }
 0xe6f   :  { %v6673_v30 = vpop.eup %6672 }
 0xe70   :  { %v2156_v31 = vsel %vm452_vm2, %v6673_v30, 0.0 }
 0xe71   :  { %v6675_v32 = vpop.eup %6674  ;;  %2157 = vadd.xlane.f32.xlu0 %v2156_v31  ;;  %v2698_v31 = vld [vmem:[%s7922_s5 + $0x10] sm:$0xff] }
 0xe72   :  { %v2153_v33 = vsel %vm452_vm2, %v6675_v32, 0.0 }
 0xe75   :  { %2154 = vadd.xlane.f32.xlu0 %v2153_v33 }
 0xe8b   :  { %2165 = vrot.lane.b32.xlu0 %v7136_v10, %s6817_s1 }
 0xe92   :  { %v2426_v57 = vpop.xlane.xlu1 %2425 }
 0xe93   :  { %v2430_v35 = vsub.f32 %v2415_v17, %v2426_v57 }
 0xe95   :  { %v2432_v36 = vmul.f32 1.442695, %v2430_v35 }
 0xe97   :  { %6676 = vpow2.f32 %v2432_v36 }
 0xea4   :  { %v6677_v39 = vpop.eup %6676 }
 0xea5   :  { %v2436_v40 = vsel %vm452_vm2, %v6677_v39, 0.0 }
 0xeaa   :  { %2428 = vmax.xlane.f32.xlu0 %v2427_v37 }
 0xeae   :  { %2437 = vadd.xlane.f32.xlu0 %v2436_v40 }
 0xec4   :  { %2448 = vrot.lane.b32.xlu0 %v7136_v10, %s6818_s10 }
 0xee3   :  { %2632 = vadd.xlane.f32.xlu0 %v2631_v47 }
 0xefa   :  { %v2158_v10 = vpop.xlane.xlu0 %2157 }
 0xefb   :  { %6678 = vrcp.f32 %v2158_v10 }
 0xefe   :  { %v2155_v48 = vpop.xlane.xlu0 %2154 }
 0xeff   :  { %6680 = vrcp.f32 %v2155_v48 }
 0xf02   :  { %v2166_v49 = vpop.permute.xlu0 %2165 }
 0xf03   :  { %6325 = vmatprep.subr.mxu1 %v2166_v49 }
 0xf04   :  { %6326 = vmatpush3.msra.mxu1 %v2166_v49  ;;  %v2682_v49 = vsub.s32 5, %v6988_v41 }
 0xf05   :  { %6327 = vmatprep.subr.mxu1 %v2164_v34 }
 0xf06   :  { %6328 = vmatpush3.msra.mxu1 %v2164_v34 }
 0xf07   :  { %6332 = vmatprep.subr.mxu1 %v7210_v13 }
 0xf08   :  { %v6679_v51 = vpop.eup %6678 }
 0xf09   :  { %v2162_v27 = vmul.f32 %v6679_v51, %v6673_v30  ;;  %v2699_v30 = vld [vmem:[%s7922_s5 + $0x18] sm:$0xff] }
 0xf0a   :  { %6356 = vmatprep.subr.mxu0 %v2699_v30 }
 0xf0b   :  { %6357 = vmatpush3.msra.mxu0 %v2699_v30 }
 0xf0c   :  { %v6681_v52 = vpop.eup %6680  ;;  %6358 = vmatprep.subr.mxu0 %v2698_v31 }
 0xf0d   :  { %v2161_v53 = vmul.f32 %v6681_v52, %v6675_v32  ;;  %6359 = vmatpush3.msra.mxu0 %v2698_v31  ;;  %v2696_v32 = vld [vmem:[%s7922_s5] sm:$0xff] }
 0xf0f   :  { %6329 = vmatprep.mubr.msk.f32.mxu1 %vm452_vm2, %v2161_v53 }
 0xf10   :  { %6330 = vmatmul.mubr.msk.f32.vlgmr.msra.gmra.mxu1 %vm452_vm2, %v2162_v27 }
 0xf11   :  { %6333 = vmatpush3.msra.mxu1 %v7210_v13 }
 0xf33   :  { %v2429_v9 = vpop.xlane.xlu0 %2428 }
 0xf34   :  { %v2431_v54 = vsub.f32 %v6343_v25, %v2429_v9 }
 0xf36   :  { %v2434_v55 = vmul.f32 1.442695, %v2431_v54 }
 0xf37   :  { %v2438_v58 = vpop.xlane.xlu0 %2437 }
 0xf38   :  { %6682 = vpow2.f32 %v2434_v55 }
 0xf39   :  { %6684 = vrcp.f32 %v2438_v58 }
 0xf3b   :  { %v2449_v59 = vpop.permute.xlu0 %2448 }
 0xf3c   :  { %6344 = vmatprep.subr.mxu1 %v2449_v59 }
 0xf45   :  { %v6683_v61 = vpop.eup %6682 }
 0xf46   :  { %v2439_v63 = vsel %vm452_vm2, %v6683_v61, 0.0  ;;  %v6685_v0 = vpop.eup %6684 }
 0xf47   :  { %2440 = vadd.xlane.f32.xlu1 %v2439_v63  ;;  %v2444_v5 = vmul.f32 %v6685_v0, %v6677_v39  ;;  %v2812_v63 = vld [vmem:[%s7923_s6 + $0x38] sm:$0xff] }
 0xf58   :  { %2446 = vrot.lane.b32.xlu1 %v7142_v11, %s6818_s10  ;;  %v6317_v11 = vpop.f32.mrf.mxu1 }
 0xf59   :  { %v2047_v35 = vadd.f32 %v6317_v11, %v7309_v8  ;;  %v7384_v8 = vrot.slane %v7330_v45, %v2682_v49 }
 0xf5a   :  { %v2041_v15 = vpop.f32.mrf.mxu1 }
 0xf5b   :  { %v2042_v37 = vadd.f32 %v2041_v15, %v7311_v1  ;;  %v2690_v1 = vsub.s32 6, %v6988_v41 }
 0xf5d   :  { %v7391_v54 = vrot.slane %v7330_v45, %v2690_v1 }
 0xf6c   :  { %v2633_v2 = vpop.xlane.xlu0 %2632 }
 0xf6d   :  { %v2641_v4 = vmul.f32 0.03125, %v2633_v2  ;;  %v2811_v2 = vld [vmem:[%s7923_s6 + $0x30] sm:$0xff] }
 0xf6f   :  { %v7350_v13 = vsub.f32 %v2625_v46, %v2641_v4  ;;  %v2809_v4 = vld [vmem:[%s7923_s6 + $0x20] sm:$0xff] }
 0xf71   :  { %v2649_v7 = vmul.f32 %v7350_v13, %v7350_v13 }
 0xf73   :  { %v2655_v14 = vsel %vm183_vm0, %v2649_v7, 0.0  ;;  %v2805_v7 = vld [vmem:[%s7923_s6] sm:$0xff] }
 0xf7c   :  { %2629 = vadd.xlane.f32.xlu1 %v2628_v6  ;;  %v2806_v6 = vld [vmem:[%s7923_s6 + $0x8] sm:$0xff] }
 0xf80   :  { %2656 = vadd.xlane.f32.xlu1 %v2655_v14 }
 0xfd0   :  { %v6331_v16 = vpop.f32.mrf.mxu1  ;;  %v2441_v29 = vpop.xlane.xlu1 %2440 }
 0xfd1   :  { %6686 = vrcp.f32 %v2441_v29 }
 0xfd2   :  { %v2241_v25 = vpop.f32.mrf.mxu1 }
 0xfd3   :  { %6334 = vmatprep.mubr.msk.f32.mxu1 %vm368_vm1, %v2241_v25 }
 0xfd4   :  { %6335 = vmatmul.mubr.msk.f32.vlgmr.msra.gmra.mxu1 %vm368_vm1, %v6331_v16  ;;  %v2447_v17 = vpop.permute.xlu1 %2446 }
 0xfd5   :  { %6345 = vmatpush3.msra.mxu1 %v2449_v59  ;;  %6348 = vmatprep.mubr.msk.f32.mxu1 %vm452_vm2, %v2444_v5  ;;  %v2702_v5 = vsub.s32 7, %v6988_v41  ;;  %v29_v41 = vld [vmem:[%s7919_s2 + $0x10] sm:$0x7] }
 0xfd6   :  { %6346 = vmatprep.subr.mxu1 %v2447_v17 }
 0xfd7   :  { %6347 = vmatpush3.msra.mxu1 %v2447_v17 }
 0xfd8   :  { %6351 = vmatprep.subr.mxu1 %v7232_v50 }
 0xfde   :  { %v6687_v18 = vpop.eup %6686 }
 0xfdf   :  { %v2445_v22 = vmul.f32 %v6687_v18, %v6683_v61 }
 0xfe1   :  { %6349 = vmatmul.mubr.msk.f32.vlgmr.msra.gmra.mxu1 %vm452_vm2, %v2445_v22 }
 0xfe2   :  { %6352 = vmatpush3.msra.mxu1 %v7232_v50  ;;  %v2697_v50 = vld [vmem:[%s7922_s5 + $0x8] sm:$0xff] }
 0xfe3   :  { %6360 = vmatprep.subr.mxu0 %v2697_v50  ;;  %6370 = vmatprep.subr.mxu1 %v2812_v63 }
 0xfe4   :  { %6361 = vmatpush3.msra.mxu0 %v2697_v50 }
 0xfe5   :  { %6362 = vmatprep.subr.mxu0 %v2696_v32 }
 0xfe6   :  { %6363 = vmatpush3.msra.mxu0 %v2696_v32 }
0x1005   :  { %v2630_v24 = vpop.xlane.xlu1 %2629 }
0x1006   :  { %v2640_v43 = vmul.f32 0.03125, %v2630_v24  ;;  %v7439_v24 = vrot.slane %v7330_v45, %v2702_v5 }
0x1008   :  { %v2644_v21 = vsub.f32 %v2624_v56, %v2640_v43  ;;  %v2807_v56 = vld [vmem:[%s7923_s6 + $0x10] sm:$0xff] }
0x1009   :  { %v2657_v33 = vpop.xlane.xlu1 %2656 }
0x100a   :  { %v2648_v26 = vmul.f32 %v2644_v21, %v2644_v21  ;;  %v2665_v34 = vmul.f32 0.03125, %v2657_v33 }
0x100c   :  { %v2652_v28 = vsel %vm183_vm0, %v2648_v26, 0.0  ;;  %v2669_v57 = vadd.f32 1e-05, %v2665_v34 }
0x100d   :  { %2653 = vadd.xlane.f32.xlu0 %v2652_v28 }
0x100e   :  { %6688 = vrsqrt.f32 %v2669_v57 }
0x101b   :  { %v6689_v51 = vpop.eup %6688 }
0x101c   :  { %v2677_v53 = vmul.f32 %v6689_v51, %v7350_v13  ;;  %v2808_v13 = vld [vmem:[%s7923_s6 + $0x18] sm:$0xff] }
0x101e   :  { %v2685_v55 = vmul.f32 %v7384_v8, %v2677_v53 }
0x1020   :  { %v7399_v61 = vadd.f32 %v7391_v54, %v2685_v55 }
0x1094   :  { %v6336_v36 = vpop.f32.mrf.mxu1 }
0x1095   :  { %v2332_v39 = vadd.f32 %v6336_v36, %v2047_v35  ;;  %v7450_v36 = vld [vmem:[%s7919_s2 + $0x8] sm:$0xff] }
0x1096   :  { %v2322_v40 = vpop.f32.mrf.mxu1  ;;  %v2654_v23 = vpop.xlane.xlu0 %2653 }
0x1097   :  { %v2331_v46 = vadd.f32 %v2322_v40, %v2042_v37  ;;  %v2664_v47 = vmul.f32 0.03125, %v2654_v23  ;;  %v7454_v37 = vrot.slane %v7450_v36, %v6991_v42 }
0x1099   :  { %v2668_v10 = vadd.f32 1e-05, %v2664_v47 }
0x109b   :  { %6690 = vrsqrt.f32 %v2668_v10 }
0x10a1   :  { %v6350_v48 = vpop.f32.mrf.mxu1 }
0x10a3   :  { %v2524_v52 = vpop.f32.mrf.mxu1 }
0x10a4   :  { %6353 = vmatprep.mubr.msk.f32.mxu1 %vm368_vm1, %v2524_v52 }
0x10a5   :  { %6354 = vmatmul.mubr.msk.f32.vlgmr.msra.gmra.mxu1 %vm368_vm1, %v6350_v48 }
0x10a6   :  { %6371 = vmatpush3.msra.mxu1 %v2812_v63 }
0x10a7   :  { %6372 = vmatprep.subr.mxu1 %v2811_v2 }
0x10a8   :  { %v6691_v27 = vpop.eup %6690  ;;  %6373 = vmatpush3.msra.mxu1 %v2811_v2 }
0x10a9   :  { %v2676_v9 = vmul.f32 %v6691_v27, %v2644_v21  ;;  %6374 = vmatprep.subr.mxu1 %v2810_v3 }
0x10aa   :  { %6375 = vmatpush3.msra.mxu1 %v2810_v3 }
0x10ab   :  { %v2684_v58 = vmul.f32 %v7384_v8, %v2676_v9  ;;  %6376 = vmatprep.subr.mxu1 %v2809_v4 }
0x10ac   :  { %6377 = vmatpush3.msra.mxu1 %v2809_v4 }
0x10ad   :  { %v7396_v59 = vadd.f32 %v7391_v54, %v2684_v58  ;;  %6378 = vmatprep.subr.mxu1 %v2808_v13 }
0x10ae   :  { %6379 = vmatpush3.msra.mxu1 %v2808_v13 }
0x10af   :  { %6364 = vmatprep.mubr.msk.f32.mxu0 %vm183_vm0, %v7396_v59  ;;  %6380 = vmatprep.subr.mxu1 %v2807_v56 }
0x10b0   :  { %6365 = vmatmul.mubr.msk.f32.vlgmr.msra.gmra.mxu0 %vm183_vm0, %v7399_v61  ;;  %6381 = vmatpush3.msra.mxu1 %v2807_v56 }
0x10b1   :  { %6382 = vmatprep.subr.mxu1 %v2806_v6 }
0x10b2   :  { %6383 = vmatpush3.msra.mxu1 %v2806_v6 }
0x10b3   :  { %6384 = vmatprep.subr.mxu1 %v2805_v7 }
0x10b4   :  { %6385 = vmatpush3.msra.mxu1 %v2805_v7 }
0x1165   :  { %v6355_v14 = vpop.f32.mrf.mxu1 }
0x1166   :  { %v2615_v11 = vadd.f32 %v6355_v14, %v2332_v39 }
0x1167   :  { %v2605_v15 = vpop.f32.mrf.mxu1 }
0x1168   :  { %v2623_v0 = vadd.f32 %v7335_v38, %v2615_v11  ;;  %v2614_v16 = vadd.f32 %v2605_v15, %v2331_v46 }
0x116a   :  { %v2622_v29 = vadd.f32 %v7335_v38, %v2614_v16  ;;  %v2627_v25 = vadd.f32 %v2623_v0, %v7044_v19 }
0x116c   :  { %v2637_v17 = vsel %vm183_vm0, %v2627_v25, 0.0  ;;  %v2626_v18 = vadd.f32 %v2622_v29, %v7040_v12 }
0x116d   :  { %2638 = vadd.xlane.f32.xlu1 %v2637_v17  ;;  %v5824_v17 = vld [vmem:[%s7920_s3 + $0x30] sm:$0xff] }
0x116e   :  { %v2634_v22 = vsel %vm183_vm0, %v2626_v18, 0.0 }
0x116f   :  { %2635 = vadd.xlane.f32.xlu0 %v2634_v22  ;;  %v5822_v22 = vld [vmem:[%s7920_s3 + $0x20] sm:$0xff] }
0x1170   :  { %v6366_v43 = vpop.f32.mrf.mxu0 }
0x1171   :  { %v2788_v38 = vadd.f32 %v6366_v43, %v7439_v24 }
0x1172   :  { %v2782_v21 = vpop.f32.mrf.mxu0 }
0x1173   :  { %v2783_v19 = vadd.f32 %v2782_v21, %v7439_v24  ;;  %v2802_v28 = vmax.f32 %v2788_v38, 0.0 }
0x1175   :  { %v2801_v26 = vmax.f32 %v2783_v19, 0.0 }
0x1177   :  { %6386 = vmatprep.mubr.msk.f32.mxu1 %vm2817_vm3, %v2801_v26 }
0x1178   :  { %6387 = vmatmul.mubr.msk.f32.vlgmr.msra.gmra.mxu1 %vm2817_vm3, %v2802_v28 }
0x11f6   :  { %v2639_v12 = vpop.xlane.xlu1 %2638 }
0x11f7   :  { %v2643_v30 = vmul.f32 0.03125, %v2639_v12 }
0x11f8   :  { %v2636_v31 = vpop.xlane.xlu0 %2635 }
0x11f9   :  { %v2647_v50 = vsub.f32 %v2627_v25, %v2643_v30  ;;  %v2642_v45 = vmul.f32 0.03125, %v2636_v31 }
0x11fb   :  { %v2646_v32 = vsub.f32 %v2626_v18, %v2642_v45  ;;  %v2651_v33 = vmul.f32 %v2647_v50, %v2647_v50  ;;  %v5823_v18 = vld [vmem:[%s7920_s3 + $0x28] sm:$0xff] }
0x11fd   :  { %v2661_v34 = vsel %vm183_vm0, %v2651_v33, 0.0  ;;  %v2650_v57 = vmul.f32 %v2646_v32, %v2646_v32 }
0x11fe   :  { %2662 = vadd.xlane.f32.xlu1 %v2661_v34  ;;  %v7486_v34 = vrot.slane %v7450_v36, %v7022_v60 }
0x11ff   :  { %v2658_v35 = vsel %vm183_vm0, %v2650_v57, 0.0 }
0x1200   :  { %2659 = vadd.xlane.f32.xlu0 %v2658_v35 }
0x1238   :  { %v6388_v39 = vpop.f32.mrf.mxu1 }
0x1239   :  { %v2902_v40 = vadd.f32 %v6388_v39, %v7454_v37 }
0x123a   :  { %v2896_v23 = vpop.f32.mrf.mxu1 }
0x123b   :  { %v2897_v46 = vadd.f32 %v2896_v23, %v7454_v37  ;;  %v2916_v47 = vadd.f32 %v2902_v40, %v7399_v61  ;;  %v7493_v23 = vrot.slane %v7450_v36, %v7026_v62 }
0x123d   :  { %v2922_v10 = vsel %vm183_vm0, %v2916_v47, 0.0  ;;  %v2915_v48 = vadd.f32 %v2897_v46, %v7396_v59 }
0x123e   :  { %2923 = vadd.xlane.f32.xlu1 %v2922_v10 }
0x123f   :  { %v2919_v51 = vsel %vm183_vm0, %v2915_v48, 0.0 }
0x1240   :  { %2920 = vadd.xlane.f32.xlu0 %v2919_v51 }
0x1287   :  { %v2663_v52 = vpop.xlane.xlu1 %2662 }
0x1288   :  { %v2667_v53 = vmul.f32 0.03125, %v2663_v52 }
0x1289   :  { %v2660_v27 = vpop.xlane.xlu0 %2659 }
0x128a   :  { %v2671_v9 = vadd.f32 1e-05, %v2667_v53  ;;  %v2666_v55 = vmul.f32 0.03125, %v2660_v27 }
0x128c   :  { %6692 = vrsqrt.f32 %v2671_v9  ;;  %v2670_v58 = vadd.f32 1e-05, %v2666_v55 }
0x128e   :  { %6694 = vrsqrt.f32 %v2670_v58 }
0x1299   :  { %v6693_v63 = vpop.eup %6692 }
0x129a   :  { %v2679_v2 = vmul.f32 %v6693_v63, %v2647_v50  ;;  %v7513_v63 = vrot.slane %v7450_v36, %v263_v20 }
0x129b   :  { %v6695_v3 = vpop.eup %6694 }
0x129c   :  { %v2678_v61 = vmul.f32 %v6695_v3, %v2646_v32  ;;  %v2687_v4 = vmul.f32 %v7384_v8, %v2679_v2 }
0x129e   :  { %v2686_v59 = vmul.f32 %v7384_v8, %v2678_v61  ;;  %v2695_v56 = vadd.f32 %v7391_v54, %v2687_v4 }
0x12a0   :  { %v2694_v13 = vadd.f32 %v7391_v54, %v2686_v59  ;;  %v5825_v54 = vld [vmem:[%s7920_s3 + $0x38] sm:$0xff] }
0x12a1   :  { %6392 = vmatprep.subr.mxu0 %v5825_v54 }
0x12a2   :  { %6367 = vmatprep.mubr.msk.f32.mxu0 %vm183_vm0, %v2694_v13  ;;  %6393 = vmatpush3.msra.mxu0 %v5825_v54 }
0x12a3   :  { %6368 = vmatmul.mubr.msk.f32.gmra.mxu0 %vm183_vm0, %v2695_v56  ;;  %6394 = vmatprep.subr.mxu0 %v5824_v17 }
0x12a4   :  { %6395 = vmatpush3.msra.mxu0 %v5824_v17 }
0x12a5   :  { %6396 = vmatprep.subr.mxu0 %v5823_v18 }
0x12a6   :  { %6397 = vmatpush3.msra.mxu0 %v5823_v18 }
0x12a7   :  { %6398 = vmatprep.subr.mxu0 %v5822_v22 }
0x12a8   :  { %6399 = vmatpush3.msra.mxu0 %v5822_v22 }
0x12c7   :  { %v2924_v6 = vpop.xlane.xlu1 %2923 }
0x12c8   :  { %v2932_v7 = vmul.f32 0.03125, %v2924_v6 }
0x12c9   :  { %v2921_v14 = vpop.xlane.xlu0 %2920 }
0x12ca   :  { %v2936_v11 = vsub.f32 %v2916_v47, %v2932_v7  ;;  %v2931_v15 = vmul.f32 0.03125, %v2921_v14 }
0x12cc   :  { %v2935_v0 = vsub.f32 %v2915_v48, %v2931_v15  ;;  %v2940_v16 = vmul.f32 %v2936_v11, %v2936_v11 }
0x12ce   :  { %v2946_v29 = vsel %vm183_vm0, %v2940_v16, 0.0  ;;  %v2939_v25 = vmul.f32 %v2935_v0, %v2935_v0 }
0x12cf   :  { %2947 = vadd.xlane.f32.xlu1 %v2946_v29 }
0x12d0   :  { %v2943_v8 = vsel %vm183_vm0, %v2939_v25, 0.0 }
0x12d1   :  { %2944 = vadd.xlane.f32.xlu0 %v2943_v8 }
0x1358   :  { %v2948_v43 = vpop.xlane.xlu1 %2947 }
0x1359   :  { %v2956_v38 = vmul.f32 0.03125, %v2948_v43 }
0x135a   :  { %v2945_v21 = vpop.xlane.xlu0 %2944 }
0x135b   :  { %v2960_v19 = vadd.f32 1e-05, %v2956_v38  ;;  %v2955_v26 = vmul.f32 0.03125, %v2945_v21 }
0x135d   :  { %6696 = vrsqrt.f32 %v2960_v19  ;;  %v2959_v28 = vadd.f32 1e-05, %v2955_v26 }
0x135f   :  { %6698 = vrsqrt.f32 %v2959_v28 }
0x1363   :  { %v6369_v12 = vpop.f32.mrf.mxu0 }
0x1364   :  { %v2798_v30 = vadd.f32 %v6369_v12, %v7439_v24 }
0x1365   :  { %v2792_v31 = vpop.f32.mrf.mxu0 }
0x1366   :  { %v2793_v50 = vadd.f32 %v2792_v31, %v7439_v24  ;;  %v2804_v32 = vmax.f32 %v2798_v30, 0.0 }
0x1368   :  { %v2803_v45 = vmax.f32 %v2793_v50, 0.0 }
0x136a   :  { %v6697_v33 = vpop.eup %6696  ;;  %6389 = vmatprep.mubr.msk.f32.mxu1 %vm2817_vm3, %v2803_v45 }
0x136b   :  { %v2968_v57 = vmul.f32 %v6697_v33, %v2936_v11  ;;  %6390 = vmatmul.mubr.msk.f32.gmra.mxu1 %vm2817_vm3, %v2804_v32 }
0x136c   :  { %v6699_v35 = vpop.eup %6698 }
0x136d   :  { %v2967_v39 = vmul.f32 %v6699_v35, %v2935_v0  ;;  %v2976_v40 = vmul.f32 %v7486_v34, %v2968_v57 }
0x136f   :  { %v2975_v24 = vmul.f32 %v7486_v34, %v2967_v39  ;;  %v7500_v47 = vadd.f32 %v7493_v23, %v2976_v40 }
0x1371   :  { %v7497_v46 = vadd.f32 %v7493_v23, %v2975_v24 }
0x1373   :  { %6400 = vmatprep.mubr.msk.f32.mxu0 %vm183_vm0, %v7497_v46 }
0x1374   :  { %6401 = vmatmul.mubr.msk.f32.vlgmr.msra.gmra.mxu0 %vm183_vm0, %v7500_v47 }
0x142b   :  { %v6391_v10 = vpop.f32.mrf.mxu1 }
0x142c   :  { %v2912_v48 = vadd.f32 %v6391_v10, %v7454_v37 }
0x142d   :  { %v2906_v51 = vpop.f32.mrf.mxu1 }
0x142e   :  { %v2907_v52 = vadd.f32 %v2906_v51, %v7454_v37  ;;  %v2918_v53 = vadd.f32 %v2912_v48, %v2695_v56 }
0x1430   :  { %v2928_v27 = vsel %vm183_vm0, %v2918_v53, 0.0  ;;  %v2917_v9 = vadd.f32 %v2907_v52, %v2694_v13 }
0x1431   :  { %2929 = vadd.xlane.f32.xlu1 %v2928_v27 }
0x1432   :  { %v2925_v55 = vsel %vm183_vm0, %v2917_v9, 0.0 }
0x1433   :  { %2926 = vadd.xlane.f32.xlu0 %v2925_v55 }
0x1434   :  { %v6402_v58 = vpop.f32.mrf.mxu0 }
0x1435   :  { %v7525_v36 = vadd.f32 %v6402_v58, %v7513_v63 }
0x1436   :  { %v3079_v2 = vpop.f32.mrf.mxu0 }
0x1437   :  { %v7516_v3 = vadd.f32 %v3079_v2, %v7513_v63 }
0x1439   :  { %6410 = vmatprep.mubr.msk.f32.mxu1 %vm368_vm1, %v7516_v3 }
0x14ba   :  { %v2930_v37 = vpop.xlane.xlu1 %2929 }
0x14bb   :  { %v2934_v61 = vmul.f32 0.03125, %v2930_v37 }
0x14bc   :  { %v2927_v4 = vpop.xlane.xlu0 %2926 }
0x14bd   :  { %v2938_v59 = vsub.f32 %v2918_v53, %v2934_v61  ;;  %v2933_v13 = vmul.f32 0.03125, %v2927_v4 }
0x14bf   :  { %v2937_v56 = vsub.f32 %v2917_v9, %v2933_v13  ;;  %v2942_v6 = vmul.f32 %v2938_v59, %v2938_v59 }
0x14c1   :  { %v2952_v7 = vsel %vm183_vm0, %v2942_v6, 0.0  ;;  %v2941_v14 = vmul.f32 %v2937_v56, %v2937_v56 }
0x14c2   :  { %2953 = vadd.xlane.f32.xlu1 %v2952_v7 }
0x14c3   :  { %v2949_v20 = vsel %vm183_vm0, %v2941_v14, 0.0 }
0x14c4   :  { %2950 = vadd.xlane.f32.xlu0 %v2949_v20 }
0x14d3   :  { %3100 = vrot.lane.b32.xlu1 %v7516_v3, %s6808_s20 }
0x14d7   :  { %3302 = vrot.lane.b32.xlu1 %v7525_v36, %s6810_s22 }
0x14da   :  { %3102 = vrot.lane.b32.xlu0 %v7525_v36, %s6808_s20 }
0x14db   :  { %3300 = vrot.lane.b32.xlu1 %v7516_v3, %s6810_s22 }
0x14de   :  { %3296 = vrot.lane.b32.xlu0 %v7516_v3, %s6811_s23 }
0x14df   :  { %3298 = vrot.lane.b32.xlu1 %v7525_v36, %s6811_s23 }
0x154b   :  { %v2954_v11 = vpop.xlane.xlu1 %2953 }
0x154c   :  { %v2958_v15 = vmul.f32 0.03125, %v2954_v11 }
0x154d   :  { %v2951_v0 = vpop.xlane.xlu0 %2950 }
0x154e   :  { %v2962_v16 = vadd.f32 1e-05, %v2958_v15  ;;  %v2957_v29 = vmul.f32 0.03125, %v2951_v0 }
0x154f   :  { %v3101_v25 = vpop.permute.xlu1 %3100 }
0x1550   :  { %6700 = vrsqrt.f32 %v2962_v16  ;;  %v2961_v8 = vadd.f32 1e-05, %v2957_v29 }
0x1551   :  { %v3103_v54 = vpop.permute.xlu0 %3102 }
0x1552   :  { %6702 = vrsqrt.f32 %v2961_v8  ;;  %6406 = vmatprep.subr.msk.mxu1 %vm368_vm1, %v3103_v54 }
0x1553   :  { %v3303_v17 = vpop.permute.xlu1 %3302  ;;  %6407 = vmatpush3.xpose.msk.msra.mxu1 %vm368_vm1, %v3103_v54 }
0x1554   :  { %6408 = vmatprep.subr.msk.mxu1 %vm368_vm1, %v3101_v25  ;;  %6420 = vmatprep.subr.msk.mxu0 %vm368_vm1, %v3303_v17 }
0x1555   :  { %6421 = vmatpush3.xpose.msk.msra.mxu0 %vm368_vm1, %v3303_v17  ;;  %v3297_v30 = vpop.permute.xlu0 %3296 }
0x1557   :  { %v3301_v18 = vpop.permute.xlu1 %3300  ;;  %6409 = vmatpush3.xpose.msk.msra.mxu1 %vm368_vm1, %v3101_v25 }
0x1558   :  { %6422 = vmatprep.subr.msk.mxu0 %vm368_vm1, %v3301_v18 }
0x1559   :  { %6423 = vmatpush3.xpose.msk.msra.mxu0 %vm368_vm1, %v3301_v18 }
0x155a   :  { %6411 = vmatmul.mubr.msk.f32.vlgmr.msra.gmra.mxu1 %vm368_vm1, %v7525_v36 }
0x155b   :  { %v3299_v31 = vpop.permute.xlu1 %3298 }
0x155d   :  { %v6701_v22 = vpop.eup %6700 }
0x155e   :  { %v2970_v43 = vmul.f32 %v6701_v22, %v2938_v59 }
0x155f   :  { %v6703_v38 = vpop.eup %6702 }
0x1560   :  { %v2969_v21 = vmul.f32 %v6703_v38, %v2937_v56  ;;  %v2978_v19 = vmul.f32 %v7486_v34, %v2970_v43 }
0x1562   :  { %v2977_v26 = vmul.f32 %v7486_v34, %v2969_v21  ;;  %v7553_v12 = vadd.f32 %v7493_v23, %v2978_v19  ;;  %v7602_v21 = vld [vmem:[%s7921_s4 + $0x28] sm:$0xff] }
0x1564   :  { %v7550_v28 = vadd.f32 %v7493_v23, %v2977_v26 }
0x1566   :  { %6403 = vmatprep.mubr.msk.f32.mxu0 %vm183_vm0, %v7550_v28 }
0x1567   :  { %6404 = vmatmul.mubr.msk.f32.gmra.mxu0 %vm183_vm0, %v7553_v12 }
0x1568   :  { %6424 = vmatprep.mubr.msk.f32.mxu0 %vm368_vm1, %v3297_v30 }
0x156b   :  { %6425 = vmatmul.mubr.msk.f32.vlgmr.msra.gmra.mxu0 %vm368_vm1, %v3299_v31  ;;  %v7612_v31 = vld [vmem:[%s7921_s4 + $0x20] sm:$0xff] }
0x156c   :  { %6439 = vmatprep.subr.mxu0 %v7612_v31 }
0x156d   :  { %6440 = vmatpush3.msra.mxu0 %v7612_v31 }
0x161a   :  { %v6412_v50 = vpop.f32.mrf.mxu1 }
0x161b   :  { %v3190_v45 = vsel %vm452_vm2, %v6412_v50, -inf }
0x161c   :  { %3191 = vmax.xlane.f32.xlu1 %v3190_v45  ;;  %v3178_v32 = vpop.f32.mrf.mxu1 }
0x161d   :  { %v3187_v33 = vsel %vm452_vm2, %v3178_v32, -inf }
0x161e   :  { %3188 = vmax.xlane.f32.xlu0 %v3187_v33 }
0x1627   :  { %v7563_v34 = vpop.f32.mrf.mxu0 }
0x1629   :  { %v7565_v57 = vpop.f32.mrf.mxu0 }
0x162b   :  { %v6426_v35 = vpop.f32.mrf.mxu0 }
0x162c   :  { %v3390_v23 = vsel %vm452_vm2, %v6426_v35, -inf }
0x162d   :  { %v3378_v39 = vpop.f32.mrf.mxu0 }
0x162e   :  { %v3387_v40 = vsel %vm452_vm2, %v3378_v39, -inf }
0x162f   :  { %3388 = vmax.xlane.f32.xlu0 %v3387_v40 }
0x1633   :  { %3391 = vmax.xlane.f32.xlu0 %v3390_v23 }
0x16a5   :  { %v3192_v24 = vpop.xlane.xlu1 %3191 }
0x16a6   :  { %v3194_v10 = vsub.f32 %v6412_v50, %v3192_v24 }
0x16a7   :  { %v3189_v48 = vpop.xlane.xlu0 %3188 }
0x16a8   :  { %v3197_v51 = vmul.f32 1.442695, %v3194_v10  ;;  %v3193_v52 = vsub.f32 %v3178_v32, %v3189_v48  ;;  %v7632_v48 = vadd.f32 %v7565_v57, %v7513_v63 }
0x16aa   :  { %6704 = vpow2.f32 %v3197_v51  ;;  %v3195_v53 = vmul.f32 1.442695, %v3193_v52 }
0x16ac   :  { %6706 = vpow2.f32 %v3195_v53 }
0x16b7   :  { %v6705_v27 = vpop.eup %6704 }
0x16b8   :  { %v3389_v9 = vpop.xlane.xlu0 %3388  ;;  %v3202_v55 = vsel %vm452_vm2, %v6705_v27, 0.0 }
0x16b9   :  { %v6707_v58 = vpop.eup %6706  ;;  %v3393_v2 = vsub.f32 %v3378_v39, %v3389_v9  ;;  %3203 = vadd.xlane.f32.xlu1 %v3202_v55 }
0x16ba   :  { %v3199_v37 = vsel %vm452_vm2, %v6707_v58, 0.0 }
0x16bb   :  { %v3395_v61 = vmul.f32 1.442695, %v3393_v2  ;;  %3200 = vadd.xlane.f32.xlu0 %v3199_v37  ;;  %v7647_v37 = vadd.f32 %v7563_v34, %v7513_v63 }
0x16bc   :  { %v3392_v4 = vpop.xlane.xlu0 %3391 }
0x16bd   :  { %6708 = vpow2.f32 %v3395_v61  ;;  %v3394_v59 = vsub.f32 %v6426_v35, %v3392_v4 }
0x16bf   :  { %v3397_v13 = vmul.f32 1.442695, %v3394_v59 }
0x16c1   :  { %6710 = vpow2.f32 %v3397_v13 }
0x16ca   :  { %v6709_v56 = vpop.eup %6708 }
0x16cb   :  { %v3399_v6 = vsel %vm452_vm2, %v6709_v56, 0.0 }
0x16cc   :  { %3400 = vadd.xlane.f32.xlu0 %v3399_v6 }
0x16ce   :  { %v6711_v7 = vpop.eup %6710 }
0x16cf   :  { %v3402_v14 = vsel %vm452_vm2, %v6711_v7, 0.0 }
0x16d0   :  { %3403 = vadd.xlane.f32.xlu1 %v3402_v14 }
0x16e1   :  { %3209 = vrot.lane.b32.xlu1 %v7516_v3, %s6809_s21 }
0x16e2   :  { %3211 = vrot.lane.b32.xlu0 %v7525_v36, %s6809_s21 }
0x16e5   :  { %3411 = vrot.lane.b32.xlu1 %v7525_v36, %s6814_s26 }
0x16e6   :  { %3664 = vrot.lane.b32.xlu0 %v7525_v36, %s6812_s24 }
0x16e9   :  { %3409 = vrot.lane.b32.xlu1 %v7516_v3, %s6814_s26 }
0x16ea   :  { %3658 = vrot.lane.b32.xlu0 %v7516_v3, %s6813_s25 }
0x16ed   :  { %3662 = vrot.lane.b32.xlu1 %v7516_v3, %s6812_s24 }
0x16ee   :  { %3947 = vrot.lane.b32.xlu0 %v7525_v36, %s6815_s27 }
0x16f1   :  { %3660 = vrot.lane.b32.xlu1 %v7525_v36, %s6813_s25 }
0x16f2   :  { %3941 = vrot.lane.b32.xlu0 %v7516_v3, %s6816_s28 }
0x16f5   :  { %3945 = vrot.lane.b32.xlu1 %v7516_v3, %s6815_s27 }
0x16f9   :  { %3943 = vrot.lane.b32.xlu1 %v7525_v36, %s6816_s28 }
0x1742   :  { %v3204_v11 = vpop.xlane.xlu1 %3203 }
0x1744   :  { %v3201_v20 = vpop.xlane.xlu0 %3200 }
0x1745   :  { %6712 = vrcp.f32 %v3201_v20 }
0x1746   :  { %6714 = vrcp.f32 %v3204_v11 }
0x1752   :  { %v6713_v15 = vpop.eup %6712 }
0x1753   :  { %v3207_v0 = vmul.f32 %v6713_v15, %v6707_v58  ;;  %v6715_v8 = vpop.eup %6714 }
0x1754   :  { %v3208_v17 = vmul.f32 %v6715_v8, %v6705_v27 }
0x1755   :  { %6417 = vmatprep.mubr.msk.f32.mxu1 %vm452_vm2, %v3207_v0  ;;  %v3401_v16 = vpop.xlane.xlu0 %3400 }
0x1756   :  { %6716 = vrcp.f32 %v3401_v16 }
0x1759   :  { %v3404_v29 = vpop.xlane.xlu1 %3403  ;;  %v3212_v25 = vpop.permute.xlu0 %3211 }
0x175a   :  { %6718 = vrcp.f32 %v3404_v29  ;;  %6413 = vmatprep.subr.mxu1 %v3212_v25 }
0x175b   :  { %6414 = vmatpush3.msra.mxu1 %v3212_v25 }
0x175d   :  { %v3210_v54 = vpop.permute.xlu1 %3209  ;;  %v3665_v30 = vpop.permute.xlu0 %3664 }
0x175e   :  { %6415 = vmatprep.subr.mxu1 %v3210_v54 }
0x175f   :  { %6416 = vmatpush3.msra.mxu1 %v3210_v54 }
0x1760   :  { %6418 = vmatmul.mubr.msk.f32.vlgmr.msra.gmra.mxu1 %vm452_vm2, %v3208_v17 }
0x1761   :  { %v3412_v18 = vpop.permute.xlu1 %3411  ;;  %v3659_v32 = vpop.permute.xlu0 %3658 }
0x1762   :  { %6427 = vmatprep.subr.mxu1 %v3412_v18 }
0x1763   :  { %v6717_v22 = vpop.eup %6716  ;;  %6428 = vmatpush3.msra.mxu1 %v3412_v18 }
0x1764   :  { %v3407_v43 = vmul.f32 %v6717_v22, %v6709_v56 }
0x1765   :  { %v3410_v38 = vpop.permute.xlu1 %3409  ;;  %v3948_v40 = vpop.permute.xlu0 %3947 }
0x1766   :  { %6429 = vmatprep.subr.mxu1 %v3410_v38  ;;  %6431 = vmatprep.mubr.msk.f32.mxu1 %vm452_vm2, %v3407_v43 }
0x1767   :  { %v6719_v19 = vpop.eup %6718  ;;  %6430 = vmatpush3.msra.mxu1 %v3410_v38 }
0x1768   :  { %6434 = vmatprep.subr.mxu1 %v7602_v21  ;;  %v3408_v26 = vmul.f32 %v6719_v19, %v6711_v7 }
0x1769   :  { %v3663_v35 = vpop.permute.xlu1 %3662  ;;  %v3942_v24 = vpop.permute.xlu0 %3941 }
0x176a   :  { %6432 = vmatmul.mubr.msk.f32.vlgmr.msra.gmra.mxu1 %vm452_vm2, %v3408_v26 }
0x176b   :  { %6435 = vmatpush3.msra.mxu1 %v7602_v21 }
0x176c   :  { %6444 = vmatprep.subr.msk.mxu1 %vm368_vm1, %v3665_v30 }
0x176d   :  { %v3661_v23 = vpop.permute.xlu1 %3660 }
0x1771   :  { %v3946_v10 = vpop.permute.xlu1 %3945 }
0x1775   :  { %v3944_v51 = vpop.permute.xlu1 %3943 }
0x1820   :  { %v6419_v50 = vpop.f32.mrf.mxu1 }
0x1822   :  { %v3287_v45 = vpop.f32.mrf.mxu1 }
0x1823   :  { %6441 = vmatprep.mubr.msk.f32.mxu0 %vm368_vm1, %v3287_v45 }
0x1824   :  { %6442 = vmatmul.mubr.msk.f32.vlgmr.msra.gmra.mxu0 %vm368_vm1, %v6419_v50 }
0x182a   :  { %v6433_v33 = vpop.f32.mrf.mxu1 }
0x182c   :  { %v3487_v39 = vpop.f32.mrf.mxu1 }
0x182d   :  { %6436 = vmatprep.mubr.msk.f32.mxu1 %vm368_vm1, %v3487_v39 }
0x182e   :  { %6437 = vmatmul.mubr.msk.f32.vlgmr.msra.gmra.mxu1 %vm368_vm1, %v6433_v33 }
0x182f   :  { %6445 = vmatpush3.xpose.msk.msra.mxu1 %vm368_vm1, %v3665_v30  ;;  %6448 = vmatprep.mubr.msk.f32.mxu1 %vm368_vm1, %v3659_v32 }
0x1830   :  { %6446 = vmatprep.subr.msk.mxu1 %vm368_vm1, %v3663_v35 }
0x1833   :  { %6447 = vmatpush3.xpose.msk.msra.mxu1 %vm368_vm1, %v3663_v35 }
0x1834   :  { %6463 = vmatprep.subr.msk.mxu1 %vm368_vm1, %v3948_v40 }
0x1836   :  { %6449 = vmatmul.mubr.msk.f32.vlgmr.msra.gmra.mxu1 %vm368_vm1, %v3661_v23 }
0x1837   :  { %6464 = vmatpush3.xpose.msk.msra.mxu1 %vm368_vm1, %v3948_v40  ;;  %6467 = vmatprep.mubr.msk.f32.mxu1 %vm368_vm1, %v3942_v24 }
0x1838   :  { %6465 = vmatprep.subr.msk.mxu1 %vm368_vm1, %v3946_v10 }
0x183b   :  { %6466 = vmatpush3.xpose.msk.msra.mxu1 %vm368_vm1, %v3946_v10  ;;  %v7675_v10 = vld [vmem:[%s7921_s4 + $0x30] sm:$0xff] }
0x183e   :  { %6468 = vmatmul.mubr.msk.f32.vlgmr.msra.gmra.mxu1 %vm368_vm1, %v3944_v51 }
0x183f   :  { %6486 = vmatprep.mubr.msk.f32.mxu1 %vm368_vm1, %v7632_v48 }
0x18e4   :  { %v6443_v52 = vpop.f32.mrf.mxu0 }
0x18ee   :  { %v6438_v53 = vpop.f32.mrf.mxu1 }
0x18ef   :  { %v7637_v27 = vadd.f32 %v6443_v52, %v6438_v53 }
0x18f0   :  { %v7639_v9 = vpop.f32.mrf.mxu1 }
0x18f6   :  { %v6450_v55 = vpop.f32.mrf.mxu1 }
0x18f7   :  { %v3752_v58 = vsel %vm452_vm2, %v6450_v55, -inf }
0x18f8   :  { %3753 = vmax.xlane.f32.xlu1 %v3752_v58  ;;  %v3740_v2 = vpop.f32.mrf.mxu1 }
0x18f9   :  { %v3749_v57 = vsel %vm452_vm2, %v3740_v2, -inf }
0x18fa   :  { %3750 = vmax.xlane.f32.xlu0 %v3749_v57 }
0x18fe   :  { %v6469_v61 = vpop.f32.mrf.mxu1 }
0x18ff   :  { %v4035_v4 = vsel %vm452_vm2, %v6469_v61, -inf }
0x1900   :  { %v4023_v8 = vpop.f32.mrf.mxu1 }
0x1901   :  { %v4032_v54 = vsel %vm452_vm2, %v4023_v8, -inf }
0x1909   :  { %3771 = vrot.lane.b32.xlu1 %v7516_v3, %s6817_s1 }
0x190d   :  { %4228 = vrot.lane.b32.xlu1 %v7647_v37, %s6808_s20 }
0x1911   :  { %4226 = vrot.lane.b32.xlu1 %v7632_v48, %s6808_s20 }
0x1935   :  { %4036 = vmax.xlane.f32.xlu1 %v4035_v4 }
0x1946   :  { %4054 = vrot.lane.b32.xlu1 %v7516_v3, %s6818_s10 }
0x1981   :  { %v3754_v59 = vpop.xlane.xlu1 %3753 }
0x1982   :  { %v3756_v13 = vsub.f32 %v6450_v55, %v3754_v59 }
0x1983   :  { %v3751_v56 = vpop.xlane.xlu0 %3750 }
0x1984   :  { %v3759_v6 = vmul.f32 1.442695, %v3756_v13  ;;  %v3755_v7 = vsub.f32 %v3740_v2, %v3751_v56 }
0x1985   :  { %v3772_v63 = vpop.permute.xlu1 %3771 }
0x1986   :  { %6720 = vpow2.f32 %v3759_v6  ;;  %v3757_v34 = vmul.f32 1.442695, %v3755_v7  ;;  %v7688_v6 = vld [vmem:[%s7921_s4 + $0x38] sm:$0xff] }
0x1988   :  { %6722 = vpow2.f32 %v3757_v34 }
0x1989   :  { %v4229_v14 = vpop.permute.xlu1 %4228 }
0x198a   :  { %6482 = vmatprep.subr.msk.mxu1 %vm368_vm1, %v4229_v14 }
0x198b   :  { %6483 = vmatpush3.xpose.msk.msra.mxu1 %vm368_vm1, %v4229_v14 }
0x198d   :  { %v4227_v20 = vpop.permute.xlu1 %4226 }
0x198e   :  { %6484 = vmatprep.subr.msk.mxu1 %vm368_vm1, %v4227_v20 }
0x198f   :  { %6485 = vmatpush3.xpose.msk.msra.mxu1 %vm368_vm1, %v4227_v20 }
0x1992   :  { %6487 = vmatmul.mubr.msk.f32.vlgmr.msra.gmra.mxu1 %vm368_vm1, %v7647_v37 }
0x1993   :  { %v6721_v3 = vpop.eup %6720 }
0x1994   :  { %v3764_v11 = vsel %vm452_vm2, %v6721_v3, 0.0 }
0x1995   :  { %v6723_v15 = vpop.eup %6722  ;;  %3765 = vadd.xlane.f32.xlu0 %v3764_v11 }
0x1996   :  { %v3761_v0 = vsel %vm452_vm2, %v6723_v15, 0.0 }
0x1999   :  { %3762 = vadd.xlane.f32.xlu0 %v3761_v0 }
0x19af   :  { %3773 = vrot.lane.b32.xlu0 %v7525_v36, %s6817_s1 }
0x19be   :  { %v4037_v16 = vpop.xlane.xlu1 %4036 }
0x19bf   :  { %v4039_v29 = vsub.f32 %v6469_v61, %v4037_v16  ;;  %v3649_v61 = vpop.f32.mrf.mxu0 }
0x19c1   :  { %v4042_v25 = vmul.f32 1.442695, %v4039_v29 }
0x19c2   :  { %v4055_v52 = vpop.permute.xlu1 %4054 }
0x19c3   :  { %6724 = vpow2.f32 %v4042_v25 }
0x19ce   :  { %4033 = vmax.xlane.f32.xlu0 %v4032_v54 }
0x19d0   :  { %v6725_v17 = vpop.eup %6724 }
0x19d1   :  { %v4047_v18 = vsel %vm452_vm2, %v6725_v17, 0.0 }
0x19d2   :  { %4048 = vadd.xlane.f32.xlu0 %v4047_v18 }
0x1a1e   :  { %v3766_v22 = vpop.xlane.xlu0 %3765 }
0x1a1f   :  { %6726 = vrcp.f32 %v3766_v22 }
0x1a22   :  { %v3763_v43 = vpop.xlane.xlu0 %3762 }
0x1a23   :  { %6728 = vrcp.f32 %v3763_v43 }
0x1a26   :  { %v3774_v38 = vpop.permute.xlu0 %3773 }
0x1a27   :  { %6451 = vmatprep.subr.mxu0 %v3774_v38 }
0x1a28   :  { %6452 = vmatpush3.msra.mxu0 %v3774_v38 }
0x1a29   :  { %6453 = vmatprep.subr.mxu0 %v3772_v63 }
0x1a2a   :  { %6454 = vmatpush3.msra.mxu0 %v3772_v63 }
0x1a2b   :  { %6458 = vmatprep.subr.mxu0 %v7675_v10 }
0x1a2c   :  { %v6727_v19 = vpop.eup %6726 }
0x1a2d   :  { %v3770_v50 = vmul.f32 %v6727_v19, %v6721_v3 }
0x1a30   :  { %v6729_v26 = vpop.eup %6728 }
0x1a31   :  { %v3769_v30 = vmul.f32 %v6729_v26, %v6723_v15 }
0x1a33   :  { %6455 = vmatprep.mubr.msk.f32.mxu0 %vm452_vm2, %v3769_v30 }
0x1a34   :  { %6456 = vmatmul.mubr.msk.f32.vlgmr.msra.gmra.mxu0 %vm452_vm2, %v3770_v50 }
0x1a35   :  { %6459 = vmatpush3.msra.mxu0 %v7675_v10 }
0x1a52   :  { %v6488_v45 = vpop.f32.mrf.mxu1 }
0x1a53   :  { %v4316_v51 = vsel %vm452_vm2, %v6488_v45, -inf }
0x1a54   :  { %v4304_v32 = vpop.f32.mrf.mxu1 }
0x1a55   :  { %v4313_v33 = vsel %vm452_vm2, %v4304_v32, -inf }
0x1a56   :  { %4314 = vmax.xlane.f32.xlu1 %v4313_v33 }
0x1a57   :  { %v4034_v35 = vpop.xlane.xlu0 %4033 }
0x1a58   :  { %v4038_v39 = vsub.f32 %v4023_v8, %v4034_v35  ;;  %v3650_v8 = vadd.f32 %v3649_v61, %v7639_v9 }
0x1a5a   :  { %v4040_v40 = vmul.f32 1.442695, %v4038_v39 }
0x1a5b   :  { %v4049_v2 = vpop.xlane.xlu0 %4048 }
0x1a5c   :  { %6730 = vpow2.f32 %v4040_v40 }
0x1a69   :  { %v6731_v23 = vpop.eup %6730 }
0x1a6a   :  { %v4044_v24 = vsel %vm452_vm2, %v6731_v23, 0.0 }
0x1a6b   :  { %4045 = vadd.xlane.f32.xlu0 %v4044_v24 }
0x1a81   :  { %4056 = vrot.lane.b32.xlu0 %v7525_v36, %s6818_s10 }
0x1aa0   :  { %4317 = vmax.xlane.f32.xlu0 %v4316_v51 }
0x1adf   :  { %v4315_v53 = vpop.xlane.xlu1 %4314 }
0x1ae0   :  { %v4319_v55 = vsub.f32 %v4304_v32, %v4315_v53 }
0x1ae2   :  { %v4321_v58 = vmul.f32 1.442695, %v4319_v55 }
0x1ae4   :  { %6732 = vpow2.f32 %v4321_v58 }
0x1ae5   :  { %6734 = vrcp.f32 %v4049_v2 }
0x1af1   :  { %v6733_v57 = vpop.eup %6732 }
0x1af2   :  { %v4325_v4 = vsel %vm452_vm2, %v6733_v57, 0.0  ;;  %v6735_v7 = vpop.eup %6734 }
0x1af3   :  { %4326 = vadd.xlane.f32.xlu0 %v4325_v4  ;;  %v4053_v14 = vmul.f32 %v6735_v7, %v6725_v17 }
0x1af4   :  { %v6457_v59 = vpop.f32.mrf.mxu0  ;;  %v4046_v13 = vpop.xlane.xlu0 %4045 }
0x1af5   :  { %6736 = vrcp.f32 %v4046_v13 }
0x1af6   :  { %v3849_v56 = vpop.f32.mrf.mxu0 }
0x1af7   :  { %6460 = vmatprep.mubr.msk.f32.mxu0 %vm368_vm1, %v3849_v56 }
0x1af8   :  { %6461 = vmatmul.mubr.msk.f32.vlgmr.msra.gmra.mxu0 %vm368_vm1, %v6457_v59  ;;  %v4057_v36 = vpop.permute.xlu0 %4056 }
0x1af9   :  { %6470 = vmatprep.subr.mxu0 %v4057_v36 }
0x1afa   :  { %6471 = vmatpush3.msra.mxu0 %v4057_v36 }
0x1afb   :  { %6472 = vmatprep.subr.mxu0 %v4055_v52 }
0x1afc   :  { %6473 = vmatpush3.msra.mxu0 %v4055_v52 }
0x1afd   :  { %6477 = vmatprep.subr.mxu0 %v7688_v6 }
0x1b02   :  { %v6737_v63 = vpop.eup %6736 }
0x1b03   :  { %v4052_v34 = vmul.f32 %v6737_v63, %v6731_v23 }
0x1b05   :  { %6474 = vmatprep.mubr.msk.f32.mxu0 %vm452_vm2, %v4052_v34 }
0x1b06   :  { %6475 = vmatmul.mubr.msk.f32.vlgmr.msra.gmra.mxu0 %vm452_vm2, %v4053_v14 }
0x1b07   :  { %6478 = vmatpush3.msra.mxu0 %v7688_v6 }
0x1b09   :  { %4337 = vrot.lane.b32.xlu0 %v7647_v37, %s6809_s21 }
0x1b0d   :  { %4422 = vrot.lane.b32.xlu0 %v7632_v48, %s6811_s23 }
0x1b29   :  { %v4318_v20 = vpop.xlane.xlu0 %4317 }
0x1b2a   :  { %v4320_v3 = vsub.f32 %v6488_v45, %v4318_v20 }
0x1b2c   :  { %v4323_v11 = vmul.f32 1.442695, %v4320_v3 }
0x1b2e   :  { %6738 = vpow2.f32 %v4323_v11 }
0x1b3b   :  { %v6739_v15 = vpop.eup %6738 }
0x1b3c   :  { %v4328_v0 = vsel %vm452_vm2, %v6739_v15, 0.0 }
0x1b3d   :  { %4329 = vadd.xlane.f32.xlu1 %v4328_v0 }
0x1b4e   :  { %4335 = vrot.lane.b32.xlu1 %v7632_v48, %s6809_s21 }
0x1b52   :  { %4428 = vrot.lane.b32.xlu1 %v7647_v37, %s6810_s22 }
0x1b56   :  { %4426 = vrot.lane.b32.xlu1 %v7632_v48, %s6810_s22 }
0x1b5a   :  { %4424 = vrot.lane.b32.xlu1 %v7647_v37, %s6811_s23 }
0x1b7c   :  { %v4327_v16 = vpop.xlane.xlu0 %4326 }
0x1b7d   :  { %6740 = vrcp.f32 %v4327_v16 }
0x1b80   :  { %v4338_v29 = vpop.permute.xlu0 %4337 }
0x1b81   :  { %6489 = vmatprep.subr.mxu0 %v4338_v29 }
0x1b84   :  { %v4423_v45 = vpop.permute.xlu0 %4422 }
0x1b8a   :  { %v6741_v22 = vpop.eup %6740 }
0x1b8b   :  { %v4333_v26 = vmul.f32 %v6741_v22, %v6733_v57 }
0x1bb8   :  { %v6462_v25 = vpop.f32.mrf.mxu0 }
0x1bb9   :  { %v3940_v54 = vadd.f32 %v6462_v25, %v7637_v27 }
0x1bba   :  { %v3930_v17 = vpop.f32.mrf.mxu0 }
0x1bbb   :  { %v3939_v18 = vadd.f32 %v3930_v17, %v3650_v8 }
0x1bc6   :  { %v6476_v43 = vpop.f32.mrf.mxu0  ;;  %v4330_v38 = vpop.xlane.xlu1 %4329 }
0x1bc7   :  { %6742 = vrcp.f32 %v4330_v38 }
0x1bc8   :  { %v4132_v19 = vpop.f32.mrf.mxu0 }
0x1bc9   :  { %6479 = vmatprep.mubr.msk.f32.mxu0 %vm368_vm1, %v4132_v19 }
0x1bca   :  { %6480 = vmatmul.mubr.msk.f32.vlgmr.msra.gmra.mxu0 %vm368_vm1, %v6476_v43  ;;  %v4336_v30 = vpop.permute.xlu1 %4335 }
0x1bcb   :  { %6490 = vmatpush3.msra.mxu0 %v4338_v29  ;;  %6493 = vmatprep.mubr.msk.f32.mxu0 %vm452_vm2, %v4333_v26 }
0x1bcc   :  { %6491 = vmatprep.subr.mxu0 %v4336_v30 }
0x1bcd   :  { %6492 = vmatpush3.msra.mxu0 %v4336_v30 }
0x1bce   :  { %v4429_v9 = vpop.permute.xlu1 %4428 }
0x1bcf   :  { %6496 = vmatprep.subr.msk.mxu0 %vm368_vm1, %v4429_v9 }
0x1bd2   :  { %v4427_v32 = vpop.permute.xlu1 %4426 }
0x1bd4   :  { %v6743_v27 = vpop.eup %6742 }
0x1bd5   :  { %v4334_v50 = vmul.f32 %v6743_v27, %v6739_v15 }
0x1bd6   :  { %v4425_v33 = vpop.permute.xlu1 %4424 }
0x1bd7   :  { %6494 = vmatmul.mubr.msk.f32.vlgmr.msra.gmra.mxu0 %vm452_vm2, %v4334_v50 }
0x1bd8   :  { %6497 = vmatpush3.xpose.msk.msra.mxu0 %vm368_vm1, %v4429_v9  ;;  %6500 = vmatprep.mubr.msk.f32.mxu0 %vm368_vm1, %v4423_v45 }
0x1bd9   :  { %6498 = vmatprep.subr.msk.mxu0 %vm368_vm1, %v4427_v32 }
0x1bdc   :  { %6499 = vmatpush3.xpose.msk.msra.mxu0 %vm368_vm1, %v4427_v32 }
0x1bdd   :  { %6515 = vmatprep.subr.mxu0 %v7612_v31 }
0x1bdf   :  { %6501 = vmatmul.mubr.msk.f32.vlgmr.msra.gmra.mxu0 %vm368_vm1, %v4425_v33 }
0x1be0   :  { %6516 = vmatpush3.msra.mxu0 %v7612_v31 }
0x1c8a   :  { %v6481_v35 = vpop.f32.mrf.mxu0 }
0x1c8b   :  { %v7721_v39 = vadd.f32 %v6481_v35, %v3940_v54 }
0x1c8c   :  { %v4213_v40 = vpop.f32.mrf.mxu0 }
0x1c8d   :  { %v7723_v23 = vadd.f32 %v4213_v40, %v3939_v18 }
0x1c97   :  { %v6495_v24 = vpop.f32.mrf.mxu0 }
0x1c99   :  { %v4413_v51 = vpop.f32.mrf.mxu0 }
0x1c9a   :  { %6517 = vmatprep.mubr.msk.f32.mxu0 %vm368_vm1, %v4413_v51 }
0x1c9b   :  { %6518 = vmatmul.mubr.msk.f32.vlgmr.msra.gmra.mxu0 %vm368_vm1, %v6495_v24 }
0x1c9f   :  { %v6502_v52 = vpop.f32.mrf.mxu0 }
0x1ca0   :  { %v4516_v53 = vsel %vm452_vm2, %v6502_v52, -inf }
0x1ca1   :  { %4517 = vmax.xlane.f32.xlu1 %v4516_v53  ;;  %v4504_v55 = vpop.f32.mrf.mxu0 }
0x1ca2   :  { %v4513_v58 = vsel %vm452_vm2, %v4504_v55, -inf }
0x1ca3   :  { %4514 = vmax.xlane.f32.xlu0 %v4513_v58 }
0x1cb2   :  { %4535 = vrot.lane.b32.xlu1 %v7632_v48, %s6814_s26 }
0x1cb6   :  { %4790 = vrot.lane.b32.xlu1 %v7647_v37, %s6812_s24 }
0x1cba   :  { %4788 = vrot.lane.b32.xlu1 %v7632_v48, %s6812_s24 }
0x1cbe   :  { %4786 = vrot.lane.b32.xlu1 %v7647_v37, %s6813_s25 }
0x1cc2   :  { %5071 = vrot.lane.b32.xlu1 %v7632_v48, %s6815_s27 }
0x1cc6   :  { %5069 = vrot.lane.b32.xlu1 %v7647_v37, %s6816_s28 }
0x1d2a   :  { %v4518_v31 = vpop.xlane.xlu1 %4517 }
0x1d2b   :  { %v4520_v2 = vsub.f32 %v6502_v52, %v4518_v31 }
0x1d2c   :  { %v4515_v57 = vpop.xlane.xlu0 %4514 }
0x1d2d   :  { %v4523_v61 = vmul.f32 1.442695, %v4520_v2  ;;  %v4519_v4 = vsub.f32 %v4504_v55, %v4515_v57 }
0x1d2e   :  { %v4536_v20 = vpop.permute.xlu1 %4535 }
0x1d2f   :  { %6744 = vpow2.f32 %v4523_v61  ;;  %v4521_v59 = vmul.f32 1.442695, %v4519_v4 }
0x1d31   :  { %6746 = vpow2.f32 %v4521_v59 }
0x1d32   :  { %v4791_v16 = vpop.permute.xlu1 %4790 }
0x1d36   :  { %v4789_v8 = vpop.permute.xlu1 %4788 }
0x1d3a   :  { %v4787_v18 = vpop.permute.xlu1 %4786 }
0x1d3c   :  { %v6745_v13 = vpop.eup %6744 }
0x1d3d   :  { %v4528_v56 = vsel %vm452_vm2, %v6745_v13, 0.0 }
0x1d3e   :  { %v6747_v36 = vpop.eup %6746  ;;  %4529 = vadd.xlane.f32.xlu0 %v4528_v56  ;;  %v5072_v22 = vpop.permute.xlu1 %5071 }
0x1d3f   :  { %v4525_v7 = vsel %vm452_vm2, %v6747_v36, 0.0 }
0x1d42   :  { %4526 = vadd.xlane.f32.xlu0 %v4525_v7  ;;  %v5070_v43 = vpop.permute.xlu1 %5069 }
0x1d58   :  { %4537 = vrot.lane.b32.xlu0 %v7647_v37, %s6814_s26 }
0x1d5c   :  { %4784 = vrot.lane.b32.xlu0 %v7632_v48, %s6813_s25 }
0x1d60   :  { %5073 = vrot.lane.b32.xlu0 %v7647_v37, %s6815_s27 }
0x1d64   :  { %5067 = vrot.lane.b32.xlu0 %v7632_v48, %s6816_s28 }
0x1dc7   :  { %v4530_v63 = vpop.xlane.xlu0 %4529 }
0x1dc8   :  { %6748 = vrcp.f32 %v4530_v63 }
0x1dcb   :  { %v4527_v34 = vpop.xlane.xlu0 %4526 }
0x1dcc   :  { %6750 = vrcp.f32 %v4527_v34 }
0x1dcf   :  { %v4538_v14 = vpop.permute.xlu0 %4537 }
0x1dd0   :  { %6503 = vmatprep.subr.mxu1 %v4538_v14 }
0x1dd1   :  { %6504 = vmatpush3.msra.mxu1 %v4538_v14 }
0x1dd2   :  { %6505 = vmatprep.subr.mxu1 %v4536_v20 }
0x1dd3   :  { %6506 = vmatpush3.msra.mxu1 %v4536_v20  ;;  %v4785_v29 = vpop.permute.xlu0 %4784 }
0x1dd4   :  { %6510 = vmatprep.subr.mxu1 %v7602_v21 }
0x1dd5   :  { %v6749_v3 = vpop.eup %6748 }
0x1dd6   :  { %v4534_v0 = vmul.f32 %v6749_v3, %v6745_v13 }
0x1dd7   :  { %v5074_v17 = vpop.permute.xlu0 %5073 }
0x1dd9   :  { %v6751_v11 = vpop.eup %6750 }
0x1dda   :  { %v4533_v15 = vmul.f32 %v6751_v11, %v6747_v36  ;;  %v7789_v36 = vld [vmem:[%s7919_s2 + $0x8] sm:$0xff]  ;;  %s6819_s2 = smov [#allocation2]  }
0x1ddb   :  { %v7794_v7 = vrot.slane %v7789_v36, %v2618_v44  ;;  %s5731_s13 = sshll.u32 %s6819_s2, 4  ;;  %s5732_s13 = int_to_ptr.vmem [resolvable:$true] %s5731_s13 }
0x1ddc   :  { %6507 = vmatprep.mubr.msk.f32.mxu1 %vm452_vm2, %v4533_v15  ;;  %s6786_s4 = scalar_lea.vmem %s5732_s13, 512  ;;  %p6791_p1 = scmp.lt.s32.totalorder %s5732_s13, %s5732_s13 }
0x1ddd   :  { %6508 = vmatmul.mubr.msk.f32.vlgmr.msra.gmra.mxu1 %vm452_vm2, %v4534_v0  ;;  %v5355_v63 = vadd.f32 %v7794_v7, %v7721_v39  ;;  %p6787_p0 = scmp.ne.s32.totalorder %s5732_s13, %s6786_s4  ;;  %p6792_p2 = scmp.lt.s32.totalorder %s6786_s4, %s6786_s4 }
0x1dde   :  { %6511 = vmatpush3.msra.mxu1 %v7602_v21  ;;  %v5068_v21 = vpop.permute.xlu0 %5067 }
0x1ddf   :  { %6520 = vmatprep.subr.msk.mxu1 %vm368_vm1, %v4791_v16  ;;  %v7799_v34 = vadd.f32 %v5355_v63, %v7500_v47  ;;  %p6793_p3 = por %p6792_p2, %p6791_p1 }
0x1de1   :  { %v5365_v14 = vsel %vm183_vm0, %v7799_v34, 0.0  ;;  %p6794_p4 = pnand %p6793_p3, %p6787_p0 }
0x1e9d   :  { %v6509_v25 = vpop.f32.mrf.mxu1 }
0x1e9f   :  { %v4613_v54 = vpop.f32.mrf.mxu1 }
0x1ea0   :  { %6512 = vmatprep.mubr.msk.f32.mxu1 %vm368_vm1, %v4613_v54 }
0x1ea1   :  { %6513 = vmatmul.mubr.msk.f32.vlgmr.msra.gmra.mxu1 %vm368_vm1, %v6509_v25 }
0x1ea2   :  { %6521 = vmatpush3.xpose.msk.msra.mxu1 %vm368_vm1, %v4791_v16  ;;  %6524 = vmatprep.mubr.msk.f32.mxu1 %vm368_vm1, %v4785_v29 }
0x1ea3   :  { %6522 = vmatprep.subr.msk.mxu1 %vm368_vm1, %v4789_v8 }
0x1ea6   :  { %6523 = vmatpush3.xpose.msk.msra.mxu1 %vm368_vm1, %v4789_v8 }
0x1ea7   :  { %6539 = vmatprep.subr.msk.mxu1 %vm368_vm1, %v5074_v17 }
0x1ea9   :  { %6525 = vmatmul.mubr.msk.f32.vlgmr.msra.gmra.mxu1 %vm368_vm1, %v4787_v18 }
0x1eaa   :  { %6540 = vmatpush3.xpose.msk.msra.mxu1 %vm368_vm1, %v5074_v17  ;;  %6543 = vmatprep.mubr.msk.f32.mxu1 %vm368_vm1, %v5068_v21  ;;  %v5354_v17 = vadd.f32 %v7794_v7, %v7723_v23  ;;  %v6519_v21 = vpop.f32.mrf.mxu0 }
0x1eab   :  { %6541 = vmatprep.subr.msk.mxu1 %vm368_vm1, %v5072_v22 }
0x1eac   :  { %v5358_v18 = vadd.f32 %v5354_v17, %v7497_v46 }
0x1eae   :  { %6542 = vmatpush3.xpose.msk.msra.mxu1 %vm368_vm1, %v5072_v22  ;;  %v4775_v22 = vpop.f32.mrf.mxu0 }
0x1eb1   :  { %6544 = vmatmul.mubr.msk.f32.vlgmr.msra.gmra.mxu1 %vm368_vm1, %v5070_v43 }
0x1f61   :  { %v7769_v38 = vpop.f32.mrf.mxu1 }
0x1f63   :  { %v7771_v19 = vpop.f32.mrf.mxu1 }
0x1f69   :  { %v6526_v26 = vpop.f32.mrf.mxu1 }
0x1f6a   :  { %v4878_v30 = vsel %vm452_vm2, %v6526_v26, -inf }
0x1f6b   :  { %4879 = vmax.xlane.f32.xlu1 %v4878_v30  ;;  %v4866_v9 = vpop.f32.mrf.mxu1 }
0x1f6c   :  { %v4875_v27 = vsel %vm452_vm2, %v4866_v9, -inf }
0x1f6d   :  { %4876 = vmax.xlane.f32.xlu0 %v4875_v27 }
0x1f71   :  { %v6545_v50 = vpop.f32.mrf.mxu1 }
0x1f72   :  { %v5161_v59 = vsel %vm452_vm2, %v6545_v50, -inf }
0x1f73   :  { %v5149_v45 = vpop.f32.mrf.mxu1 }
0x1f74   :  { %v5158_v32 = vsel %vm452_vm2, %v5149_v45, -inf }
0x1f7c   :  { %4897 = vrot.lane.b32.xlu1 %v7632_v48, %s6817_s1 }
0x1fa0   :  { %5159 = vmax.xlane.f32.xlu1 %v5158_v32  ;;  %v4776_v32 = vadd.f32 %v4775_v22, %v7771_v19 }
0x1ff4   :  { %v4880_v33 = vpop.xlane.xlu1 %4879 }
0x1ff5   :  { %v4882_v35 = vsub.f32 %v6526_v26, %v4880_v33 }
0x1ff6   :  { %v4877_v40 = vpop.xlane.xlu0 %4876 }
0x1ff7   :  { %v4885_v24 = vmul.f32 1.442695, %v4882_v35  ;;  %v4881_v51 = vsub.f32 %v4866_v9, %v4877_v40 }
0x1ff8   :  { %v4898_v2 = vpop.permute.xlu1 %4897 }
0x1ff9   :  { %6752 = vpow2.f32 %v4885_v24  ;;  %v4883_v52 = vmul.f32 1.442695, %v4881_v51 }
0x1ffb   :  { %6754 = vpow2.f32 %v4883_v52 }
0x2006   :  { %v6753_v53 = vpop.eup %6752 }
0x2007   :  { %v4890_v55 = vsel %vm452_vm2, %v6753_v53, 0.0 }
0x2008   :  { %v6755_v58 = vpop.eup %6754  ;;  %4891 = vadd.xlane.f32.xlu0 %v4890_v55 }
0x2009   :  { %v4887_v31 = vsel %vm452_vm2, %v6755_v58, 0.0 }
0x200c   :  { %4888 = vadd.xlane.f32.xlu0 %v4887_v31 }
0x2022   :  { %4899 = vrot.lane.b32.xlu0 %v7647_v37, %s6817_s1 }
0x2029   :  { %v5160_v57 = vpop.xlane.xlu1 %5159 }
0x202a   :  { %v5164_v61 = vsub.f32 %v5149_v45, %v5160_v57 }
0x202c   :  { %v5166_v4 = vmul.f32 1.442695, %v5164_v61 }
0x202e   :  { %6756 = vpow2.f32 %v5166_v4 }
0x203b   :  { %v6757_v13 = vpop.eup %6756 }
0x203c   :  { %v5170_v56 = vsel %vm452_vm2, %v6757_v13, 0.0 }
0x2041   :  { %5162 = vmax.xlane.f32.xlu0 %v5161_v59 }
0x2045   :  { %5171 = vadd.xlane.f32.xlu0 %v5170_v56 }
0x205b   :  { %5182 = vrot.lane.b32.xlu0 %v7647_v37, %s6818_s10 }
0x207a   :  { %5366 = vadd.xlane.f32.xlu0 %v5365_v14 }
0x2091   :  { %v4892_v37 = vpop.xlane.xlu0 %4891 }
0x2092   :  { %6758 = vrcp.f32 %v4892_v37 }
0x2095   :  { %v4889_v20 = vpop.xlane.xlu0 %4888 }
0x2096   :  { %6760 = vrcp.f32 %v4889_v20 }
0x2099   :  { %v4900_v3 = vpop.permute.xlu0 %4899 }
0x209a   :  { %6527 = vmatprep.subr.mxu0 %v4900_v3 }
0x209b   :  { %6528 = vmatpush3.msra.mxu0 %v4900_v3  ;;  %v5894_v3 = vld [vmem:[%s7922_s5 + $0x20] sm:$0xff] }
0x209c   :  { %6529 = vmatprep.subr.mxu0 %v4898_v2 }
0x209d   :  { %6530 = vmatpush3.msra.mxu0 %v4898_v2 }
0x209e   :  { %6534 = vmatprep.subr.mxu0 %v7675_v10 }
0x209f   :  { %v6759_v44 = vpop.eup %6758 }
0x20a0   :  { %v4896_v47 = vmul.f32 %v6759_v44, %v6753_v53 }
0x20a3   :  { %v6761_v39 = vpop.eup %6760 }
0x20a4   :  { %v4895_v11 = vmul.f32 %v6761_v39, %v6755_v58 }
0x20a6   :  { %6531 = vmatprep.mubr.msk.f32.mxu0 %vm452_vm2, %v4895_v11 }
0x20a7   :  { %6532 = vmatmul.mubr.msk.f32.vlgmr.msra.gmra.mxu0 %vm452_vm2, %v4896_v47 }
0x20a8   :  { %6535 = vmatpush3.msra.mxu0 %v7675_v10  ;;  %v5362_v10 = vsel %vm183_vm0, %v5358_v18, 0.0 }
0x20ca   :  { %v5163_v15 = vpop.xlane.xlu0 %5162 }
0x20cb   :  { %v5165_v0 = vsub.f32 %v6545_v50, %v5163_v15  ;;  %v4781_v50 = vadd.f32 %v6519_v21, %v7769_v38 }
0x20cd   :  { %v5168_v16 = vmul.f32 1.442695, %v5165_v0 }
0x20ce   :  { %v5172_v29 = vpop.xlane.xlu0 %5171 }
0x20cf   :  { %6762 = vpow2.f32 %v5168_v16 }
0x20d0   :  { %6764 = vrcp.f32 %v5172_v29 }
0x20d2   :  { %v5183_v25 = vpop.permute.xlu0 %5182 }
0x20d3   :  { %6546 = vmatprep.subr.mxu0 %v5183_v25 }
0x20dc   :  { %v6763_v8 = vpop.eup %6762 }
0x20dd   :  { %v5173_v54 = vsel %vm452_vm2, %v6763_v8, 0.0  ;;  %v6765_v43 = vpop.eup %6764 }
0x20de   :  { %5174 = vadd.xlane.f32.xlu1 %v5173_v54  ;;  %v5178_v27 = vmul.f32 %v6765_v43, %v6757_v13 }
0x20ef   :  { %5180 = vrot.lane.b32.xlu1 %v7632_v48, %s6818_s10 }
0x2103   :  { %v5367_v52 = vpop.xlane.xlu0 %5366 }
0x2104   :  { %v5375_v55 = vmul.f32 0.03125, %v5367_v52 }
0x2106   :  { %v5379_v38 = vsub.f32 %v7799_v34, %v5375_v55 }
0x2108   :  { %v5383_v63 = vmul.f32 %v5379_v38, %v5379_v38 }
0x210a   :  { %v5389_v34 = vsel %vm183_vm0, %v5383_v63, 0.0 }
0x2113   :  { %5363 = vadd.xlane.f32.xlu1 %v5362_v10 }
0x2167   :  { %v6533_v26 = vpop.f32.mrf.mxu0  ;;  %v5175_v30 = vpop.xlane.xlu1 %5174 }
0x2168   :  { %6766 = vrcp.f32 %v5175_v30 }
0x2169   :  { %v4975_v9 = vpop.f32.mrf.mxu0 }
0x216a   :  { %6536 = vmatprep.mubr.msk.f32.mxu0 %vm368_vm1, %v4975_v9 }
0x216b   :  { %6537 = vmatmul.mubr.msk.f32.vlgmr.msra.gmra.mxu0 %vm368_vm1, %v6533_v26  ;;  %v5181_v48 = vpop.permute.xlu1 %5180  ;;  %v5417_v26 = vrot.slane %v7789_v36, %v2682_v49  ;;  %v5909_v49 = vld [vmem:[%s7923_s6 + $0x78] sm:$0xff] }
0x216c   :  { %6547 = vmatpush3.msra.mxu0 %v5183_v25  ;;  %6550 = vmatprep.mubr.msk.f32.mxu0 %vm452_vm2, %v5178_v27 }
0x216d   :  { %6548 = vmatprep.subr.mxu0 %v5181_v48 }
0x216e   :  { %6549 = vmatpush3.msra.mxu0 %v5181_v48  ;;  %v5425_v48 = vrot.slane %v7789_v36, %v2690_v1  ;;  %v5908_v1 = vld [vmem:[%s7923_s6 + $0x70] sm:$0xff] }
0x216f   :  { %6553 = vmatprep.subr.mxu0 %v7688_v6 }
0x2175   :  { %v6767_v46 = vpop.eup %6766 }
0x2176   :  { %v5179_v23 = vmul.f32 %v6767_v46, %v6763_v8 }
0x2178   :  { %6551 = vmatmul.mubr.msk.f32.vlgmr.msra.gmra.mxu0 %vm452_vm2, %v5179_v23 }
0x2179   :  { %6554 = vmatpush3.msra.mxu0 %v7688_v6 }
0x217a   :  { %6572 = vmatprep.subr.mxu0 %v5909_v49 }
0x219c   :  { %v5364_v53 = vpop.xlane.xlu1 %5363 }
0x219d   :  { %v5374_v31 = vmul.f32 0.03125, %v5364_v53 }
0x219f   :  { %v5378_v61 = vsub.f32 %v5358_v18, %v5374_v31 }
0x21a1   :  { %v5382_v37 = vmul.f32 %v5378_v61, %v5378_v61 }
0x21a3   :  { %v5386_v20 = vsel %vm183_vm0, %v5382_v37, 0.0 }
0x222b   :  { %v6538_v45 = vpop.f32.mrf.mxu0 }
0x222c   :  { %v5066_v33 = vadd.f32 %v6538_v45, %v4781_v50 }
0x222d   :  { %v5056_v35 = vpop.f32.mrf.mxu0 }
0x222e   :  { %v5065_v40 = vadd.f32 %v5056_v35, %v4776_v32  ;;  %v5907_v32 = vld [vmem:[%s7923_s6 + $0x68] sm:$0xff]  ;;  %v5905_v35 = vld [vmem:[%s7923_s6 + $0x58] sm:$0xff] }
0x2238   :  { %v6552_v24 = vpop.f32.mrf.mxu0 }
0x223a   :  { %v5258_v51 = vpop.f32.mrf.mxu0 }
0x223b   :  { %6555 = vmatprep.mubr.msk.f32.mxu0 %vm368_vm1, %v5258_v51  ;;  %v5902_v51 = vld [vmem:[%s7923_s6 + $0x40] sm:$0xff] }
0x223c   :  { %6556 = vmatmul.mubr.msk.f32.vlgmr.msra.gmra.mxu0 %vm368_vm1, %v6552_v24  ;;  %v5903_v24 = vld [vmem:[%s7923_s6 + $0x48] sm:$0xff] }
0x223d   :  { %6573 = vmatpush3.msra.mxu0 %v5909_v49 }
0x223e   :  { %6574 = vmatprep.subr.mxu0 %v5908_v1 }
0x223f   :  { %6575 = vmatpush3.msra.mxu0 %v5908_v1 }
0x2240   :  { %6576 = vmatprep.subr.mxu0 %v5907_v32 }
0x2241   :  { %6577 = vmatpush3.msra.mxu0 %v5907_v32 }
0x22fc   :  { %v6557_v58 = vpop.f32.mrf.mxu0 }
0x22fd   :  { %v5349_v6 = vadd.f32 %v6557_v58, %v5066_v33  ;;  %v5906_v33 = vld [vmem:[%s7923_s6 + $0x60] sm:$0xff] }
0x22fe   :  { %v5339_v2 = vpop.f32.mrf.mxu0  ;;  %6578 = vmatprep.subr.mxu0 %v5906_v33 }
0x22ff   :  { %v5357_v19 = vadd.f32 %v7794_v7, %v5349_v6  ;;  %v5348_v57 = vadd.f32 %v5339_v2, %v5065_v40  ;;  %6579 = vmatpush3.msra.mxu0 %v5906_v33  ;;  %v5904_v40 = vld [vmem:[%s7923_s6 + $0x50] sm:$0xff] }
0x2300   :  { %6580 = vmatprep.subr.mxu0 %v5905_v35 }
0x2301   :  { %v5356_v4 = vadd.f32 %v7794_v7, %v5348_v57  ;;  %v5361_v59 = vadd.f32 %v5357_v19, %v7553_v12  ;;  %v5897_v12 = vld [vmem:[%s7922_s5 + $0x38] sm:$0xff]  ;;  %v5895_v7 = vld [vmem:[%s7922_s5 + $0x28] sm:$0xff]  ;;  %6581 = vmatpush3.msra.mxu0 %v5905_v35 }
0x2302   :  { %6558 = vmatprep.subr.mxu1 %v5897_v12  ;;  %6582 = vmatprep.subr.mxu0 %v5904_v40 }
0x2303   :  { %v5371_v13 = vsel %vm183_vm0, %v5361_v59, 0.0  ;;  %v5360_v56 = vadd.f32 %v5356_v4, %v7550_v28  ;;  %v5896_v28 = vld [vmem:[%s7922_s5 + $0x30] sm:$0xff]  ;;  %6559 = vmatpush3.msra.mxu1 %v5897_v12  ;;  %6583 = vmatpush3.msra.mxu0 %v5904_v40 }
0x2304   :  { %5372 = vadd.xlane.f32.xlu1 %v5371_v13  ;;  %6560 = vmatprep.subr.mxu1 %v5896_v28 }
0x2305   :  { %v5368_v14 = vsel %vm183_vm0, %v5360_v56, 0.0  ;;  %6561 = vmatpush3.msra.mxu1 %v5896_v28  ;;  %6584 = vmatprep.subr.mxu0 %v5903_v24 }
0x2306   :  { %5369 = vadd.xlane.f32.xlu0 %v5368_v14  ;;  %6562 = vmatprep.subr.mxu1 %v5895_v7 }
0x2307   :  { %6563 = vmatpush3.msra.mxu1 %v5895_v7  ;;  %6585 = vmatpush3.msra.mxu0 %v5903_v24 }
0x2308   :  { %5390 = vadd.xlane.f32.xlu1 %v5389_v34  ;;  %6564 = vmatprep.subr.mxu1 %v5894_v3 }
0x2309   :  { %6565 = vmatpush3.msra.mxu1 %v5894_v3  ;;  %6586 = vmatprep.subr.mxu0 %v5902_v51 }
0x230a   :  { %5387 = vadd.xlane.f32.xlu0 %v5386_v20  ;;  %6587 = vmatpush3.msra.mxu0 %v5902_v51 }
0x238d   :  { %v5373_v44 = vpop.xlane.xlu1 %5372 }
0x238e   :  { %v5377_v39 = vmul.f32 0.03125, %v5373_v44 }
0x238f   :  { %v5370_v11 = vpop.xlane.xlu0 %5369 }
0x2390   :  { %v5381_v47 = vsub.f32 %v5361_v59, %v5377_v39  ;;  %v5376_v15 = vmul.f32 0.03125, %v5370_v11 }
0x2391   :  { %v5391_v0 = vpop.xlane.xlu1 %5390 }
0x2392   :  { %v5380_v16 = vsub.f32 %v5360_v56, %v5376_v15  ;;  %v5399_v29 = vmul.f32 0.03125, %v5391_v0  ;;  %v5385_v25 = vmul.f32 %v5381_v47, %v5381_v47  ;;  %v5438_v56 = vrot.slane %v7789_v36, %v2702_v5 }
0x2393   :  { %v5388_v8 = vpop.xlane.xlu0 %5387  ;;  %v5552_v5 = vrot.slane %v29_v41, %v6991_v42 }
0x2394   :  { %v5403_v54 = vadd.f32 1e-05, %v5399_v29  ;;  %v5398_v17 = vmul.f32 0.03125, %v5388_v8  ;;  %v5395_v18 = vsel %vm183_vm0, %v5385_v25, 0.0  ;;  %v5384_v10 = vmul.f32 %v5380_v16, %v5380_v16 }
0x2395   :  { %5396 = vadd.xlane.f32.xlu1 %v5395_v18 }
0x2396   :  { %6768 = vrsqrt.f32 %v5403_v54  ;;  %v5402_v21 = vadd.f32 1e-05, %v5398_v17  ;;  %v5392_v22 = vsel %vm183_vm0, %v5384_v10, 0.0 }
0x2397   :  { %5393 = vadd.xlane.f32.xlu0 %v5392_v22 }
0x2398   :  { %6770 = vrsqrt.f32 %v5402_v21 }
0x23a3   :  { %v6769_v43 = vpop.eup %6768 }
0x23a4   :  { %v5411_v30 = vmul.f32 %v6769_v43, %v5379_v38 }
0x23a5   :  { %v6771_v9 = vpop.eup %6770 }
0x23a6   :  { %v5410_v27 = vmul.f32 %v6771_v9, %v5378_v61  ;;  %v5419_v46 = vmul.f32 %v5417_v26, %v5411_v30 }
0x23a8   :  { %v5418_v23 = vmul.f32 %v5417_v26, %v5410_v27  ;;  %v7855_v45 = vadd.f32 %v5425_v48, %v5419_v46 }
0x23aa   :  { %v7853_v50 = vadd.f32 %v5425_v48, %v5418_v23 }
0x23ac   :  { %6566 = vmatprep.mubr.msk.f32.mxu1 %vm183_vm0, %v7853_v50 }
0x23ad   :  { %6567 = vmatmul.mubr.msk.f32.vlgmr.msra.gmra.mxu1 %vm183_vm0, %v7855_v45 }
0x241e   :  { %v5397_v52 = vpop.xlane.xlu1 %5396 }
0x241f   :  { %v5401_v53 = vmul.f32 0.03125, %v5397_v52 }
0x2420   :  { %v5394_v55 = vpop.xlane.xlu0 %5393 }
0x2421   :  { %v5405_v58 = vadd.f32 1e-05, %v5401_v53  ;;  %v5400_v31 = vmul.f32 0.03125, %v5394_v55 }
0x2423   :  { %6772 = vrsqrt.f32 %v5405_v58  ;;  %v5404_v6 = vadd.f32 1e-05, %v5400_v31 }
0x2425   :  { %6774 = vrsqrt.f32 %v5404_v6 }
0x2430   :  { %v6773_v2 = vpop.eup %6772 }
0x2431   :  { %v5413_v38 = vmul.f32 %v6773_v2, %v5381_v47 }
0x2432   :  { %v6775_v19 = vpop.eup %6774 }
0x2433   :  { %v5412_v57 = vmul.f32 %v6775_v19, %v5380_v16  ;;  %v5421_v61 = vmul.f32 %v5417_v26, %v5413_v38 }
0x2435   :  { %v5420_v4 = vmul.f32 %v5417_v26, %v5412_v57  ;;  %v5429_v13 = vadd.f32 %v5425_v48, %v5421_v61  ;;  %v5709_v57 = vrot.slane %v29_v41, %v7022_v60 }
0x2437   :  { %v5428_v59 = vadd.f32 %v5425_v48, %v5420_v4  ;;  %v5717_v4 = vrot.slane %v29_v41, %v7026_v62 }
0x2439   :  { %6569 = vmatprep.mubr.msk.f32.mxu1 %vm183_vm0, %v5428_v59 }
0x243a   :  { %6570 = vmatmul.mubr.msk.f32.gmra.mxu1 %vm183_vm0, %v5429_v13 }
0x246d   :  { %v6568_v63 = vpop.f32.mrf.mxu1 }
0x246e   :  { %v5523_v14 = vadd.f32 %v6568_v63, %v5438_v56 }
0x246f   :  { %v5517_v37 = vpop.f32.mrf.mxu1 }
0x2470   :  { %v5518_v34 = vadd.f32 %v5517_v37, %v5438_v56  ;;  %v5537_v12 = vmax.f32 %v5523_v14, 0.0 }
0x2472   :  { %v5536_v20 = vmax.f32 %v5518_v34, 0.0 }
0x2474   :  { %6588 = vmatprep.mubr.msk.f32.mxu0 %vm2817_vm3, %v5536_v20 }
0x2475   :  { %6589 = vmatmul.mubr.msk.f32.vlgmr.msra.gmra.mxu0 %vm2817_vm3, %v5537_v12 }
0x24fa   :  { %v6571_v28 = vpop.f32.mrf.mxu1 }
0x24fb   :  { %v5533_v7 = vadd.f32 %v6571_v28, %v5438_v56 }
0x24fc   :  { %v5527_v3 = vpop.f32.mrf.mxu1 }
0x24fd   :  { %v5528_v44 = vadd.f32 %v5527_v3, %v5438_v56  ;;  %v5539_v11 = vmax.f32 %v5533_v7, 0.0 }
0x24ff   :  { %v5538_v39 = vmax.f32 %v5528_v44, 0.0 }
0x2501   :  { %6591 = vmatprep.mubr.msk.f32.mxu0 %vm2817_vm3, %v5538_v39 }
0x2502   :  { %6592 = vmatmul.mubr.msk.f32.gmra.mxu0 %vm2817_vm3, %v5539_v11 }
0x2535   :  { %v6590_v36 = vpop.f32.mrf.mxu0 }
0x2536   :  { %v5637_v47 = vadd.f32 %v6590_v36, %v5552_v5 }
0x2537   :  { %v5631_v15 = vpop.f32.mrf.mxu0 }
0x2538   :  { %v5651_v0 = vadd.f32 %v5637_v47, %v7855_v45  ;;  %v5632_v16 = vadd.f32 %v5631_v15, %v5552_v5 }
0x253a   :  { %v5650_v29 = vadd.f32 %v5632_v16, %v7853_v50  ;;  %v5657_v25 = vsel %vm183_vm0, %v5651_v0, 0.0 }
0x253b   :  { %5658 = vadd.xlane.f32.xlu1 %v5657_v25 }
0x253c   :  { %v5654_v8 = vsel %vm183_vm0, %v5650_v29, 0.0 }
0x253d   :  { %5655 = vadd.xlane.f32.xlu0 %v5654_v8 }
0x25c2   :  { %v6593_v54 = vpop.f32.mrf.mxu0 }
0x25c3   :  { %v5647_v17 = vadd.f32 %v6593_v54, %v5552_v5 }
0x25c4   :  { %v5659_v18 = vpop.xlane.xlu1 %5658  ;;  %v5641_v10 = vpop.f32.mrf.mxu0 }
0x25c5   :  { %v5653_v21 = vadd.f32 %v5647_v17, %v5429_v13  ;;  %v5667_v42 = vmul.f32 0.03125, %v5659_v18  ;;  %v5642_v22 = vadd.f32 %v5641_v10, %v5552_v5 }
0x25c6   :  { %v5656_v43 = vpop.xlane.xlu0 %5655 }
0x25c7   :  { %v5671_v26 = vsub.f32 %v5651_v0, %v5667_v42  ;;  %v5652_v30 = vadd.f32 %v5642_v22, %v5428_v59  ;;  %v5666_v9 = vmul.f32 0.03125, %v5656_v43  ;;  %v5663_v27 = vsel %vm183_vm0, %v5653_v21, 0.0 }
0x25c8   :  { %5664 = vadd.xlane.f32.xlu1 %v5663_v27 }
0x25c9   :  { %v5670_v48 = vsub.f32 %v5650_v29, %v5666_v9  ;;  %v5660_v46 = vsel %vm183_vm0, %v5652_v30, 0.0  ;;  %v5675_v23 = vmul.f32 %v5671_v26, %v5671_v26 }
0x25ca   :  { %5661 = vadd.xlane.f32.xlu0 %v5660_v46 }
0x25cb   :  { %v5681_v50 = vsel %vm183_vm0, %v5675_v23, 0.0  ;;  %v5674_v45 = vmul.f32 %v5670_v48, %v5670_v48 }
0x25cc   :  { %5682 = vadd.xlane.f32.xlu1 %v5681_v50 }
0x25cd   :  { %v5678_v49 = vsel %vm183_vm0, %v5674_v45, 0.0 }
0x25ce   :  { %5679 = vadd.xlane.f32.xlu0 %v5678_v49 }
0x2651   :  { %v5665_v1 = vpop.xlane.xlu1 %5664 }
0x2652   :  { %v5669_v32 = vmul.f32 0.03125, %v5665_v1 }
0x2653   :  { %v5662_v33 = vpop.xlane.xlu0 %5661 }
0x2654   :  { %v5673_v35 = vsub.f32 %v5653_v21, %v5669_v32  ;;  %v5668_v40 = vmul.f32 0.03125, %v5662_v33 }
0x2655   :  { %v5683_v24 = vpop.xlane.xlu1 %5682 }
0x2656   :  { %v5672_v51 = vsub.f32 %v5652_v30, %v5668_v40  ;;  %v5691_v52 = vmul.f32 0.03125, %v5683_v24  ;;  %v5677_v53 = vmul.f32 %v5673_v35, %v5673_v35 }
0x2657   :  { %v5680_v55 = vpop.xlane.xlu0 %5679 }
0x2658   :  { %v5695_v58 = vadd.f32 1e-05, %v5691_v52  ;;  %v5690_v31 = vmul.f32 0.03125, %v5680_v55  ;;  %v5687_v6 = vsel %vm183_vm0, %v5677_v53, 0.0  ;;  %v5676_v2 = vmul.f32 %v5672_v51, %v5672_v51 }
0x2659   :  { %5688 = vadd.xlane.f32.xlu1 %v5687_v6 }
0x265a   :  { %6776 = vrsqrt.f32 %v5695_v58  ;;  %v5694_v38 = vadd.f32 1e-05, %v5690_v31  ;;  %v5684_v19 = vsel %vm183_vm0, %v5676_v2, 0.0 }
0x265b   :  { %5685 = vadd.xlane.f32.xlu0 %v5684_v19 }
0x265c   :  { %6778 = vrsqrt.f32 %v5694_v38 }
0x2667   :  { %v6777_v61 = vpop.eup %6776 }
0x2668   :  { %v5703_v59 = vmul.f32 %v6777_v61, %v5671_v26 }
0x2669   :  { %v6779_v13 = vpop.eup %6778 }
0x266a   :  { %v5711_v56 = vmul.f32 %v5709_v57, %v5703_v59  ;;  %v5702_v63 = vmul.f32 %v6779_v13, %v5670_v48 }
0x266c   :  { %v5710_v14 = vmul.f32 %v5709_v57, %v5702_v63  ;;  %v5719_v37 = vadd.f32 %v5717_v4, %v5711_v56 }
0x266e   :  { %v5718_v34 = vadd.f32 %v5717_v4, %v5710_v14  ;;  %5723 = vst.msk [vmem:[#allocation2 + $0x8] sm:$0xff] %vm183_vm0, %v5719_v37 }
0x2670   :  { %5722 = vst.msk [vmem:[#allocation2] sm:$0xff] %vm183_vm0, %v5718_v34 }
0x26e2   :  { %v5689_v20 = vpop.xlane.xlu1 %5688 }
0x26e3   :  { %v5693_v12 = vmul.f32 0.03125, %v5689_v20 }
0x26e4   :  { %v5686_v28 = vpop.xlane.xlu0 %5685 }
0x26e5   :  { %v5697_v7 = vadd.f32 1e-05, %v5693_v12  ;;  %v5692_v3 = vmul.f32 0.03125, %v5686_v28 }
0x26e7   :  { %6780 = vrsqrt.f32 %v5697_v7  ;;  %v5696_v60 = vadd.f32 1e-05, %v5692_v3 }
0x26e9   :  { %6782 = vrsqrt.f32 %v5696_v60 }
0x26f4   :  { %v6781_v62 = vpop.eup %6780 }
0x26f5   :  { %v5705_v44 = vmul.f32 %v6781_v62, %v5673_v35 }
0x26f6   :  { %v6783_v39 = vpop.eup %6782 }
0x26f7   :  { %v5713_v11 = vmul.f32 %v5709_v57, %v5705_v44  ;;  %v5704_v41 = vmul.f32 %v6783_v39, %v5672_v51 }
0x26f9   :  { %v5712_v5 = vmul.f32 %v5709_v57, %v5704_v41  ;;  %v5721_v36 = vadd.f32 %v5717_v4, %v5713_v11 }
0x26fb   :  { %v5720_v47 = vadd.f32 %v5717_v4, %v5712_v5  ;;  %5725 = vst.msk [vmem:[#allocation2 + $0x18] sm:$0xff] %vm183_vm0, %v5721_v36 }
0x26fd   :  { %5724 = vst.msk [vmem:[#allocation2 + $0x10] sm:$0xff] %vm183_vm0, %v5720_v47 }
0x26fe   :  { %6797 = shalt.err (!%p6794_p4)
}
0x26ff   :  { %s6820_s21 = smov 128   ;;  %s6821_s22 = smov 8  }
0x2700   :  { %5737 = dma.vmem_to_hbm [thread:$0]  %s5732_s13, 512, %s7924_s7, [#allocation3], %s6820_s21, %s6820_s21, %s6821_s22  }
0x2701   :  { %6806 = dma.done.wait [#allocation3], 512  }
0x2702   :  { %6807 = vsyncadd [#allocation3], 4294966784 }
0x2703   :  { %5741 = vsyncpa [#allocation3], 1 }

</bundles_post_ra>
